<compile_context>
chip_gen: v6e
topology: v6e:2x2x1
jax: 0.10.0
libtpu: 0.0.40
codegen_flags: <defaults>
</compile_context>

<pallas_src>
import functools

import jax
import jax.numpy as jnp
from jax import lax
from jax.experimental import pallas as pl
from jax.experimental.pallas import tpu as pltpu

BN_EPS = 1e-5


# ---------------------------------------------------------------------------
# Generation-aware VMEM budgeting and strip sizing
# ---------------------------------------------------------------------------
def _vmem_budget_bytes():
    cap = 64 << 20  # conservative default (v7x per-TC VMEM)
    try:
        cap = int(getattr(pltpu.get_tpu_info(), "vmem_capacity_bytes", cap))
    except Exception:
        pass
    # Leave headroom for Mosaic-internal scratch / pipeline bookkeeping and
    # never request more than physical VMEM (v5e/v6e: 128 MiB, v7x: 64 MiB).
    return max(cap - (16 << 20), 24 << 20)


def _pick_strip_height(H, row_bytes, fixed_bytes, budget):
    divs = [d for d in range(H, 0, -1) if H % d == 0]
    fits = [d for d in divs if fixed_bytes + d * row_bytes <= budget]
    if not fits:
        return 1
    # Prefer >= 2 strips per image when the image is tall enough: more grid
    # steps -> double-buffered DMA/compute overlap and megacore (2-TC) sharding
    # even at batch 1-2.
    if H >= 16:
        for d in fits:
            if d <= H // 2:
                return d
    return fits[0]


def _conv_row_bytes(W, Cin, Cout, x_bytes, y_bytes, im2col, pad_bytes):
    io = 2 * W * (Cin * x_bytes + Cout * y_bytes)        # double-buffered in/out
    pad = (W + 2) * Cin * pad_bytes                      # padded activation rows
    slab = W * (9 * Cin if im2col else Cin) * 2          # bf16 matmul LHS
    acc = 2 * W * Cout * 4                               # f32 accumulator + epilogue
    return io + pad + slab + acc


# ---------------------------------------------------------------------------
# Import-time capability probe: can this Mosaic build lower the bf16 im2col
# construction (unaligned sublane slices + lane-dim concatenation)?
# ---------------------------------------------------------------------------
def _probe_bf16_im2col():
    hs, W, C = 8, 8, 4

    def k(a_ref, o_ref):
        apad = a_ref[...]                                 # (hs+2, W+2, C) bf16
        taps = [apad[dy:dy + hs, dx:dx + W, :].reshape(hs * W, C)
                for dy in range(3) for dx in range(3)]
        o_ref[...] = jnp.concatenate(taps, axis=-1)       # (hs*W, 9*C)

    try:
        f = pl.pallas_call(
            k, out_shape=jax.ShapeDtypeStruct((hs * W, 9 * C), jnp.bfloat16))
        jax.block_until_ready(f(jnp.zeros((hs + 2, W + 2, C), jnp.bfloat16)))
        return True
    except Exception:
        return False


_RELAYOUT_OK = _probe_bf16_im2col()


# ---------------------------------------------------------------------------
# Kernel 1: per-strip per-channel sum / centred sum-of-squares (BN1 stats)
# ---------------------------------------------------------------------------
def _bn_stats_kernel(x_ref, sum_ref, csq_ref):
    # x_ref : (1, Hs, W, C) ; outputs : (1, 1, C) partials for this strip.
    x = x_ref[0].astype(jnp.float32)                      # (Hs, W, C)
    C = x.shape[-1]
    xf = x.reshape(-1, C)                                 # (Hs*W, C)
    inv_cnt = 1.0 / float(xf.shape[0])
    s = jnp.sum(xf, axis=0, keepdims=True)                # (1, C)
    csq = jnp.sum((xf - s * inv_cnt) ** 2, axis=0, keepdims=True)
    sum_ref[...] = s.reshape(1, 1, C)
    csq_ref[...] = csq.reshape(1, 1, C)


# ---------------------------------------------------------------------------
# Kernel 2: fused (affine BN) -> ReLU -> 3x3 "same" conv (+ next-stage stats)
# ---------------------------------------------------------------------------
def _bn_relu_conv3x3_kernel(x_ref, top_ref, bot_ref, scale_ref, shift_ref,
                            w_ref, b_ref, y_ref, ysum_ref, ycsq_ref, *,
                            pad_dtype):
    # x_ref    : (1, Hs, W, Cin)   raw input strip (unpadded, un-normalized)
    # top/bot  : (1, 1, W, Cin)    neighbour halo rows (border strips: masked
    #                              to exact zeros below = conv zero padding)
    # scale    : (1, Cin) f32      folded BN scale;  shift : (1, Cin) f32
    # w_ref    : (9*Cin, Cout) bf16 [im2col]  or  (3, 3, Cin, Cout) bf16
    # b_ref    : (1, Cout) f32
    # y_ref    : (1, Hs, W, Cout)  conv output strip
    # ysum/ycsq: (1, 1, Cout)      per-strip sum / centred sum-sq of the output
    hs, W, Cin = x_ref.shape[1], x_ref.shape[2], x_ref.shape[3]
    Cout = y_ref.shape[3]
    s_idx = pl.program_id(1)
    n_strips = pl.num_programs(1)

    scale = scale_ref[...]                                # (1, Cin)
    shift = shift_ref[...]

    def bn_relu(v):                                       # (..., W, Cin) -> f32
        return jnp.maximum(v.astype(jnp.float32) * scale + shift, 0.0)

    # BN + ReLU on the VPU (f32), then a single cast per piece to the pad dtype.
    act = bn_relu(x_ref[0]).astype(pad_dtype)             # (Hs, W, Cin)
    not_first = (s_idx > 0).astype(jnp.float32)
    not_last = (s_idx < n_strips - 1).astype(jnp.float32)
    top = (bn_relu(top_ref[0]) * not_first).astype(pad_dtype)   # (1, W, Cin)
    bot = (bn_relu(bot_ref[0]) * not_last).astype(pad_dtype)    # (1, W, Cin)

    # Zero-padded activation built as values (no scratch, no masked Ref stores).
    rows = jnp.concatenate([top, act, bot], axis=0)       # (Hs+2, W, Cin)
    zcol = jnp.zeros((hs + 2, 1, Cin), pad_dtype)
    apad = jnp.concatenate([zcol, rows, zcol], axis=1)    # (Hs+2, W+2, Cin)

    if w_ref.ndim == 2:
        # im2col: one (Hs*W, 9*Cin) @ (9*Cin, Cout) MXU matmul, K = 9*Cin.
        taps = [apad[dy:dy + hs, dx:dx + W, :].reshape(hs * W, Cin)
                for dy in range(3) for dx in range(3)]
        slab = jnp.concatenate(taps, axis=-1)             # (Hs*W, 9*Cin) bf16
        acc = jnp.dot(slab, w_ref[...], preferred_element_type=jnp.float32)
    else:
        # Large-Cin / fallback path: 9 (Hs*W, Cin) @ (Cin, Cout) matmuls.
        acc = jnp.zeros((hs * W, Cout), jnp.float32)
        for dy in range(3):
            for dx in range(3):
                slab = (apad[dy:dy + hs, dx:dx + W, :]
                        .reshape(hs * W, Cin).astype(jnp.bfloat16))
                acc = acc + jnp.dot(slab, w_ref[dy, dx],
                                    preferred_element_type=jnp.float32)

    out = acc + b_ref[...]                                # (Hs*W, Cout) f32

    # Single store of the whole output strip.
    y_ref[0] = out.reshape(hs, W, Cout).astype(y_ref.dtype)

    # Fused per-strip stats of the conv output (input of the next BatchNorm),
    # centred at the strip mean; combined across strips with Chan's formula.
    inv_cnt = 1.0 / float(hs * W)
    ssum = jnp.sum(out, axis=0, keepdims=True)            # (1, Cout)
    csq = jnp.sum((out - ssum * inv_cnt) ** 2, axis=0, keepdims=True)
    ysum_ref[...] = ssum.reshape(1, 1, Cout)
    ycsq_ref[...] = csq.reshape(1, 1, Cout)


# ---------------------------------------------------------------------------
# Host-side helpers
# ---------------------------------------------------------------------------
def _combine_stats(ssum, scsq, n_per):
    """Chan-combine per-strip (sum, centred-sum-sq) partials of equal size."""
    # ssum, scsq: (P, 1, C) f32; n_per = elements per partial.
    total = ssum.shape[0] * n_per
    mean = jnp.sum(ssum, axis=(0, 1)) / total                     # (C,)
    m_i = ssum[:, 0, :] / n_per                                   # (P, C)
    var = (jnp.sum(scsq, axis=(0, 1))
           + n_per * jnp.sum((m_i - mean[None, :]) ** 2, axis=0)) / total
    return mean, var                                              # biased var


def _strip_halo_rows(x, hs):
    """Per-strip top/bottom halo rows of x: shape (N, S, W, C) each.

    Border halos are zeros; interior halos are the neighbouring rows.  Cheap
    host-side strided slices (reads only 2*(S-1) rows), no full-image pad.
    """
    N, H, W, C = x.shape
    S = H // hs
    zero = jnp.zeros((N, 1, W, C), x.dtype)
    if S > 1:
        top_in = x[:, hs - 1:H - 1:hs]                    # rows s*hs - 1, s=1..S-1
        bot_in = x[:, hs:H:hs]                            # rows (s+1)*hs, s=0..S-2
        top = jnp.concatenate([zero, top_in], axis=1)
        bot = jnp.concatenate([bot_in, zero], axis=1)
    else:
        top, bot = zero, zero
    return top, bot


def _batch_stats(x_nhwc):
    """Per-channel batch mean / biased variance of x over (N, H, W)."""
    N, H, W, C = x_nhwc.shape
    xb = jnp.dtype(x_nhwc.dtype).itemsize
    budget = _vmem_budget_bytes()
    row_bytes = 2 * W * C * xb + 3 * W * C * 4
    hs = _pick_strip_height(H, row_bytes, 1 << 20, budget)
    S = H // hs

    sums, csqs = pl.pallas_call(
        _bn_stats_kernel,
        out_shape=(jax.ShapeDtypeStruct((N * S, 1, C), jnp.float32),
                   jax.ShapeDtypeStruct((N * S, 1, C), jnp.float32)),
        grid=(N, S),
        in_specs=[pl.BlockSpec((1, hs, W, C), lambda n, s: (n, s, 0, 0))],
        out_specs=(pl.BlockSpec((1, 1, C), lambda n, s: (n * S + s, 0, 0)),
                   pl.BlockSpec((1, 1, C), lambda n, s: (n * S + s, 0, 0))),
        compiler_params=pltpu.CompilerParams(
            dimension_semantics=("parallel", "parallel"),
            vmem_limit_bytes=budget),
    )(x_nhwc)
    return _combine_stats(sums, csqs, hs * W)


def _bn_relu_conv_stage(x_nhwc, mean, var, gamma, beta, w_hwio, bias,
                        out_dtype):
    """relu(BN(x)) -> conv3x3 'same'.  Returns (y, ysum, ycsq, strip_height)."""
    N, H, W, Cin = x_nhwc.shape
    Cout = w_hwio.shape[-1]
    x_bytes = jnp.dtype(x_nhwc.dtype).itemsize
    y_bytes = jnp.dtype(out_dtype).itemsize

    im2col = _RELAYOUT_OK and (Cin < 128)
    pad_dtype = jnp.bfloat16 if _RELAYOUT_OK else jnp.float32
    pad_bytes = 2 if _RELAYOUT_OK else 4

    budget = _vmem_budget_bytes()
    fixed = 2 * (9 * Cin * Cout * 2) + (4 << 20)
    hs = _pick_strip_height(
        H, _conv_row_bytes(W, Cin, Cout, x_bytes, y_bytes, im2col, pad_bytes),
        fixed, budget)
    S = H // hs
    top, bot = _strip_halo_rows(x_nhwc, hs)

    # Fold BN into a per-channel affine (scale, shift).
    scale = (gamma / jnp.sqrt(var + BN_EPS)).astype(jnp.float32)   # (Cin,)
    shift = (beta - mean * scale).astype(jnp.float32)              # (Cin,)

    if im2col:
        # Row order matches the in-kernel tap order: (dy, dx, c) row-major.
        w_arg = w_hwio.reshape(9 * Cin, Cout).astype(jnp.bfloat16)
        w_spec = pl.BlockSpec((9 * Cin, Cout), lambda n, s: (0, 0))
    else:
        w_arg = w_hwio.astype(jnp.bfloat16)
        w_spec = pl.BlockSpec((3, 3, Cin, Cout), lambda n, s: (0, 0, 0, 0))

    kernel = functools.partial(_bn_relu_conv3x3_kernel, pad_dtype=pad_dtype)

    y, ysum, ycsq = pl.pallas_call(
        kernel,
        out_shape=(jax.ShapeDtypeStruct((N, H, W, Cout), out_dtype),
                   jax.ShapeDtypeStruct((N * S, 1, Cout), jnp.float32),
                   jax.ShapeDtypeStruct((N * S, 1, Cout), jnp.float32)),
        grid=(N, S),
        in_specs=[
            pl.BlockSpec((1, hs, W, Cin), lambda n, s: (n, s, 0, 0)),
            pl.BlockSpec((1, 1, W, Cin), lambda n, s: (n, s, 0, 0)),
            pl.BlockSpec((1, 1, W, Cin), lambda n, s: (n, s, 0, 0)),
            pl.BlockSpec((1, Cin), lambda n, s: (0, 0)),
            pl.BlockSpec((1, Cin), lambda n, s: (0, 0)),
            w_spec,
            pl.BlockSpec((1, Cout), lambda n, s: (0, 0)),
        ],
        out_specs=(
            pl.BlockSpec((1, hs, W, Cout), lambda n, s: (n, s, 0, 0)),
            pl.BlockSpec((1, 1, Cout), lambda n, s: (n * S + s, 0, 0)),
            pl.BlockSpec((1, 1, Cout), lambda n, s: (n * S + s, 0, 0)),
        ),
        compiler_params=pltpu.CompilerParams(
            dimension_semantics=("parallel", "parallel"),
            vmem_limit_bytes=budget),
    )(x_nhwc, top, bot, scale[None, :], shift[None, :], w_arg,
      bias.astype(jnp.float32)[None, :])
    return y, ysum, ycsq, hs


def conv_block_forward(x_nchw, params):
    """ConvBlock.forward: relu(bn1(x)) -> conv1 -> relu(bn2(.)) -> conv2."""
    x = jnp.transpose(x_nchw, (0, 2, 3, 1))               # NCHW -> NHWC
    _, _, _, _ = x.shape
    W = x.shape[2]

    mean1, var1 = _batch_stats(x)
    # Stage 1: BN1 -> ReLU -> conv1.  Intermediate kept in bf16 to halve the
    # inter-stage HBM traffic; BN2 stats are fused into the conv epilogue
    # (computed from the f32 accumulator, a tiny mismatch vs the bf16-rounded
    # values stage 2 normalizes - negligible).
    y1, s1, q1, hs1 = _bn_relu_conv_stage(x, mean1, var1,
                                          params["gamma1"], params["beta1"],
                                          params["w1"], params["b1"],
                                          out_dtype=jnp.bfloat16)
    mean2, var2 = _combine_stats(s1, q1, hs1 * W)
    y2, _, _, _ = _bn_relu_conv_stage(y1, mean2, var2,
                                      params["gamma2"], params["beta2"],
                                      params["w2"], params["b2"],
                                      out_dtype=jnp.float32)
    return jnp.transpose(y2, (0, 3, 1, 2))                # NHWC -> NCHW


# ---------------------------------------------------------------------------
# Pure-JAX reference (for correctness check)
# ---------------------------------------------------------------------------
def _ref_forward(x_nchw, params):
    def bn_relu(x, gamma, beta):
        mean = jnp.mean(x, axis=(0, 2, 3), keepdims=True)
        var = jnp.var(x, axis=(0, 2, 3), keepdims=True)   # biased
        xn = (x - mean) / jnp.sqrt(var + BN_EPS)
        return jax.nn.relu(xn * gamma[None, :, None, None]
                           + beta[None, :, None, None])

    def conv(x, w_hwio, b):
        w_oihw = jnp.transpose(w_hwio, (3, 2, 0, 1))
        y = lax.conv_general_dilated(
            x, w_oihw, (1, 1), "SAME",
            dimension_numbers=("NCHW", "OIHW", "NCHW"))
        return y + b[None, :, None, None]

    a = bn_relu(x_nchw, params["gamma1"], params["beta1"])
    y = conv(a, params["w1"], params["b1"])
    a2 = bn_relu(y, params["gamma2"], params["beta2"])
    return conv(a2, params["w2"], params["b2"])


if __name__ == "__main__":
    key = jax.random.PRNGKey(0)
    keys = jax.random.split(key, 9)
    N, Cin, Cout, H, W = 2, 4, 8, 16, 16

    x = jax.random.normal(keys[0], (N, Cin, H, W), jnp.float32)
    params = dict(
        gamma1=1.0 + 0.1 * jax.random.normal(keys[1], (Cin,), jnp.float32),
        beta1=0.1 * jax.random.normal(keys[2], (Cin,), jnp.float32),
        w1=0.2 * jax.random.normal(keys[3], (3, 3, Cin, Cout), jnp.float32),
        b1=0.1 * jax.random.normal(keys[4], (Cout,), jnp.float32),
        gamma2=1.0 + 0.1 * jax.random.normal(keys[5], (Cout,), jnp.float32),
        beta2=0.1 * jax.random.normal(keys[6], (Cout,), jnp.float32),
        w2=0.2 * jax.random.normal(keys[7], (3, 3, Cout, Cout), jnp.float32),
        b2=0.1 * jax.random.normal(keys[8], (Cout,), jnp.float32),
    )

    fwd = jax.jit(conv_block_forward)
    out = jax.block_until_ready(fwd(x, params))
    ref = _ref_forward(x, params)

    assert out.shape == (N, Cout, H, W), out.shape
    # bf16 matmul operands + bf16 inter-stage activation (f32 accumulation)
    # => looser tolerance than pure f32.
    max_err = float(jnp.max(jnp.abs(out - ref)))
    assert bool(jnp.allclose(out, ref, atol=1e-1, rtol=5e-2)), max_err
    print("KERNEL_OK")
</pallas_src>

<mosaic_0001>
module attributes {stable_mosaic.version = 11 : i64} {
  func.func @k(%arg0: memref<10x10x4xbf16, #tpu.memory_space<vmem>>, %arg1: memref<64x36xbf16, #tpu.memory_space<vmem>>) attributes {dimension_semantics = [], scalar_prefetch = 0 : i64, scratch_operands = 0 : i64, tpu.core_type = #tpu.core_type<tc>} {
    %c0 = arith.constant 0 : index
    %c0_0 = arith.constant 0 : index
    %c0_1 = arith.constant 0 : index
    %0 = vector.load %arg0[%c0, %c0_0, %c0_1] : memref<10x10x4xbf16, #tpu.memory_space<vmem>>, vector<10x10x4xbf16>
    %1 = vector.extract_strided_slice %0 {offsets = [0, 0, 0], sizes = [8, 8, 4], strides = [1, 1, 1]} : vector<10x10x4xbf16> to vector<8x8x4xbf16>
    %2 = vector.shape_cast %1 : vector<8x8x4xbf16> to vector<64x4xbf16>
    %3 = vector.extract_strided_slice %0 {offsets = [0, 1, 0], sizes = [8, 8, 4], strides = [1, 1, 1]} : vector<10x10x4xbf16> to vector<8x8x4xbf16>
    %4 = vector.shape_cast %3 : vector<8x8x4xbf16> to vector<64x4xbf16>
    %5 = vector.extract_strided_slice %0 {offsets = [0, 2, 0], sizes = [8, 8, 4], strides = [1, 1, 1]} : vector<10x10x4xbf16> to vector<8x8x4xbf16>
    %6 = vector.shape_cast %5 : vector<8x8x4xbf16> to vector<64x4xbf16>
    %7 = vector.extract_strided_slice %0 {offsets = [1, 0, 0], sizes = [8, 8, 4], strides = [1, 1, 1]} : vector<10x10x4xbf16> to vector<8x8x4xbf16>
    %8 = vector.shape_cast %7 : vector<8x8x4xbf16> to vector<64x4xbf16>
    %9 = vector.extract_strided_slice %0 {offsets = [1, 1, 0], sizes = [8, 8, 4], strides = [1, 1, 1]} : vector<10x10x4xbf16> to vector<8x8x4xbf16>
    %10 = vector.shape_cast %9 : vector<8x8x4xbf16> to vector<64x4xbf16>
    %11 = vector.extract_strided_slice %0 {offsets = [1, 2, 0], sizes = [8, 8, 4], strides = [1, 1, 1]} : vector<10x10x4xbf16> to vector<8x8x4xbf16>
    %12 = vector.shape_cast %11 : vector<8x8x4xbf16> to vector<64x4xbf16>
    %13 = vector.extract_strided_slice %0 {offsets = [2, 0, 0], sizes = [8, 8, 4], strides = [1, 1, 1]} : vector<10x10x4xbf16> to vector<8x8x4xbf16>
    %14 = vector.shape_cast %13 : vector<8x8x4xbf16> to vector<64x4xbf16>
    %15 = vector.extract_strided_slice %0 {offsets = [2, 1, 0], sizes = [8, 8, 4], strides = [1, 1, 1]} : vector<10x10x4xbf16> to vector<8x8x4xbf16>
    %16 = vector.shape_cast %15 : vector<8x8x4xbf16> to vector<64x4xbf16>
    %17 = vector.extract_strided_slice %0 {offsets = [2, 2, 0], sizes = [8, 8, 4], strides = [1, 1, 1]} : vector<10x10x4xbf16> to vector<8x8x4xbf16>
    %18 = vector.shape_cast %17 : vector<8x8x4xbf16> to vector<64x4xbf16>
    %19 = tpu.concatenate %2, %4, %6, %8, %10, %12, %14, %16, %18 in 1 : vector<64x4xbf16>, vector<64x4xbf16>, vector<64x4xbf16>, vector<64x4xbf16>, vector<64x4xbf16>, vector<64x4xbf16>, vector<64x4xbf16>, vector<64x4xbf16>, vector<64x4xbf16> -> vector<64x36xbf16>
    %c0_2 = arith.constant 0 : index
    %c0_3 = arith.constant 0 : index
    %20 = vector.load %arg1[%c0_2, %c0_3] : memref<64x36xbf16, #tpu.memory_space<vmem>>, vector<64x36xbf16>
    tpu.vector_store %arg1[%c0_2, %c0_3], %19 {strides = array<i32>} : memref<64x36xbf16, #tpu.memory_space<vmem>>, vector<64x36xbf16>,
    return
  }
}

module attributes {stable_mosaic.version = 11 : i64} {
  func.func @_bn_stats_kernel(%arg0: i32, %arg1: i32, %arg2: memref<1x8x16x4xf32, #tpu.memory_space<vmem>>, %arg3: memref<1x1x4xf32, #tpu.memory_space<vmem>>, %arg4: memref<1x1x4xf32, #tpu.memory_space<vmem>>) attributes {dimension_semantics = [#tpu.dimension_semantics<parallel>, #tpu.dimension_semantics<parallel>], iteration_bounds = array<i64: 2, 2>, scalar_prefetch = 0 : i64, scratch_operands = 0 : i64, tpu.core_type = #tpu.core_type<tc>, window_params = [{transform_indices = @transform_0, window_bounds = array<i64: 1, 8, 16, 4>}, {transform_indices = @transform_1, window_bounds = array<i64: 1, 1, 4>}, {transform_indices = @transform_2, window_bounds = array<i64: 1, 1, 4>}]} {
    %c0 = arith.constant 0 : index
    %c0_0 = arith.constant 0 : index
    %c0_1 = arith.constant 0 : index
    %c0_2 = arith.constant 0 : index
    %0 = vector.load %arg2[%c0, %c0_0, %c0_1, %c0_2] : memref<1x8x16x4xf32, #tpu.memory_space<vmem>>, vector<1x8x16x4xf32>
    %1 = vector.shape_cast %0 : vector<1x8x16x4xf32> to vector<8x16x4xf32>
    %2 = vector.shape_cast %1 : vector<8x16x4xf32> to vector<128x4xf32>
    %cst = arith.constant dense<0.000000e+00> : vector<4xf32>
    %3 = vector.multi_reduction <add>, %2, %cst [0] : vector<128x4xf32> to vector<4xf32>
    %4 = vector.shape_cast %3 : vector<4xf32> to vector<1x4xf32>
    %cst_3 = arith.constant 7.812500e-03 : f32
    %5 = vector.broadcast %cst_3 : f32 to vector<1x4xf32>
    %6 = arith.mulf %4, %5 : vector<1x4xf32>
    %7 = vector.broadcast %6 : vector<1x4xf32> to vector<128x4xf32>
    %8 = arith.subf %2, %7 : vector<128x4xf32>
    %9 = arith.mulf %8, %8 : vector<128x4xf32>
    %cst_4 = arith.constant dense<0.000000e+00> : vector<4xf32>
    %10 = vector.multi_reduction <add>, %9, %cst_4 [0] : vector<128x4xf32> to vector<4xf32>
    %11 = vector.shape_cast %10 : vector<4xf32> to vector<1x4xf32>
    %12 = vector.shape_cast %4 : vector<1x4xf32> to vector<1x1x4xf32>
    %c0_5 = arith.constant 0 : index
    %c0_6 = arith.constant 0 : index
    %c0_7 = arith.constant 0 : index
    %13 = vector.load %arg3[%c0_5, %c0_6, %c0_7] : memref<1x1x4xf32, #tpu.memory_space<vmem>>, vector<1x1x4xf32>
    tpu.vector_store %arg3[%c0_5, %c0_6, %c0_7], %12 {strides = array<i32>} : memref<1x1x4xf32, #tpu.memory_space<vmem>>, vector<1x1x4xf32>,
    %14 = vector.shape_cast %11 : vector<1x4xf32> to vector<1x1x4xf32>
    %c0_8 = arith.constant 0 : index
    %c0_9 = arith.constant 0 : index
    %c0_10 = arith.constant 0 : index
    %15 = vector.load %arg4[%c0_8, %c0_9, %c0_10] : memref<1x1x4xf32, #tpu.memory_space<vmem>>, vector<1x1x4xf32>
    tpu.vector_store %arg4[%c0_8, %c0_9, %c0_10], %14 {strides = array<i32>} : memref<1x1x4xf32, #tpu.memory_space<vmem>>, vector<1x1x4xf32>,
    return
  }
  func.func @transform_0(%arg0: i32, %arg1: i32) -> (i32, i32, i32, i32) {
    %c0_i32 = arith.constant 0 : i32
    %c0_i32_0 = arith.constant 0 : i32
    %c0_i32_1 = arith.constant 0 : i32
    return %arg0, %arg1, %c0_i32, %c0_i32_0 : i32, i32, i32, i32
  }
  func.func @transform_1(%arg0: i32, %arg1: i32) -> (i32, i32, i32) {
    %c2_i32 = arith.constant 2 : i32
    %0 = arith.muli %arg0, %c2_i32 : i32
    %1 = arith.addi %0, %arg1 : i32
    %c0_i32 = arith.constant 0 : i32
    %c0_i32_0 = arith.constant 0 : i32
    %c0_i32_1 = arith.constant 0 : i32
    return %1, %c0_i32, %c0_i32_0 : i32, i32, i32
  }
  func.func @transform_2(%arg0: i32, %arg1: i32) -> (i32, i32, i32) {
    %c2_i32 = arith.constant 2 : i32
    %0 = arith.muli %arg0, %c2_i32 : i32
    %1 = arith.addi %0, %arg1 : i32
    %c0_i32 = arith.constant 0 : i32
    %c0_i32_0 = arith.constant 0 : i32
    %c0_i32_1 = arith.constant 0 : i32
    return %1, %c0_i32, %c0_i32_0 : i32, i32, i32
  }
}

module attributes {stable_mosaic.version = 11 : i64} {
  func.func @_bn_relu_conv3x3_kernel(%arg0: i32, %arg1: i32, %arg2: memref<1x8x16x8xbf16, #tpu.memory_space<vmem>>, %arg3: memref<1x1x16x8xbf16, #tpu.memory_space<vmem>>, %arg4: memref<1x1x16x8xbf16, #tpu.memory_space<vmem>>, %arg5: memref<1x8xf32, #tpu.memory_space<vmem>>, %arg6: memref<1x8xf32, #tpu.memory_space<vmem>>, %arg7: memref<3x3x8x8xbf16, #tpu.memory_space<vmem>>, %arg8: memref<1x8xf32, #tpu.memory_space<vmem>>, %arg9: memref<1x8x16x8xf32, #tpu.memory_space<vmem>>, %arg10: memref<1x1x8xf32, #tpu.memory_space<vmem>>, %arg11: memref<1x1x8xf32, #tpu.memory_space<vmem>>) attributes {dimension_semantics = [#tpu.dimension_semantics<parallel>, #tpu.dimension_semantics<parallel>], iteration_bounds = array<i64: 2, 2>, scalar_prefetch = 0 : i64, scratch_operands = 0 : i64, tpu.core_type = #tpu.core_type<tc>, window_params = [{transform_indices = @transform_0, window_bounds = array<i64: 1, 8, 16, 8>}, {transform_indices = @transform_1, window_bounds = array<i64: 1, 1, 16, 8>}, {transform_indices = @transform_2, window_bounds = array<i64: 1, 1, 16, 8>}, {pipeline_mode = #tpu.pipeline_mode<synchronous>, transform_indices = @transform_3, window_bounds = array<i64: 1, 8>}, {pipeline_mode = #tpu.pipeline_mode<synchronous>, transform_indices = @transform_4, window_bounds = array<i64: 1, 8>}, {pipeline_mode = #tpu.pipeline_mode<synchronous>, transform_indices = @transform_5, window_bounds = array<i64: 3, 3, 8, 8>}, {pipeline_mode = #tpu.pipeline_mode<synchronous>, transform_indices = @transform_6, window_bounds = array<i64: 1, 8>}, {transform_indices = @transform_7, window_bounds = array<i64: 1, 8, 16, 8>}, {transform_indices = @transform_8, window_bounds = array<i64: 1, 1, 8>}, {transform_indices = @transform_9, window_bounds = array<i64: 1, 1, 8>}]} {
    %c0 = arith.constant 0 : index
    %c0_0 = arith.constant 0 : index
    %0 = vector.load %arg5[%c0, %c0_0] : memref<1x8xf32, #tpu.memory_space<vmem>>, vector<1x8xf32>
    %c0_1 = arith.constant 0 : index
    %c0_2 = arith.constant 0 : index
    %1 = vector.load %arg6[%c0_1, %c0_2] : memref<1x8xf32, #tpu.memory_space<vmem>>, vector<1x8xf32>
    %c0_3 = arith.constant 0 : index
    %c0_4 = arith.constant 0 : index
    %c0_5 = arith.constant 0 : index
    %c0_6 = arith.constant 0 : index
    %2 = vector.load %arg2[%c0_3, %c0_4, %c0_5, %c0_6] : memref<1x8x16x8xbf16, #tpu.memory_space<vmem>>, vector<1x8x16x8xbf16>
    %3 = vector.shape_cast %2 : vector<1x8x16x8xbf16> to vector<8x16x8xbf16>
    %4 = arith.extf %3 : vector<8x16x8xbf16> to vector<8x16x8xf32>
    %5 = vector.shape_cast %0 : vector<1x8xf32> to vector<1x1x8xf32>
    %6 = vector.broadcast %5 : vector<1x1x8xf32> to vector<8x16x8xf32>
    %7 = arith.mulf %4, %6 : vector<8x16x8xf32>
    %8 = vector.shape_cast %1 : vector<1x8xf32> to vector<1x1x8xf32>
    %9 = vector.broadcast %8 : vector<1x1x8xf32> to vector<8x16x8xf32>
    %10 = arith.addf %7, %9 : vector<8x16x8xf32>
    %cst = arith.constant 0.000000e+00 : f32
    %11 = vector.broadcast %cst : f32 to vector<8x16x8xf32>
    %12 = arith.maximumf %10, %11 : vector<8x16x8xf32>
    %c0_i32 = arith.constant 0 : i32
    %13 = arith.cmpi sgt, %arg1, %c0_i32 : i32
    %14 = arith.extui %13 : i1 to i32
    %15 = arith.sitofp %14 : i32 to f32
    %c1_i32 = arith.constant 1 : i32
    %16 = arith.cmpi slt, %arg1, %c1_i32 : i32
    %17 = arith.extui %16 : i1 to i32
    %18 = arith.sitofp %17 : i32 to f32
    %c0_7 = arith.constant 0 : index
    %c0_8 = arith.constant 0 : index
    %c0_9 = arith.constant 0 : index
    %c0_10 = arith.constant 0 : index
    %19 = vector.load %arg3[%c0_7, %c0_8, %c0_9, %c0_10] : memref<1x1x16x8xbf16, #tpu.memory_space<vmem>>, vector<1x1x16x8xbf16>
    %20 = vector.shape_cast %19 : vector<1x1x16x8xbf16> to vector<1x16x8xbf16>
    %21 = arith.extf %20 : vector<1x16x8xbf16> to vector<1x16x8xf32>
    %22 = vector.shape_cast %0 : vector<1x8xf32> to vector<1x1x8xf32>
    %23 = vector.broadcast %22 : vector<1x1x8xf32> to vector<1x16x8xf32>
    %24 = arith.mulf %21, %23 : vector<1x16x8xf32>
    %25 = vector.shape_cast %1 : vector<1x8xf32> to vector<1x1x8xf32>
    %26 = vector.broadcast %25 : vector<1x1x8xf32> to vector<1x16x8xf32>
    %27 = arith.addf %24, %26 : vector<1x16x8xf32>
    %cst_11 = arith.constant 0.000000e+00 : f32
    %28 = vector.broadcast %cst_11 : f32 to vector<1x16x8xf32>
    %29 = arith.maximumf %27, %28 : vector<1x16x8xf32>
    %30 = vector.broadcast %15 : f32 to vector<1x16x8xf32>
    %31 = arith.mulf %29, %30 : vector<1x16x8xf32>
    %c0_12 = arith.constant 0 : index
    %c0_13 = arith.constant 0 : index
    %c0_14 = arith.constant 0 : index
    %c0_15 = arith.constant 0 : index
    %32 = vector.load %arg4[%c0_12, %c0_13, %c0_14, %c0_15] : memref<1x1x16x8xbf16, #tpu.memory_space<vmem>>, vector<1x1x16x8xbf16>
    %33 = vector.shape_cast %32 : vector<1x1x16x8xbf16> to vector<1x16x8xbf16>
    %34 = arith.extf %33 : vector<1x16x8xbf16> to vector<1x16x8xf32>
    %35 = vector.shape_cast %0 : vector<1x8xf32> to vector<1x1x8xf32>
    %36 = vector.broadcast %35 : vector<1x1x8xf32> to vector<1x16x8xf32>
    %37 = arith.mulf %34, %36 : vector<1x16x8xf32>
    %38 = vector.shape_cast %1 : vector<1x8xf32> to vector<1x1x8xf32>
    %39 = vector.broadcast %38 : vector<1x1x8xf32> to vector<1x16x8xf32>
    %40 = arith.addf %37, %39 : vector<1x16x8xf32>
    %cst_16 = arith.constant 0.000000e+00 : f32
    %41 = vector.broadcast %cst_16 : f32 to vector<1x16x8xf32>
    %42 = arith.maximumf %40, %41 : vector<1x16x8xf32>
    %43 = vector.broadcast %18 : f32 to vector<1x16x8xf32>
    %44 = arith.mulf %42, %43 : vector<1x16x8xf32>
    %45 = tpu.concatenate %31, %12, %44 in 0 : vector<1x16x8xf32>, vector<8x16x8xf32>, vector<1x16x8xf32> -> vector<10x16x8xf32>
    %cst_17 = arith.constant 0.000000e+00 : f32
    %46 = vector.broadcast %cst_17 : f32 to vector<10x1x8xf32>
    %47 = tpu.concatenate %46, %45, %46 in 1 : vector<10x1x8xf32>, vector<10x16x8xf32>, vector<10x1x8xf32> -> vector<10x18x8xf32>
    %cst_18 = arith.constant 0.000000e+00 : f32
    %48 = vector.broadcast %cst_18 : f32 to vector<128x8xf32>
    %49 = vector.extract_strided_slice %47 {offsets = [0, 0, 0], sizes = [8, 16, 8], strides = [1, 1, 1]} : vector<10x18x8xf32> to vector<8x16x8xf32>
    %50 = vector.shape_cast %49 : vector<8x16x8xf32> to vector<128x8xf32>
    %51 = arith.truncf %50 : vector<128x8xf32> to vector<128x8xbf16>
    %c0_19 = arith.constant 0 : index
    %c0_20 = arith.constant 0 : index
    %c0_21 = arith.constant 0 : index
    %c0_22 = arith.constant 0 : index
    %52 = vector.load %arg7[%c0_19, %c0_20, %c0_21, %c0_22] : memref<3x3x8x8xbf16, #tpu.memory_space<vmem>>, vector<1x1x8x8xbf16>
    %53 = vector.shape_cast %52 : vector<1x1x8x8xbf16> to vector<8x8xbf16>
    %cst_23 = arith.constant dense<0.000000e+00> : vector<128x8xf32>
    %54 = tpu.matmul %51, %53, %cst_23 {dimension_numbers = #tpu.dot_dimension_numbers<[1], [0], [0], [1], [0, 0, 1, 1], [], []>} : vector<128x8xbf16>, vector<8x8xbf16>, vector<128x8xf32> -> vector<128x8xf32>
    %55 = arith.addf %48, %54 : vector<128x8xf32>
    %56 = vector.extract_strided_slice %47 {offsets = [0, 1, 0], sizes = [8, 16, 8], strides = [1, 1, 1]} : vector<10x18x8xf32> to vector<8x16x8xf32>
    %57 = vector.shape_cast %56 : vector<8x16x8xf32> to vector<128x8xf32>
    %58 = arith.truncf %57 : vector<128x8xf32> to vector<128x8xbf16>
    %c0_24 = arith.constant 0 : index
    %c1 = arith.constant 1 : index
    %c0_25 = arith.constant 0 : index
    %c0_26 = arith.constant 0 : index
    %59 = vector.load %arg7[%c0_24, %c1, %c0_25, %c0_26] : memref<3x3x8x8xbf16, #tpu.memory_space<vmem>>, vector<1x1x8x8xbf16>
    %60 = vector.shape_cast %59 : vector<1x1x8x8xbf16> to vector<8x8xbf16>
    %cst_27 = arith.constant dense<0.000000e+00> : vector<128x8xf32>
    %61 = tpu.matmul %58, %60, %cst_27 {dimension_numbers = #tpu.dot_dimension_numbers<[1], [0], [0], [1], [0, 0, 1, 1], [], []>} : vector<128x8xbf16>, vector<8x8xbf16>, vector<128x8xf32> -> vector<128x8xf32>
    %62 = arith.addf %55, %61 : vector<128x8xf32>
    %63 = vector.extract_strided_slice %47 {offsets = [0, 2, 0], sizes = [8, 16, 8], strides = [1, 1, 1]} : vector<10x18x8xf32> to vector<8x16x8xf32>
    %64 = vector.shape_cast %63 : vector<8x16x8xf32> to vector<128x8xf32>
    %65 = arith.truncf %64 : vector<128x8xf32> to vector<128x8xbf16>
    %c0_28 = arith.constant 0 : index
    %c2 = arith.constant 2 : index
    %c0_29 = arith.constant 0 : index
    %c0_30 = arith.constant 0 : index
    %66 = vector.load %arg7[%c0_28, %c2, %c0_29, %c0_30] : memref<3x3x8x8xbf16, #tpu.memory_space<vmem>>, vector<1x1x8x8xbf16>
    %67 = vector.shape_cast %66 : vector<1x1x8x8xbf16> to vector<8x8xbf16>
    %cst_31 = arith.constant dense<0.000000e+00> : vector<128x8xf32>
    %68 = tpu.matmul %65, %67, %cst_31 {dimension_numbers = #tpu.dot_dimension_numbers<[1], [0], [0], [1], [0, 0, 1, 1], [], []>} : vector<128x8xbf16>, vector<8x8xbf16>, vector<128x8xf32> -> vector<128x8xf32>
    %69 = arith.addf %62, %68 : vector<128x8xf32>
    %70 = vector.extract_strided_slice %47 {offsets = [1, 0, 0], sizes = [8, 16, 8], strides = [1, 1, 1]} : vector<10x18x8xf32> to vector<8x16x8xf32>
    %71 = vector.shape_cast %70 : vector<8x16x8xf32> to vector<128x8xf32>
    %72 = arith.truncf %71 : vector<128x8xf32> to vector<128x8xbf16>
    %c1_32 = arith.constant 1 : index
    %c0_33 = arith.constant 0 : index
    %c0_34 = arith.constant 0 : index
    %c0_35 = arith.constant 0 : index
    %73 = vector.load %arg7[%c1_32, %c0_33, %c0_34, %c0_35] : memref<3x3x8x8xbf16, #tpu.memory_space<vmem>>, vector<1x1x8x8xbf16>
    %74 = vector.shape_cast %73 : vector<1x1x8x8xbf16> to vector<8x8xbf16>
    %cst_36 = arith.constant dense<0.000000e+00> : vector<128x8xf32>
    %75 = tpu.matmul %72, %74, %cst_36 {dimension_numbers = #tpu.dot_dimension_numbers<[1], [0], [0], [1], [0, 0, 1, 1], [], []>} : vector<128x8xbf16>, vector<8x8xbf16>, vector<128x8xf32> -> vector<128x8xf32>
    %76 = arith.addf %69, %75 : vector<128x8xf32>
    %77 = vector.extract_strided_slice %47 {offsets = [1, 1, 0], sizes = [8, 16, 8], strides = [1, 1, 1]} : vector<10x18x8xf32> to vector<8x16x8xf32>
    %78 = vector.shape_cast %77 : vector<8x16x8xf32> to vector<128x8xf32>
    %79 = arith.truncf %78 : vector<128x8xf32> to vector<128x8xbf16>
    %c1_37 = arith.constant 1 : index
    %c1_38 = arith.constant 1 : index
    %c0_39 = arith.constant 0 : index
    %c0_40 = arith.constant 0 : index
    %80 = vector.load %arg7[%c1_37, %c1_38, %c0_39, %c0_40] : memref<3x3x8x8xbf16, #tpu.memory_space<vmem>>, vector<1x1x8x8xbf16>
    %81 = vector.shape_cast %80 : vector<1x1x8x8xbf16> to vector<8x8xbf16>
    %cst_41 = arith.constant dense<0.000000e+00> : vector<128x8xf32>
    %82 = tpu.matmul %79, %81, %cst_41 {dimension_numbers = #tpu.dot_dimension_numbers<[1], [0], [0], [1], [0, 0, 1, 1], [], []>} : vector<128x8xbf16>, vector<8x8xbf16>, vector<128x8xf32> -> vector<128x8xf32>
    %83 = arith.addf %76, %82 : vector<128x8xf32>
    %84 = vector.extract_strided_slice %47 {offsets = [1, 2, 0], sizes = [8, 16, 8], strides = [1, 1, 1]} : vector<10x18x8xf32> to vector<8x16x8xf32>
    %85 = vector.shape_cast %84 : vector<8x16x8xf32> to vector<128x8xf32>
    %86 = arith.truncf %85 : vector<128x8xf32> to vector<128x8xbf16>
    %c1_42 = arith.constant 1 : index
    %c2_43 = arith.constant 2 : index
    %c0_44 = arith.constant 0 : index
    %c0_45 = arith.constant 0 : index
    %87 = vector.load %arg7[%c1_42, %c2_43, %c0_44, %c0_45] : memref<3x3x8x8xbf16, #tpu.memory_space<vmem>>, vector<1x1x8x8xbf16>
    %88 = vector.shape_cast %87 : vector<1x1x8x8xbf16> to vector<8x8xbf16>
    %cst_46 = arith.constant dense<0.000000e+00> : vector<128x8xf32>
    %89 = tpu.matmul %86, %88, %cst_46 {dimension_numbers = #tpu.dot_dimension_numbers<[1], [0], [0], [1], [0, 0, 1, 1], [], []>} : vector<128x8xbf16>, vector<8x8xbf16>, vector<128x8xf32> -> vector<128x8xf32>
    %90 = arith.addf %83, %89 : vector<128x8xf32>
    %91 = vector.extract_strided_slice %47 {offsets = [2, 0, 0], sizes = [8, 16, 8], strides = [1, 1, 1]} : vector<10x18x8xf32> to vector<8x16x8xf32>
    %92 = vector.shape_cast %91 : vector<8x16x8xf32> to vector<128x8xf32>
    %93 = arith.truncf %92 : vector<128x8xf32> to vector<128x8xbf16>
    %c2_47 = arith.constant 2 : index
    %c0_48 = arith.constant 0 : index
    %c0_49 = arith.constant 0 : index
    %c0_50 = arith.constant 0 : index
    %94 = vector.load %arg7[%c2_47, %c0_48, %c0_49, %c0_50] : memref<3x3x8x8xbf16, #tpu.memory_space<vmem>>, vector<1x1x8x8xbf16>
    %95 = vector.shape_cast %94 : vector<1x1x8x8xbf16> to vector<8x8xbf16>
    %cst_51 = arith.constant dense<0.000000e+00> : vector<128x8xf32>
    %96 = tpu.matmul %93, %95, %cst_51 {dimension_numbers = #tpu.dot_dimension_numbers<[1], [0], [0], [1], [0, 0, 1, 1], [], []>} : vector<128x8xbf16>, vector<8x8xbf16>, vector<128x8xf32> -> vector<128x8xf32>
    %97 = arith.addf %90, %96 : vector<128x8xf32>
    %98 = vector.extract_strided_slice %47 {offsets = [2, 1, 0], sizes = [8, 16, 8], strides = [1, 1, 1]} : vector<10x18x8xf32> to vector<8x16x8xf32>
    %99 = vector.shape_cast %98 : vector<8x16x8xf32> to vector<128x8xf32>
    %100 = arith.truncf %99 : vector<128x8xf32> to vector<128x8xbf16>
    %c2_52 = arith.constant 2 : index
    %c1_53 = arith.constant 1 : index
    %c0_54 = arith.constant 0 : index
    %c0_55 = arith.constant 0 : index
    %101 = vector.load %arg7[%c2_52, %c1_53, %c0_54, %c0_55] : memref<3x3x8x8xbf16, #tpu.memory_space<vmem>>, vector<1x1x8x8xbf16>
    %102 = vector.shape_cast %101 : vector<1x1x8x8xbf16> to vector<8x8xbf16>
    %cst_56 = arith.constant dense<0.000000e+00> : vector<128x8xf32>
    %103 = tpu.matmul %100, %102, %cst_56 {dimension_numbers = #tpu.dot_dimension_numbers<[1], [0], [0], [1], [0, 0, 1, 1], [], []>} : vector<128x8xbf16>, vector<8x8xbf16>, vector<128x8xf32> -> vector<128x8xf32>
    %104 = arith.addf %97, %103 : vector<128x8xf32>
    %105 = vector.extract_strided_slice %47 {offsets = [2, 2, 0], sizes = [8, 16, 8], strides = [1, 1, 1]} : vector<10x18x8xf32> to vector<8x16x8xf32>
    %106 = vector.shape_cast %105 : vector<8x16x8xf32> to vector<128x8xf32>
    %107 = arith.truncf %106 : vector<128x8xf32> to vector<128x8xbf16>
    %c2_57 = arith.constant 2 : index
    %c2_58 = arith.constant 2 : index
    %c0_59 = arith.constant 0 : index
    %c0_60 = arith.constant 0 : index
    %108 = vector.load %arg7[%c2_57, %c2_58, %c0_59, %c0_60] : memref<3x3x8x8xbf16, #tpu.memory_space<vmem>>, vector<1x1x8x8xbf16>
    %109 = vector.shape_cast %108 : vector<1x1x8x8xbf16> to vector<8x8xbf16>
    %cst_61 = arith.constant dense<0.000000e+00> : vector<128x8xf32>
    %110 = tpu.matmul %107, %109, %cst_61 {dimension_numbers = #tpu.dot_dimension_numbers<[1], [0], [0], [1], [0, 0, 1, 1], [], []>} : vector<128x8xbf16>, vector<8x8xbf16>, vector<128x8xf32> -> vector<128x8xf32>
    %111 = arith.addf %104, %110 : vector<128x8xf32>
    %c0_62 = arith.constant 0 : index
    %c0_63 = arith.constant 0 : index
    %112 = vector.load %arg8[%c0_62, %c0_63] : memref<1x8xf32, #tpu.memory_space<vmem>>, vector<1x8xf32>
    %113 = vector.broadcast %112 : vector<1x8xf32> to vector<128x8xf32>
    %114 = arith.addf %111, %113 : vector<128x8xf32>
    %115 = vector.shape_cast %114 : vector<128x8xf32> to vector<8x16x8xf32>
    %c0_64 = arith.constant 0 : index
    %c0_65 = arith.constant 0 : index
    %c0_66 = arith.constant 0 : index
    %c0_67 = arith.constant 0 : index
    %116 = vector.load %arg9[%c0_64, %c0_65, %c0_66, %c0_67] : memref<1x8x16x8xf32, #tpu.memory_space<vmem>>, vector<1x8x16x8xf32>
    %117 = vector.shape_cast %116 : vector<1x8x16x8xf32> to vector<8x16x8xf32>
    %118 = vector.shape_cast %115 : vector<8x16x8xf32> to vector<1x8x16x8xf32>
    tpu.vector_store %arg9[%c0_64, %c0_65, %c0_66, %c0_67], %118 {strides = array<i32>} : memref<1x8x16x8xf32, #tpu.memory_space<vmem>>, vector<1x8x16x8xf32>,
    %cst_68 = arith.constant dense<0.000000e+00> : vector<8xf32>
    %119 = vector.multi_reduction <add>, %114, %cst_68 [0] : vector<128x8xf32> to vector<8xf32>
    %120 = vector.shape_cast %119 : vector<8xf32> to vector<1x8xf32>
    %cst_69 = arith.constant 7.812500e-03 : f32
    %121 = vector.broadcast %cst_69 : f32 to vector<1x8xf32>
    %122 = arith.mulf %120, %121 : vector<1x8xf32>
    %123 = vector.broadcast %122 : vector<1x8xf32> to vector<128x8xf32>
    %124 = arith.subf %114, %123 : vector<128x8xf32>
    %125 = arith.mulf %124, %124 : vector<128x8xf32>
    %cst_70 = arith.constant dense<0.000000e+00> : vector<8xf32>
    %126 = vector.multi_reduction <add>, %125, %cst_70 [0] : vector<128x8xf32> to vector<8xf32>
    %127 = vector.shape_cast %126 : vector<8xf32> to vector<1x8xf32>
    %128 = vector.shape_cast %120 : vector<1x8xf32> to vector<1x1x8xf32>
    %c0_71 = arith.constant 0 : index
    %c0_72 = arith.constant 0 : index
    %c0_73 = arith.constant 0 : index
    %129 = vector.load %arg10[%c0_71, %c0_72, %c0_73] : memref<1x1x8xf32, #tpu.memory_space<vmem>>, vector<1x1x8xf32>
    tpu.vector_store %arg10[%c0_71, %c0_72, %c0_73], %128 {strides = array<i32>} : memref<1x1x8xf32, #tpu.memory_space<vmem>>, vector<1x1x8xf32>,
    %130 = vector.shape_cast %127 : vector<1x8xf32> to vector<1x1x8xf32>
    %c0_74 = arith.constant 0 : index
    %c0_75 = arith.constant 0 : index
    %c0_76 = arith.constant 0 : index
    %131 = vector.load %arg11[%c0_74, %c0_75, %c0_76] : memref<1x1x8xf32, #tpu.memory_space<vmem>>, vector<1x1x8xf32>
    tpu.vector_store %arg11[%c0_74, %c0_75, %c0_76], %130 {strides = array<i32>} : memref<1x1x8xf32, #tpu.memory_space<vmem>>, vector<1x1x8xf32>,
    return
  }
  func.func @transform_0(%arg0: i32, %arg1: i32) -> (i32, i32, i32, i32) {
    %c0_i32 = arith.constant 0 : i32
    %c0_i32_0 = arith.constant 0 : i32
    %c0_i32_1 = arith.constant 0 : i32
    return %arg0, %arg1, %c0_i32, %c0_i32_0 : i32, i32, i32, i32
  }
  func.func @transform_1(%arg0: i32, %arg1: i32) -> (i32, i32, i32, i32) {
    %c0_i32 = arith.constant 0 : i32
    %c0_i32_0 = arith.constant 0 : i32
    %c0_i32_1 = arith.constant 0 : i32
    return %arg0, %arg1, %c0_i32, %c0_i32_0 : i32, i32, i32, i32
  }
  func.func @transform_2(%arg0: i32, %arg1: i32) -> (i32, i32, i32, i32) {
    %c0_i32 = arith.constant 0 : i32
    %c0_i32_0 = arith.constant 0 : i32
    %c0_i32_1 = arith.constant 0 : i32
    return %arg0, %arg1, %c0_i32, %c0_i32_0 : i32, i32, i32, i32
  }
  func.func @transform_3(%arg0: i32, %arg1: i32) -> (i32, i32) {
    %c0_i32 = arith.constant 0 : i32
    %c0_i32_0 = arith.constant 0 : i32
    %c0_i32_1 = arith.constant 0 : i32
    return %c0_i32, %c0_i32_0 : i32, i32
  }
  func.func @transform_4(%arg0: i32, %arg1: i32) -> (i32, i32) {
    %c0_i32 = arith.constant 0 : i32
    %c0_i32_0 = arith.constant 0 : i32
    %c0_i32_1 = arith.constant 0 : i32
    return %c0_i32, %c0_i32_0 : i32, i32
  }
  func.func @transform_5(%arg0: i32, %arg1: i32) -> (i32, i32, i32, i32) {
    %c0_i32 = arith.constant 0 : i32
    %c0_i32_0 = arith.constant 0 : i32
    %c0_i32_1 = arith.constant 0 : i32
    %c0_i32_2 = arith.constant 0 : i32
    %c0_i32_3 = arith.constant 0 : i32
    return %c0_i32, %c0_i32_0, %c0_i32_1, %c0_i32_2 : i32, i32, i32, i32
  }
  func.func @transform_6(%arg0: i32, %arg1: i32) -> (i32, i32) {
    %c0_i32 = arith.constant 0 : i32
    %c0_i32_0 = arith.constant 0 : i32
    %c0_i32_1 = arith.constant 0 : i32
    return %c0_i32, %c0_i32_0 : i32, i32
  }
  func.func @transform_7(%arg0: i32, %arg1: i32) -> (i32, i32, i32, i32) {
    %c0_i32 = arith.constant 0 : i32
    %c0_i32_0 = arith.constant 0 : i32
    %c0_i32_1 = arith.constant 0 : i32
    return %arg0, %arg1, %c0_i32, %c0_i32_0 : i32, i32, i32, i32
  }
  func.func @transform_8(%arg0: i32, %arg1: i32) -> (i32, i32, i32) {
    %c2_i32 = arith.constant 2 : i32
    %0 = arith.muli %arg0, %c2_i32 : i32
    %1 = arith.addi %0, %arg1 : i32
    %c0_i32 = arith.constant 0 : i32
    %c0_i32_0 = arith.constant 0 : i32
    %c0_i32_1 = arith.constant 0 : i32
    return %1, %c0_i32, %c0_i32_0 : i32, i32, i32
  }
  func.func @transform_9(%arg0: i32, %arg1: i32) -> (i32, i32, i32) {
    %c2_i32 = arith.constant 2 : i32
    %0 = arith.muli %arg0, %c2_i32 : i32
    %1 = arith.addi %0, %arg1 : i32
    %c0_i32 = arith.constant 0 : i32
    %c0_i32_0 = arith.constant 0 : i32
    %c0_i32_1 = arith.constant 0 : i32
    return %1, %c0_i32, %c0_i32_0 : i32, i32, i32
  }
}

module attributes {stable_mosaic.version = 11 : i64} {
  func.func @_bn_relu_conv3x3_kernel(%arg0: i32, %arg1: i32, %arg2: memref<1x8x16x4xf32, #tpu.memory_space<vmem>>, %arg3: memref<1x1x16x4xf32, #tpu.memory_space<vmem>>, %arg4: memref<1x1x16x4xf32, #tpu.memory_space<vmem>>, %arg5: memref<1x4xf32, #tpu.memory_space<vmem>>, %arg6: memref<1x4xf32, #tpu.memory_space<vmem>>, %arg7: memref<3x3x4x8xbf16, #tpu.memory_space<vmem>>, %arg8: memref<1x8xf32, #tpu.memory_space<vmem>>, %arg9: memref<1x8x16x8xbf16, #tpu.memory_space<vmem>>, %arg10: memref<1x1x8xf32, #tpu.memory_space<vmem>>, %arg11: memref<1x1x8xf32, #tpu.memory_space<vmem>>) attributes {dimension_semantics = [#tpu.dimension_semantics<parallel>, #tpu.dimension_semantics<parallel>], iteration_bounds = array<i64: 2, 2>, scalar_prefetch = 0 : i64, scratch_operands = 0 : i64, tpu.core_type = #tpu.core_type<tc>, window_params = [{transform_indices = @transform_0, window_bounds = array<i64: 1, 8, 16, 4>}, {transform_indices = @transform_1, window_bounds = array<i64: 1, 1, 16, 4>}, {transform_indices = @transform_2, window_bounds = array<i64: 1, 1, 16, 4>}, {pipeline_mode = #tpu.pipeline_mode<synchronous>, transform_indices = @transform_3, window_bounds = array<i64: 1, 4>}, {pipeline_mode = #tpu.pipeline_mode<synchronous>, transform_indices = @transform_4, window_bounds = array<i64: 1, 4>}, {pipeline_mode = #tpu.pipeline_mode<synchronous>, transform_indices = @transform_5, window_bounds = array<i64: 3, 3, 4, 8>}, {pipeline_mode = #tpu.pipeline_mode<synchronous>, transform_indices = @transform_6, window_bounds = array<i64: 1, 8>}, {transform_indices = @transform_7, window_bounds = array<i64: 1, 8, 16, 8>}, {transform_indices = @transform_8, window_bounds = array<i64: 1, 1, 8>}, {transform_indices = @transform_9, window_bounds = array<i64: 1, 1, 8>}]} {
    %c0 = arith.constant 0 : index
    %c0_0 = arith.constant 0 : index
    %0 = vector.load %arg5[%c0, %c0_0] : memref<1x4xf32, #tpu.memory_space<vmem>>, vector<1x4xf32>
    %c0_1 = arith.constant 0 : index
    %c0_2 = arith.constant 0 : index
    %1 = vector.load %arg6[%c0_1, %c0_2] : memref<1x4xf32, #tpu.memory_space<vmem>>, vector<1x4xf32>
    %c0_3 = arith.constant 0 : index
    %c0_4 = arith.constant 0 : index
    %c0_5 = arith.constant 0 : index
    %c0_6 = arith.constant 0 : index
    %2 = vector.load %arg2[%c0_3, %c0_4, %c0_5, %c0_6] : memref<1x8x16x4xf32, #tpu.memory_space<vmem>>, vector<1x8x16x4xf32>
    %3 = vector.shape_cast %2 : vector<1x8x16x4xf32> to vector<8x16x4xf32>
    %4 = vector.shape_cast %0 : vector<1x4xf32> to vector<1x1x4xf32>
    %5 = vector.broadcast %4 : vector<1x1x4xf32> to vector<8x16x4xf32>
    %6 = arith.mulf %3, %5 : vector<8x16x4xf32>
    %7 = vector.shape_cast %1 : vector<1x4xf32> to vector<1x1x4xf32>
    %8 = vector.broadcast %7 : vector<1x1x4xf32> to vector<8x16x4xf32>
    %9 = arith.addf %6, %8 : vector<8x16x4xf32>
    %cst = arith.constant 0.000000e+00 : f32
    %10 = vector.broadcast %cst : f32 to vector<8x16x4xf32>
    %11 = arith.maximumf %9, %10 : vector<8x16x4xf32>
    %c0_i32 = arith.constant 0 : i32
    %12 = arith.cmpi sgt, %arg1, %c0_i32 : i32
    %13 = arith.extui %12 : i1 to i32
    %14 = arith.sitofp %13 : i32 to f32
    %c1_i32 = arith.constant 1 : i32
    %15 = arith.cmpi slt, %arg1, %c1_i32 : i32
    %16 = arith.extui %15 : i1 to i32
    %17 = arith.sitofp %16 : i32 to f32
    %c0_7 = arith.constant 0 : index
    %c0_8 = arith.constant 0 : index
    %c0_9 = arith.constant 0 : index
    %c0_10 = arith.constant 0 : index
    %18 = vector.load %arg3[%c0_7, %c0_8, %c0_9, %c0_10] : memref<1x1x16x4xf32, #tpu.memory_space<vmem>>, vector<1x1x16x4xf32>
    %19 = vector.shape_cast %18 : vector<1x1x16x4xf32> to vector<1x16x4xf32>
    %20 = vector.shape_cast %0 : vector<1x4xf32> to vector<1x1x4xf32>
    %21 = vector.broadcast %20 : vector<1x1x4xf32> to vector<1x16x4xf32>
    %22 = arith.mulf %19, %21 : vector<1x16x4xf32>
    %23 = vector.shape_cast %1 : vector<1x4xf32> to vector<1x1x4xf32>
    %24 = vector.broadcast %23 : vector<1x1x4xf32> to vector<1x16x4xf32>
    %25 = arith.addf %22, %24 : vector<1x16x4xf32>
    %cst_11 = arith.constant 0.000000e+00 : f32
    %26 = vector.broadcast %cst_11 : f32 to vector<1x16x4xf32>
    %27 = arith.maximumf %25, %26 : vector<1x16x4xf32>
    %28 = vector.broadcast %14 : f32 to vector<1x16x4xf32>
    %29 = arith.mulf %27, %28 : vector<1x16x4xf32>
    %c0_12 = arith.constant 0 : index
    %c0_13 = arith.constant 0 : index
    %c0_14 = arith.constant 0 : index
    %c0_15 = arith.constant 0 : index
    %30 = vector.load %arg4[%c0_12, %c0_13, %c0_14, %c0_15] : memref<1x1x16x4xf32, #tpu.memory_space<vmem>>, vector<1x1x16x4xf32>
    %31 = vector.shape_cast %30 : vector<1x1x16x4xf32> to vector<1x16x4xf32>
    %32 = vector.shape_cast %0 : vector<1x4xf32> to vector<1x1x4xf32>
    %33 = vector.broadcast %32 : vector<1x1x4xf32> to vector<1x16x4xf32>
    %34 = arith.mulf %31, %33 : vector<1x16x4xf32>
    %35 = vector.shape_cast %1 : vector<1x4xf32> to vector<1x1x4xf32>
    %36 = vector.broadcast %35 : vector<1x1x4xf32> to vector<1x16x4xf32>
    %37 = arith.addf %34, %36 : vector<1x16x4xf32>
    %cst_16 = arith.constant 0.000000e+00 : f32
    %38 = vector.broadcast %cst_16 : f32 to vector<1x16x4xf32>
    %39 = arith.maximumf %37, %38 : vector<1x16x4xf32>
    %40 = vector.broadcast %17 : f32 to vector<1x16x4xf32>
    %41 = arith.mulf %39, %40 : vector<1x16x4xf32>
    %42 = tpu.concatenate %29, %11, %41 in 0 : vector<1x16x4xf32>, vector<8x16x4xf32>, vector<1x16x4xf32> -> vector<10x16x4xf32>
    %cst_17 = arith.constant 0.000000e+00 : f32
    %43 = vector.broadcast %cst_17 : f32 to vector<10x1x4xf32>
    %44 = tpu.concatenate %43, %42, %43 in 1 : vector<10x1x4xf32>, vector<10x16x4xf32>, vector<10x1x4xf32> -> vector<10x18x4xf32>
    %cst_18 = arith.constant 0.000000e+00 : f32
    %45 = vector.broadcast %cst_18 : f32 to vector<128x8xf32>
    %46 = vector.extract_strided_slice %44 {offsets = [0, 0, 0], sizes = [8, 16, 4], strides = [1, 1, 1]} : vector<10x18x4xf32> to vector<8x16x4xf32>
    %47 = vector.shape_cast %46 : vector<8x16x4xf32> to vector<128x4xf32>
    %48 = arith.truncf %47 : vector<128x4xf32> to vector<128x4xbf16>
    %c0_19 = arith.constant 0 : index
    %c0_20 = arith.constant 0 : index
    %c0_21 = arith.constant 0 : index
    %c0_22 = arith.constant 0 : index
    %49 = vector.load %arg7[%c0_19, %c0_20, %c0_21, %c0_22] : memref<3x3x4x8xbf16, #tpu.memory_space<vmem>>, vector<1x1x4x8xbf16>
    %50 = vector.shape_cast %49 : vector<1x1x4x8xbf16> to vector<4x8xbf16>
    %cst_23 = arith.constant dense<0.000000e+00> : vector<128x8xf32>
    %51 = tpu.matmul %48, %50, %cst_23 {dimension_numbers = #tpu.dot_dimension_numbers<[1], [0], [0], [1], [0, 0, 1, 1], [], []>} : vector<128x4xbf16>, vector<4x8xbf16>, vector<128x8xf32> -> vector<128x8xf32>
    %52 = arith.addf %45, %51 : vector<128x8xf32>
    %53 = vector.extract_strided_slice %44 {offsets = [0, 1, 0], sizes = [8, 16, 4], strides = [1, 1, 1]} : vector<10x18x4xf32> to vector<8x16x4xf32>
    %54 = vector.shape_cast %53 : vector<8x16x4xf32> to vector<128x4xf32>
    %55 = arith.truncf %54 : vector<128x4xf32> to vector<128x4xbf16>
    %c0_24 = arith.constant 0 : index
    %c1 = arith.constant 1 : index
    %c0_25 = arith.constant 0 : index
    %c0_26 = arith.constant 0 : index
    %56 = vector.load %arg7[%c0_24, %c1, %c0_25, %c0_26] : memref<3x3x4x8xbf16, #tpu.memory_space<vmem>>, vector<1x1x4x8xbf16>
    %57 = vector.shape_cast %56 : vector<1x1x4x8xbf16> to vector<4x8xbf16>
    %cst_27 = arith.constant dense<0.000000e+00> : vector<128x8xf32>
    %58 = tpu.matmul %55, %57, %cst_27 {dimension_numbers = #tpu.dot_dimension_numbers<[1], [0], [0], [1], [0, 0, 1, 1], [], []>} : vector<128x4xbf16>, vector<4x8xbf16>, vector<128x8xf32> -> vector<128x8xf32>
    %59 = arith.addf %52, %58 : vector<128x8xf32>
    %60 = vector.extract_strided_slice %44 {offsets = [0, 2, 0], sizes = [8, 16, 4], strides = [1, 1, 1]} : vector<10x18x4xf32> to vector<8x16x4xf32>
    %61 = vector.shape_cast %60 : vector<8x16x4xf32> to vector<128x4xf32>
    %62 = arith.truncf %61 : vector<128x4xf32> to vector<128x4xbf16>
    %c0_28 = arith.constant 0 : index
    %c2 = arith.constant 2 : index
    %c0_29 = arith.constant 0 : index
    %c0_30 = arith.constant 0 : index
    %63 = vector.load %arg7[%c0_28, %c2, %c0_29, %c0_30] : memref<3x3x4x8xbf16, #tpu.memory_space<vmem>>, vector<1x1x4x8xbf16>
    %64 = vector.shape_cast %63 : vector<1x1x4x8xbf16> to vector<4x8xbf16>
    %cst_31 = arith.constant dense<0.000000e+00> : vector<128x8xf32>
    %65 = tpu.matmul %62, %64, %cst_31 {dimension_numbers = #tpu.dot_dimension_numbers<[1], [0], [0], [1], [0, 0, 1, 1], [], []>} : vector<128x4xbf16>, vector<4x8xbf16>, vector<128x8xf32> -> vector<128x8xf32>
    %66 = arith.addf %59, %65 : vector<128x8xf32>
    %67 = vector.extract_strided_slice %44 {offsets = [1, 0, 0], sizes = [8, 16, 4], strides = [1, 1, 1]} : vector<10x18x4xf32> to vector<8x16x4xf32>
    %68 = vector.shape_cast %67 : vector<8x16x4xf32> to vector<128x4xf32>
    %69 = arith.truncf %68 : vector<128x4xf32> to vector<128x4xbf16>
    %c1_32 = arith.constant 1 : index
    %c0_33 = arith.constant 0 : index
    %c0_34 = arith.constant 0 : index
    %c0_35 = arith.constant 0 : index
    %70 = vector.load %arg7[%c1_32, %c0_33, %c0_34, %c0_35] : memref<3x3x4x8xbf16, #tpu.memory_space<vmem>>, vector<1x1x4x8xbf16>
    %71 = vector.shape_cast %70 : vector<1x1x4x8xbf16> to vector<4x8xbf16>
    %cst_36 = arith.constant dense<0.000000e+00> : vector<128x8xf32>
    %72 = tpu.matmul %69, %71, %cst_36 {dimension_numbers = #tpu.dot_dimension_numbers<[1], [0], [0], [1], [0, 0, 1, 1], [], []>} : vector<128x4xbf16>, vector<4x8xbf16>, vector<128x8xf32> -> vector<128x8xf32>
    %73 = arith.addf %66, %72 : vector<128x8xf32>
    %74 = vector.extract_strided_slice %44 {offsets = [1, 1, 0], sizes = [8, 16, 4], strides = [1, 1, 1]} : vector<10x18x4xf32> to vector<8x16x4xf32>
    %75 = vector.shape_cast %74 : vector<8x16x4xf32> to vector<128x4xf32>
    %76 = arith.truncf %75 : vector<128x4xf32> to vector<128x4xbf16>
    %c1_37 = arith.constant 1 : index
    %c1_38 = arith.constant 1 : index
    %c0_39 = arith.constant 0 : index
    %c0_40 = arith.constant 0 : index
    %77 = vector.load %arg7[%c1_37, %c1_38, %c0_39, %c0_40] : memref<3x3x4x8xbf16, #tpu.memory_space<vmem>>, vector<1x1x4x8xbf16>
    %78 = vector.shape_cast %77 : vector<1x1x4x8xbf16> to vector<4x8xbf16>
    %cst_41 = arith.constant dense<0.000000e+00> : vector<128x8xf32>
    %79 = tpu.matmul %76, %78, %cst_41 {dimension_numbers = #tpu.dot_dimension_numbers<[1], [0], [0], [1], [0, 0, 1, 1], [], []>} : vector<128x4xbf16>, vector<4x8xbf16>, vector<128x8xf32> -> vector<128x8xf32>
    %80 = arith.addf %73, %79 : vector<128x8xf32>
    %81 = vector.extract_strided_slice %44 {offsets = [1, 2, 0], sizes = [8, 16, 4], strides = [1, 1, 1]} : vector<10x18x4xf32> to vector<8x16x4xf32>
    %82 = vector.shape_cast %81 : vector<8x16x4xf32> to vector<128x4xf32>
    %83 = arith.truncf %82 : vector<128x4xf32> to vector<128x4xbf16>
    %c1_42 = arith.constant 1 : index
    %c2_43 = arith.constant 2 : index
    %c0_44 = arith.constant 0 : index
    %c0_45 = arith.constant 0 : index
    %84 = vector.load %arg7[%c1_42, %c2_43, %c0_44, %c0_45] : memref<3x3x4x8xbf16, #tpu.memory_space<vmem>>, vector<1x1x4x8xbf16>
    %85 = vector.shape_cast %84 : vector<1x1x4x8xbf16> to vector<4x8xbf16>
    %cst_46 = arith.constant dense<0.000000e+00> : vector<128x8xf32>
    %86 = tpu.matmul %83, %85, %cst_46 {dimension_numbers = #tpu.dot_dimension_numbers<[1], [0], [0], [1], [0, 0, 1, 1], [], []>} : vector<128x4xbf16>, vector<4x8xbf16>, vector<128x8xf32> -> vector<128x8xf32>
    %87 = arith.addf %80, %86 : vector<128x8xf32>
    %88 = vector.extract_strided_slice %44 {offsets = [2, 0, 0], sizes = [8, 16, 4], strides = [1, 1, 1]} : vector<10x18x4xf32> to vector<8x16x4xf32>
    %89 = vector.shape_cast %88 : vector<8x16x4xf32> to vector<128x4xf32>
    %90 = arith.truncf %89 : vector<128x4xf32> to vector<128x4xbf16>
    %c2_47 = arith.constant 2 : index
    %c0_48 = arith.constant 0 : index
    %c0_49 = arith.constant 0 : index
    %c0_50 = arith.constant 0 : index
    %91 = vector.load %arg7[%c2_47, %c0_48, %c0_49, %c0_50] : memref<3x3x4x8xbf16, #tpu.memory_space<vmem>>, vector<1x1x4x8xbf16>
    %92 = vector.shape_cast %91 : vector<1x1x4x8xbf16> to vector<4x8xbf16>
    %cst_51 = arith.constant dense<0.000000e+00> : vector<128x8xf32>
    %93 = tpu.matmul %90, %92, %cst_51 {dimension_numbers = #tpu.dot_dimension_numbers<[1], [0], [0], [1], [0, 0, 1, 1], [], []>} : vector<128x4xbf16>, vector<4x8xbf16>, vector<128x8xf32> -> vector<128x8xf32>
    %94 = arith.addf %87, %93 : vector<128x8xf32>
    %95 = vector.extract_strided_slice %44 {offsets = [2, 1, 0], sizes = [8, 16, 4], strides = [1, 1, 1]} : vector<10x18x4xf32> to vector<8x16x4xf32>
    %96 = vector.shape_cast %95 : vector<8x16x4xf32> to vector<128x4xf32>
    %97 = arith.truncf %96 : vector<128x4xf32> to vector<128x4xbf16>
    %c2_52 = arith.constant 2 : index
    %c1_53 = arith.constant 1 : index
    %c0_54 = arith.constant 0 : index
    %c0_55 = arith.constant 0 : index
    %98 = vector.load %arg7[%c2_52, %c1_53, %c0_54, %c0_55] : memref<3x3x4x8xbf16, #tpu.memory_space<vmem>>, vector<1x1x4x8xbf16>
    %99 = vector.shape_cast %98 : vector<1x1x4x8xbf16> to vector<4x8xbf16>
    %cst_56 = arith.constant dense<0.000000e+00> : vector<128x8xf32>
    %100 = tpu.matmul %97, %99, %cst_56 {dimension_numbers = #tpu.dot_dimension_numbers<[1], [0], [0], [1], [0, 0, 1, 1], [], []>} : vector<128x4xbf16>, vector<4x8xbf16>, vector<128x8xf32> -> vector<128x8xf32>
    %101 = arith.addf %94, %100 : vector<128x8xf32>
    %102 = vector.extract_strided_slice %44 {offsets = [2, 2, 0], sizes = [8, 16, 4], strides = [1, 1, 1]} : vector<10x18x4xf32> to vector<8x16x4xf32>
    %103 = vector.shape_cast %102 : vector<8x16x4xf32> to vector<128x4xf32>
    %104 = arith.truncf %103 : vector<128x4xf32> to vector<128x4xbf16>
    %c2_57 = arith.constant 2 : index
    %c2_58 = arith.constant 2 : index
    %c0_59 = arith.constant 0 : index
    %c0_60 = arith.constant 0 : index
    %105 = vector.load %arg7[%c2_57, %c2_58, %c0_59, %c0_60] : memref<3x3x4x8xbf16, #tpu.memory_space<vmem>>, vector<1x1x4x8xbf16>
    %106 = vector.shape_cast %105 : vector<1x1x4x8xbf16> to vector<4x8xbf16>
    %cst_61 = arith.constant dense<0.000000e+00> : vector<128x8xf32>
    %107 = tpu.matmul %104, %106, %cst_61 {dimension_numbers = #tpu.dot_dimension_numbers<[1], [0], [0], [1], [0, 0, 1, 1], [], []>} : vector<128x4xbf16>, vector<4x8xbf16>, vector<128x8xf32> -> vector<128x8xf32>
    %108 = arith.addf %101, %107 : vector<128x8xf32>
    %c0_62 = arith.constant 0 : index
    %c0_63 = arith.constant 0 : index
    %109 = vector.load %arg8[%c0_62, %c0_63] : memref<1x8xf32, #tpu.memory_space<vmem>>, vector<1x8xf32>
    %110 = vector.broadcast %109 : vector<1x8xf32> to vector<128x8xf32>
    %111 = arith.addf %108, %110 : vector<128x8xf32>
    %112 = vector.shape_cast %111 : vector<128x8xf32> to vector<8x16x8xf32>
    %113 = arith.truncf %112 : vector<8x16x8xf32> to vector<8x16x8xbf16>
    %c0_64 = arith.constant 0 : index
    %c0_65 = arith.constant 0 : index
    %c0_66 = arith.constant 0 : index
    %c0_67 = arith.constant 0 : index
    %114 = vector.load %arg9[%c0_64, %c0_65, %c0_66, %c0_67] : memref<1x8x16x8xbf16, #tpu.memory_space<vmem>>, vector<1x8x16x8xbf16>
    %115 = vector.shape_cast %114 : vector<1x8x16x8xbf16> to vector<8x16x8xbf16>
    %116 = vector.shape_cast %113 : vector<8x16x8xbf16> to vector<1x8x16x8xbf16>
    tpu.vector_store %arg9[%c0_64, %c0_65, %c0_66, %c0_67], %116 {strides = array<i32>} : memref<1x8x16x8xbf16, #tpu.memory_space<vmem>>, vector<1x8x16x8xbf16>,
    %cst_68 = arith.constant dense<0.000000e+00> : vector<8xf32>
    %117 = vector.multi_reduction <add>, %111, %cst_68 [0] : vector<128x8xf32> to vector<8xf32>
    %118 = vector.shape_cast %117 : vector<8xf32> to vector<1x8xf32>
    %cst_69 = arith.constant 7.812500e-03 : f32
    %119 = vector.broadcast %cst_69 : f32 to vector<1x8xf32>
    %120 = arith.mulf %118, %119 : vector<1x8xf32>
    %121 = vector.broadcast %120 : vector<1x8xf32> to vector<128x8xf32>
    %122 = arith.subf %111, %121 : vector<128x8xf32>
    %123 = arith.mulf %122, %122 : vector<128x8xf32>
    %cst_70 = arith.constant dense<0.000000e+00> : vector<8xf32>
    %124 = vector.multi_reduction <add>, %123, %cst_70 [0] : vector<128x8xf32> to vector<8xf32>
    %125 = vector.shape_cast %124 : vector<8xf32> to vector<1x8xf32>
    %126 = vector.shape_cast %118 : vector<1x8xf32> to vector<1x1x8xf32>
    %c0_71 = arith.constant 0 : index
    %c0_72 = arith.constant 0 : index
    %c0_73 = arith.constant 0 : index
    %127 = vector.load %arg10[%c0_71, %c0_72, %c0_73] : memref<1x1x8xf32, #tpu.memory_space<vmem>>, vector<1x1x8xf32>
    tpu.vector_store %arg10[%c0_71, %c0_72, %c0_73], %126 {strides = array<i32>} : memref<1x1x8xf32, #tpu.memory_space<vmem>>, vector<1x1x8xf32>,
    %128 = vector.shape_cast %125 : vector<1x8xf32> to vector<1x1x8xf32>
    %c0_74 = arith.constant 0 : index
    %c0_75 = arith.constant 0 : index
    %c0_76 = arith.constant 0 : index
    %129 = vector.load %arg11[%c0_74, %c0_75, %c0_76] : memref<1x1x8xf32, #tpu.memory_space<vmem>>, vector<1x1x8xf32>
    tpu.vector_store %arg11[%c0_74, %c0_75, %c0_76], %128 {strides = array<i32>} : memref<1x1x8xf32, #tpu.memory_space<vmem>>, vector<1x1x8xf32>,
    return
  }
  func.func @transform_0(%arg0: i32, %arg1: i32) -> (i32, i32, i32, i32) {
    %c0_i32 = arith.constant 0 : i32
    %c0_i32_0 = arith.constant 0 : i32
    %c0_i32_1 = arith.constant 0 : i32
    return %arg0, %arg1, %c0_i32, %c0_i32_0 : i32, i32, i32, i32
  }
  func.func @transform_1(%arg0: i32, %arg1: i32) -> (i32, i32, i32, i32) {
    %c0_i32 = arith.constant 0 : i32
    %c0_i32_0 = arith.constant 0 : i32
    %c0_i32_1 = arith.constant 0 : i32
    return %arg0, %arg1, %c0_i32, %c0_i32_0 : i32, i32, i32, i32
  }
  func.func @transform_2(%arg0: i32, %arg1: i32) -> (i32, i32, i32, i32) {
    %c0_i32 = arith.constant 0 : i32
    %c0_i32_0 = arith.constant 0 : i32
    %c0_i32_1 = arith.constant 0 : i32
    return %arg0, %arg1, %c0_i32, %c0_i32_0 : i32, i32, i32, i32
  }
  func.func @transform_3(%arg0: i32, %arg1: i32) -> (i32, i32) {
    %c0_i32 = arith.constant 0 : i32
    %c0_i32_0 = arith.constant 0 : i32
    %c0_i32_1 = arith.constant 0 : i32
    return %c0_i32, %c0_i32_0 : i32, i32
  }
  func.func @transform_4(%arg0: i32, %arg1: i32) -> (i32, i32) {
    %c0_i32 = arith.constant 0 : i32
    %c0_i32_0 = arith.constant 0 : i32
    %c0_i32_1 = arith.constant 0 : i32
    return %c0_i32, %c0_i32_0 : i32, i32
  }
  func.func @transform_5(%arg0: i32, %arg1: i32) -> (i32, i32, i32, i32) {
    %c0_i32 = arith.constant 0 : i32
    %c0_i32_0 = arith.constant 0 : i32
    %c0_i32_1 = arith.constant 0 : i32
    %c0_i32_2 = arith.constant 0 : i32
    %c0_i32_3 = arith.constant 0 : i32
    return %c0_i32, %c0_i32_0, %c0_i32_1, %c0_i32_2 : i32, i32, i32, i32
  }
  func.func @transform_6(%arg0: i32, %arg1: i32) -> (i32, i32) {
    %c0_i32 = arith.constant 0 : i32
    %c0_i32_0 = arith.constant 0 : i32
    %c0_i32_1 = arith.constant 0 : i32
    return %c0_i32, %c0_i32_0 : i32, i32
  }
  func.func @transform_7(%arg0: i32, %arg1: i32) -> (i32, i32, i32, i32) {
    %c0_i32 = arith.constant 0 : i32
    %c0_i32_0 = arith.constant 0 : i32
    %c0_i32_1 = arith.constant 0 : i32
    return %arg0, %arg1, %c0_i32, %c0_i32_0 : i32, i32, i32, i32
  }
  func.func @transform_8(%arg0: i32, %arg1: i32) -> (i32, i32, i32) {
    %c2_i32 = arith.constant 2 : i32
    %0 = arith.muli %arg0, %c2_i32 : i32
    %1 = arith.addi %0, %arg1 : i32
    %c0_i32 = arith.constant 0 : i32
    %c0_i32_0 = arith.constant 0 : i32
    %c0_i32_1 = arith.constant 0 : i32
    return %1, %c0_i32, %c0_i32_0 : i32, i32, i32
  }
  func.func @transform_9(%arg0: i32, %arg1: i32) -> (i32, i32, i32) {
    %c2_i32 = arith.constant 2 : i32
    %0 = arith.muli %arg0, %c2_i32 : i32
    %1 = arith.addi %0, %arg1 : i32
    %c0_i32 = arith.constant 0 : i32
    %c0_i32_0 = arith.constant 0 : i32
    %c0_i32_1 = arith.constant 0 : i32
    return %1, %c0_i32, %c0_i32_0 : i32, i32, i32
  }
}

</mosaic_0001>

<bundles_post_ra>
// kernel: tpu_custom_call.1
= control target key start
LH: loop header
LB: loop body
LE: loop exit
PB: predicated region body
PF: predicated region fallthrough
CT: control target
= control target key end

     0   :  { %vm159_vm0 = vcmask 1042432   ;;  %vm160_vm1 = vcmask 1046532   ;;  %vm28_vm3 = vsmask.f32 3328  ;;  %s534_s7 = smov 8   ;;  %s535_s10 = smov 4   ;;  %s875_s0 = inlined_call_operand.vmem [shape: bf16[10,10,4], index: 0, kind: input, shape index: {}]   ;;  %s876_s1 = inlined_call_operand.vmem [shape: bf16[64,36], index: 1, kind: output, shape index: {}]  }
   0x1   :  { %v555_v0 = vld [vmem:[%s875_s0 + $0x10] sm:$0xf]  ;;  %v560_v1 = vld [vmem:[%s875_s0 + $0x14] sm:$0x1]  ;;  %v565_v2 = vld [vmem:[%s875_s0 + $0x18] sm:$0xf] }
   0x2   :  { %v570_v3 = vld [vmem:[%s875_s0 + $0x1c] sm:$0x1]  ;;  %v17_v4 = vld [vmem:[%s875_s0 + $0x24] sm:$0x1]  ;;  %v578_v5 = vld [vmem:[%s875_s0 + $0x20] sm:$0xf] }
   0x3   :  { %vm580_vm2 = vmor %vm159_vm0, %vm160_vm1  ;;  %v474_v7 = vrot.slane %v555_v0, 9  ;;  %v172_v8 = vrot.slane %v560_v1, 5  ;;  %v589_v9 = vld [vmem:[%s875_s0] sm:$0xf]  ;;  %v475_v10 = vrot.slane %v565_v2, 9  ;;  %v176_v11 = vrot.slane %v570_v3, 5 }
   0x4   :  { %v476_v12 = vrot.slane %v578_v5, 9  ;;  %v180_v13 = vrot.slane %v17_v4, 5  ;;  %v9_v14 = vld [vmem:[%s875_s0 + $0x4] sm:$0x1]  ;;  %v604_v16 = vld [vmem:[%s875_s0 + $0x8] sm:$0xf] }
   0x5   :  { %v599_v15 = vsel %vm580_vm2, %v474_v7, %v172_v8  ;;  %v11_v17 = vld [vmem:[%s875_s0 + $0xc] sm:$0x1]  ;;  %v472_v18 = vrot.slane %v589_v9, 9  ;;  %v612_v19 = vsel %vm580_vm2, %v475_v10, %v176_v11  ;;  %v41_v20 = vshll.u32 %v9_v14, 16  ;;  %v617_v22 = vld [vmem:[%s875_s0 + $0x30] sm:$0xf] }
   0x6   :  { %v164_v21 = vrot.slane %v9_v14, 5  ;;  %v622_v23 = vld [vmem:[%s875_s0 + $0x34] sm:$0x1]  ;;  %v626_v24 = vsel %vm580_vm2, %v476_v12, %v180_v13  ;;  %v630_v25 = vcombine.low %v599_v15, %v612_v19  ;;  %v473_v26 = vrot.slane %v604_v16, 9  ;;  %v636_v28 = vld [vmem:[%s875_s0 + $0x38] sm:$0xf] }
   0x7   :  { %v168_v27 = vrot.slane %v11_v17, 5  ;;  %v641_v29 = vld [vmem:[%s875_s0 + $0x3c] sm:$0x1]  ;;  %v478_v31 = vrot.slane %v617_v22, 9  ;;  %v188_v32 = vrot.slane %v622_v23, 5  ;;  %v479_v33 = vrot.slane %v636_v28, 9 }
   0x8   :  { %v165_v30 = vsel %vm580_vm2, %v472_v18, %v164_v21  ;;  %v651_v34 = vld [vmem:[%s875_s0 + $0x28] sm:$0xf]  ;;  %280 = vrot.lane.b32.xlu1 %v630_v25, %s534_s7  ;;  %v55_v35 = vshll.u32 %v11_v17, 16  ;;  %v192_v37 = vrot.slane %v641_v29, 5  ;;  %v19_v38 = vld [vmem:[%s875_s0 + $0x2c] sm:$0x1] }
   0x9   :  { %v657_v36 = vsel %vm580_vm2, %v473_v26, %v168_v27  ;;  %v477_v39 = vrot.slane %v651_v34, 9  ;;  %v667_v41 = vsel %vm580_vm2, %v478_v31, %v188_v32  ;;  %v184_v42 = vrot.slane %v19_v38, 5  ;;  %s536_s15 = smov 12   ;;  %s537_s16 = smov 16  }
   0xa   :  { %v490_v40 = vcombine.low %v165_v30, %v657_v36  ;;  %vm29_vm4 = vsmask.f32 7440  ;;  %v671_v43 = vsel %vm580_vm2, %v479_v33, %v192_v37  ;;  %v88_v44 = vshrl.u32 %v578_v5, 16  ;;  %s538_s19 = smov 20   ;;  %s539_s22 = smov 24  }
   0xb   :  { %v91_v45 = vshll.u32 %v578_v5, 16  ;;  %v97_v46 = vshll.u32 %v17_v4, 16  ;;  %v678_v47 = vcombine.low %v667_v41, %v671_v43  ;;  %v682_v48 = vsel %vm580_vm2, %v477_v39, %v184_v42  ;;  %vm699_vm5 = vmor %vm28_vm3, %vm29_vm4  ;;  %s541_s23 = smov 32  }
   0xc   :  { %278 = vrot.lane.b32.xlu0 %v490_v40, %s534_s7  ;;  %v102_v49 = vshrl.u32 %v651_v34, 16  ;;  %v105_v50 = vshll.u32 %v651_v34, 16  ;;  %v688_v51 = vcombine.low %v626_v24, %v682_v48  ;;  %v90_v52 = vrot.slane %v88_v44, 4 }
   0xd   :  { %v93_v53 = vrot.slane %v91_v45, 5  ;;  %v99_v54 = vrot.slane %v97_v46, 5  ;;  %284 = vrot.lane.b32.xlu1 %v678_v47, %s534_s7  ;;  %v111_v57 = vshll.u32 %v19_v38, 16  ;;  %v32_v58 = vshrl.u32 %v589_v9, 16 }
   0xe   :  { %v104_v55 = vrot.slane %v102_v49, 4  ;;  %v107_v56 = vrot.slane %v105_v50, 5  ;;  %v35_v60 = vshll.u32 %v589_v9, 16  ;;  %v43_v61 = vrot.slane %v41_v20, 5 }
   0xf   :  { %v94_v59 = vor.u32 %v93_v53, %v90_v52  ;;  %v46_v62 = vshrl.u32 %v604_v16, 16  ;;  %v113_v7 = vrot.slane %v111_v57, 5  ;;  %v34_v8 = vrot.slane %v32_v58, 4 }
  0x10   :  { %282 = vrot.lane.b32.xlu0 %v688_v51, %s534_s7  ;;  %v108_v4 = vor.u32 %v107_v56, %v104_v55  ;;  %v49_v10 = vshll.u32 %v604_v16, 16  ;;  %v37_v12 = vrot.slane %v35_v60, 5  ;;  %v57_v14 = vrot.slane %v55_v35, 5 }
  0x11   :  { %v95_v11 = vrot.slane %v94_v59, 4  ;;  %v48_v13 = vrot.slane %v46_v62, 4  ;;  %v116_v20 = vshrl.u32 %v617_v22, 16  ;;  %v119_v21 = vshll.u32 %v617_v22, 16  ;;  %v735_v59 = vld [vmem:[%s875_s0 + $0x40] sm:$0xf] }
  0x12   :  { %v109_v17 = vrot.slane %v108_v4, 4  ;;  %v51_v18 = vrot.slane %v49_v10, 5  ;;  %v38_v27 = vor.u32 %v37_v12, %v34_v8  ;;  %v125_v30 = vshll.u32 %v622_v23, 16 }
  0x13   :  { %v708_v26 = vsel %vm699_vm5, %v95_v11, %v99_v54  ;;  %v130_v31 = vshrl.u32 %v636_v28, 16  ;;  %v118_v35 = vrot.slane %v116_v20, 4  ;;  %v121_v37 = vrot.slane %v119_v21, 5 }
  0x14   :  { %v714_v32 = vsel %vm699_vm5, %v109_v17, %v113_v7  ;;  %v52_v33 = vor.u32 %v51_v18, %v48_v13  ;;  %v39_v39 = vrot.slane %v38_v27, 4  ;;  %v133_v45 = vshll.u32 %v636_v28, 16 }
  0x15   :  { %v718_v38 = vcombine.low %v708_v26, %v714_v32  ;;  %v132_v40 = vrot.slane %v130_v31, 4  ;;  %v122_v44 = vor.u32 %v121_v37, %v118_v35  ;;  %v139_v23 = vshll.u32 %v641_v29, 16  ;;  %v25_v31 = vld [vmem:[%s875_s0 + $0x44] sm:$0x1] }
  0x16   :  { %v53_v42 = vrot.slane %v52_v33, 4  ;;  %v69_v46 = vshll.u32 %v560_v1, 16  ;;  %v44_v49 = vsel %vm699_vm5, %v39_v39, %v43_v61  ;;  %v60_v50 = vshrl.u32 %v555_v0, 16 }
  0x17   :  { %262 = vrot.lane.b32.xlu1 %v718_v38, %s535_s10  ;;  %v63_v52 = vshll.u32 %v555_v0, 16  ;;  %v123_v54 = vrot.slane %v122_v44, 4  ;;  %v127_v55 = vrot.slane %v125_v30, 5  ;;  %v135_v56 = vrot.slane %v133_v45, 5 }
  0x18   :  { %v58_v53 = vsel %vm699_vm5, %v53_v42, %v57_v14  ;;  %v62_v57 = vrot.slane %v60_v50, 4  ;;  %v74_v58 = vshrl.u32 %v565_v2, 16  ;;  %v83_v60 = vshll.u32 %v570_v3, 16 }
  0x19   :  { %v486_v29 = vcombine.low %v44_v49, %v58_v53  ;;  %v65_v1 = vrot.slane %v63_v52, 5  ;;  %v136_v61 = vor.u32 %v135_v56, %v132_v40  ;;  %v141_v62 = vrot.slane %v139_v23, 5 }
  0x1a   :  { %v77_v4 = vshll.u32 %v565_v2, 16  ;;  %v71_v8 = vrot.slane %v69_v46, 5  ;;  %v76_v10 = vrot.slane %v74_v58, 4  ;;  %v128_v11 = vsel %vm699_vm5, %v123_v54, %v127_v55 }
  0x1b   :  { %258 = vrot.lane.b32.xlu0 %v486_v29, %s535_s10  ;;  %v66_v7 = vor.u32 %v65_v1, %v62_v57  ;;  %v137_v12 = vrot.slane %v136_v61, 4  ;;  %v195_v14 = vshrl.u32 %v735_v59, 16  ;;  %v198_v18 = vshll.u32 %v735_v59, 16 }
  0x1c   :  { %v79_v13 = vrot.slane %v77_v4, 5  ;;  %v85_v21 = vrot.slane %v83_v60, 5  ;;  %v495_v39 = vcombine.low %v565_v2, %v578_v5  ;;  %v204_v44 = vshll.u32 %v25_v31, 16  ;;  %v26_v60 = vld [vmem:[%s875_s0 + $0x48] sm:$0xf] }
  0x1d   :  { %v67_v17 = vrot.slane %v66_v7, 4  ;;  %v142_v3 = vsel %vm699_vm5, %v137_v12, %v141_v62  ;;  %v197_v27 = vrot.slane %v195_v14, 4  ;;  %v200_v33 = vrot.slane %v198_v18, 5 }
  0x1e   :  { %v80_v20 = vor.u32 %v79_v13, %v76_v10  ;;  %v746_v30 = vcombine.low %v128_v11, %v142_v3  ;;  %v494_v23 = vcombine.low %v604_v16, %v555_v0  ;;  %v497_v46 = vcombine.low %v636_v28, %v735_v59 }
  0x1f   :  { %v72_v35 = vsel %vm699_vm5, %v67_v17, %v71_v8  ;;  %v201_v42 = vor.u32 %v200_v33, %v197_v27  ;;  %v482_v49 = vcombine.low %v589_v9, %v604_v16  ;;  %v206_v52 = vrot.slane %v204_v44, 5 }
  0x20   :  { %v81_v37 = vrot.slane %v80_v20, 4  ;;  %264 = vrot.lane.b32.xlu1 %v746_v30, %s535_s10  ;;  %v496_v54 = vcombine.low %v651_v34, %v617_v22  ;;  %v498_v29 = vcombine.low %v58_v53, %v72_v35  ;;  %v480_v1 = vrot.slane %v735_v59, 9 }
  0x21   :  { %v202_v50 = vrot.slane %v201_v42, 4  ;;  %v212_v58 = vrot.slane %v25_v31, 5  ;;  %v503_v61 = vcombine.low %v612_v19, %v626_v24  ;;  %v215_v4 = vshrl.u32 %v26_v60, 16  ;;  %v27_v19 = vld [vmem:[%s875_s0 + $0x4c] sm:$0x1]  ;;  %s540_s0 = smov 28  }
  0x22   :  { %v86_v40 = vsel %vm699_vm5, %v81_v37, %v85_v21  ;;  %v218_v53 = vshll.u32 %v26_v60, 16  ;;  %v502_v7 = vcombine.low %v657_v36, %v599_v15  ;;  %v504_v24 = vcombine.low %v682_v48, %v667_v41 }
  0x23   :  { %v487_v45 = vcombine.low %v72_v35, %v86_v40  ;;  %v499_v55 = vcombine.low %v86_v40, %v708_v26  ;;  %v207_v56 = vsel %vm699_vm5, %v202_v50, %v206_v52  ;;  %v500_v26 = vcombine.low %v714_v32, %v128_v11 }
  0x24   :  { %293 = vrot.lane.b32.xlu1 %v495_v39, %s536_s15  ;;  %v501_v57 = vcombine.low %v142_v3, %v207_v56  ;;  %v213_v62 = vsel %vm580_vm2, %v480_v1, %v212_v58  ;;  %v217_v10 = vrot.slane %v215_v4, 4  ;;  %v220_v12 = vrot.slane %v218_v53, 5 }
  0x25   :  { %260 = vrot.lane.b32.xlu0 %v487_v45, %s535_s10  ;;  %v505_v8 = vcombine.low %v671_v43, %v213_v62  ;;  %v790_v32 = vcombine.low %v578_v5, %v651_v34  ;;  %v224_v36 = vshll.u32 %v27_v19, 16  ;;  %v483_v43 = vcombine.low %v555_v0, %v565_v2 }
  0x26   :  { %v221_v15 = vor.u32 %v220_v12, %v217_v10  ;;  %v506_v11 = vcombine.low %v735_v59, %v26_v60  ;;  %v485_v41 = vcombine.low %v617_v22, %v636_v28  ;;  %v481_v48 = vrot.slane %v26_v60, 9 }
  0x27   :  { %v226_v14 = vrot.slane %v224_v36, 5  ;;  %v232_v17 = vrot.slane %v27_v19, 5  ;;  %vm355_vm6 = vcmask 31744   ;;  %vm377_vm7 = vcmask 97280  }
  0x28   :  { %297 = vrot.lane.b32.xlu1 %v497_v46, %s536_s15  ;;  %v222_v13 = vrot.slane %v221_v15, 4  ;;  %vm368_vm8 = vcmask 64512   ;;  %vm386_vm9 = vcmask 130048   ;;  %vm395_vm10 = vcmask 162816  }
  0x29   :  { %291 = vrot.lane.b32.xlu0 %v494_v23, %s536_s15  ;;  %v233_v0 = vsel %vm580_vm2, %v481_v48, %v232_v17  ;;  %vm404_vm11 = vcmask 195584   ;;  %vm413_vm12 = vcmask 228352   ;;  %vm422_vm13 = vcmask 261120  }
  0x2a   :  { %v227_v5 = vsel %vm699_vm5, %v222_v13, %v226_v14  ;;  %v508_v2 = vcombine.low %v213_v62, %v233_v0  ;;  %vm459_vm14 = vcmask 289792  }
  0x2b   :  { %v507_v34 = vcombine.low %v207_v56, %v227_v5 }
  0x2c   :  { %306 = vrot.lane.b32.xlu1 %v499_v55, %s537_s16 }
  0x2d   :  { %295 = vrot.lane.b32.xlu0 %v496_v54, %s536_s15 }
  0x30   :  { %310 = vrot.lane.b32.xlu1 %v501_v57, %s537_s16 }
  0x31   :  { %304 = vrot.lane.b32.xlu0 %v498_v29, %s537_s16 }
  0x34   :  { %319 = vrot.lane.b32.xlu1 %v503_v61, %s538_s19 }
  0x35   :  { %308 = vrot.lane.b32.xlu0 %v500_v26, %s537_s16 }
  0x38   :  { %323 = vrot.lane.b32.xlu1 %v505_v8, %s538_s19 }
  0x39   :  { %317 = vrot.lane.b32.xlu0 %v502_v7, %s538_s19 }
  0x3c   :  { %329 = vrot.lane.b32.xlu1 %v790_v32, %s539_s22 }
  0x3d   :  { %321 = vrot.lane.b32.xlu0 %v504_v24, %s538_s19 }
  0x40   :  { %333 = vrot.lane.b32.xlu1 %v506_v11, %s539_s22 }
  0x41   :  { %327 = vrot.lane.b32.xlu0 %v483_v43, %s539_s22 }
  0x44   :  { %339 = vrot.lane.b32.xlu1 %v718_v38, %s540_s0 }
  0x45   :  { %331 = vrot.lane.b32.xlu0 %v485_v41, %s539_s22 }
  0x48   :  { %343 = vrot.lane.b32.xlu1 %v507_v34, %s540_s0 }
  0x49   :  { %337 = vrot.lane.b32.xlu0 %v487_v45, %s540_s0 }
  0x4c   :  { %349 = vrot.lane.b32.xlu1 %v688_v51, %s541_s23 }
  0x4d   :  { %341 = vrot.lane.b32.xlu0 %v746_v30, %s540_s0 }
  0x50   :  { %353 = vrot.lane.b32.xlu1 %v508_v2, %s541_s23 }
  0x51   :  { %347 = vrot.lane.b32.xlu0 %v630_v25, %s541_s23 }
  0x55   :  { %351 = vrot.lane.b32.xlu0 %v678_v47, %s541_s23 }
  0x7a   :  { %v281_v22 = vpop.permute.xlu1 %280 }
  0x7e   :  { %v279_v28 = vpop.permute.xlu0 %278 }
  0x7f   :  { %v285_v63 = vpop.permute.xlu1 %284 }
  0x82   :  { %v283_v38 = vpop.permute.xlu0 %282 }
  0x89   :  { %v263_v59 = vpop.permute.xlu1 %262 }
  0x8a   :  { %v364_v1 = vsel %vm355_vm6, %v790_v32, %v263_v59 }
  0x8b   :  { %v374_v53 = vsel %vm368_vm8, %v364_v1, %v283_v38 }
  0x8d   :  { %v259_v18 = vpop.permute.xlu0 %258 }
  0x8e   :  { %v358_v52 = vsel %vm355_vm6, %v482_v49, %v259_v18 }
  0x8f   :  { %v370_v9 = vsel %vm368_vm8, %v358_v52, %v279_v28 }
  0x92   :  { %v265_v3 = vpop.permute.xlu1 %264 }
  0x93   :  { %v367_v54 = vsel %vm355_vm6, %v485_v41, %v265_v3 }
  0x94   :  { %v376_v16 = vsel %vm368_vm8, %v367_v54, %v285_v63 }
  0x96   :  { %v294_v20 = vpop.permute.xlu1 %293 }
  0x97   :  { %v261_v6 = vpop.permute.xlu0 %260 }
  0x98   :  { %v361_v45 = vsel %vm355_vm6, %v483_v43, %v261_v6 }
  0x99   :  { %v372_v50 = vsel %vm368_vm8, %v361_v45, %v281_v22 }
  0x9a   :  { %v298_v27 = vpop.permute.xlu1 %297  ;;  %v381_v55 = vsel %vm377_vm7, %v372_v50, %v294_v20 }
  0x9b   :  { %v292_v21 = vpop.permute.xlu0 %291  ;;  %v385_v61 = vsel %vm377_vm7, %v376_v16, %v298_v27 }
  0x9c   :  { %v379_v60 = vsel %vm377_vm7, %v370_v9, %v292_v21 }
  0x9e   :  { %v307_v31 = vpop.permute.xlu1 %306 }
  0x9f   :  { %v296_v30 = vpop.permute.xlu0 %295  ;;  %v390_v57 = vsel %vm386_vm9, %v381_v55, %v307_v31 }
  0xa0   :  { %v383_v15 = vsel %vm377_vm7, %v374_v53, %v296_v30 }
  0xa2   :  { %v311_v33 = vpop.permute.xlu1 %310 }
  0xa3   :  { %v305_v51 = vpop.permute.xlu0 %304  ;;  %v394_v8 = vsel %vm386_vm9, %v385_v61, %v311_v33 }
  0xa4   :  { %v388_v7 = vsel %vm386_vm9, %v379_v60, %v305_v51 }
  0xa6   :  { %v320_v25 = vpop.permute.xlu1 %319 }
  0xa7   :  { %v309_v35 = vpop.permute.xlu0 %308  ;;  %v399_v58 = vsel %vm395_vm10, %v390_v57, %v320_v25 }
  0xa8   :  { %v392_v11 = vsel %vm386_vm9, %v383_v15, %v309_v35 }
  0xaa   :  { %v324_v39 = vpop.permute.xlu1 %323 }
  0xab   :  { %v318_v37 = vpop.permute.xlu0 %317  ;;  %v403_v19 = vsel %vm395_vm10, %v394_v8, %v324_v39 }
  0xac   :  { %v397_v12 = vsel %vm395_vm10, %v388_v7, %v318_v37 }
  0xae   :  { %v330_v40 = vpop.permute.xlu1 %329 }
  0xaf   :  { %v322_v47 = vpop.permute.xlu0 %321  ;;  %v408_v49 = vsel %vm404_vm11, %v399_v58, %v330_v40 }
  0xb0   :  { %v401_v34 = vsel %vm395_vm10, %v392_v11, %v322_v47 }
  0xb2   :  { %v334_v44 = vpop.permute.xlu1 %333 }
  0xb3   :  { %v328_v42 = vpop.permute.xlu0 %327  ;;  %v412_v43 = vsel %vm404_vm11, %v403_v19, %v334_v44 }
  0xb4   :  { %v406_v36 = vsel %vm404_vm11, %v397_v12, %v328_v42 }
  0xb6   :  { %v340_v46 = vpop.permute.xlu1 %339 }
  0xb7   :  { %v332_v23 = vpop.permute.xlu0 %331  ;;  %v417_v26 = vsel %vm413_vm12, %v408_v49, %v340_v46 }
  0xb8   :  { %v410_v63 = vsel %vm404_vm11, %v401_v34, %v332_v23 }
  0xba   :  { %v344_v29 = vpop.permute.xlu1 %343 }
  0xbb   :  { %v338_v56 = vpop.permute.xlu0 %337  ;;  %v421_v14 = vsel %vm413_vm12, %v412_v43, %v344_v29 }
  0xbc   :  { %v415_v13 = vsel %vm413_vm12, %v406_v36, %v338_v56 }
  0xbe   :  { %v350_v4 = vpop.permute.xlu1 %349 }
  0xbf   :  { %v342_v62 = vpop.permute.xlu0 %341  ;;  %v426_v10 = vsel %vm422_vm13, %v417_v26, %v350_v4 }
  0xc0   :  { %v511_v24 = vcombine.low %v426_v10, %v426_v10  ;;  %v512_v32 = vcombine.high %v426_v10, %v426_v10  ;;  %v419_v38 = vsel %vm413_vm12, %v410_v63, %v342_v62 }
  0xc2   :  { %462 = vst.msk [vmem:[%s876_s1 + $0x8] sm:$0xf] %vm459_vm14, %v511_v24  ;;  %463 = vst.msk [vmem:[%s876_s1 + $0xc] sm:$0xf] %vm459_vm14, %v512_v32  ;;  %v354_v5 = vpop.permute.xlu1 %353 }
  0xc3   :  { %v348_v41 = vpop.permute.xlu0 %347  ;;  %v430_v17 = vsel %vm422_vm13, %v421_v14, %v354_v5 }
  0xc4   :  { %v424_v48 = vsel %vm422_vm13, %v415_v13, %v348_v41  ;;  %v515_v22 = vcombine.low %v430_v17, %v430_v17  ;;  %v516_v28 = vcombine.high %v430_v17, %v430_v17 }
  0xc5   :  { %v509_v0 = vcombine.low %v424_v48, %v424_v48  ;;  %v510_v2 = vcombine.high %v424_v48, %v424_v48 }
  0xc6   :  { %466 = vst.msk [vmem:[%s876_s1 + $0x18] sm:$0xf] %vm459_vm14, %v515_v22  ;;  %467 = vst.msk [vmem:[%s876_s1 + $0x1c] sm:$0xf] %vm459_vm14, %v516_v28 }
  0xc7   :  { %460 = vst.msk [vmem:[%s876_s1] sm:$0xf] %vm459_vm14, %v509_v0  ;;  %461 = vst.msk [vmem:[%s876_s1 + $0x4] sm:$0xf] %vm459_vm14, %v510_v2  ;;  %v352_v59 = vpop.permute.xlu0 %351 }
  0xc8   :  { %v428_v18 = vsel %vm422_vm13, %v419_v38, %v352_v59 }
  0xc9   :  { %v513_v3 = vcombine.low %v428_v18, %v428_v18  ;;  %v514_v6 = vcombine.high %v428_v18, %v428_v18 }
  0xcb   :  { %464 = vst.msk [vmem:[%s876_s1 + $0x10] sm:$0xf] %vm459_vm14, %v513_v3  ;;  %465 = vst.msk [vmem:[%s876_s1 + $0x14] sm:$0xf] %vm459_vm14, %v514_v6 }

// kernel: conv_block_forward.3
= control target key start
LH: loop header
LB: loop body
LE: loop exit
PB: predicated region body
PF: predicated region fallthrough
CT: control target
= control target key end

     0   :  { %s544_s9 = smov 0   ;;  %s546_s10 = smov 0   ;;  %s691_s0 = inlined_call_operand.vmem [shape: f32[2,16,16,4], index: 0, kind: input, shape index: {}]   ;;  %s692_s1 = inlined_call_operand.vmem [shape: f32[4,1,4], index: 1, kind: output, shape index: {0}]   ;;  %s693_s2 = inlined_call_operand.vmem [shape: f32[4,1,4], index: 2, kind: output, shape index: {1}]  }
   0x1   :  { %s548_s11 = smov 0   ;;  %s550_s12 = smov 0  }
   0x2   :  { %s552_s13 = smov 0  }
   0x3 LB: > { %s22_s14 = sadd.s32 1, %s519_s11  ;;  %s25_s15 = sadd.s32 1, %s523_s12  ;;  %s527_s13 = sphi %s552_s13, %s13_s13   ;;  %s523_s12 = sphi %s550_s12, %s697_s12   ;;  %s519_s11 = sphi %s548_s11, %s696_s11   ;;  %s515_s10 = sphi %s546_s10, %s695_s10   ;;  %s511_s9 = sphi %s544_s9, %s694_s9  }
   0x4   : > { %p23_p0 = scmp.ge.s32.totalorder %s22_s14, 2  ;;  %p440_p1 = scmp.ge.s32.totalorder %s527_s13, 1 }
   0x5   : > { %p143_p2 = scmp.lt.s32.totalorder %s527_s13, 5 }
   0x6   : > { %s699_s14 = smov (%p23_p0, %s22_s14), 0  ;;  %s701_s15 = smov (!%p23_p0, %s25_s15), %s523_s12 }
   0x7   : > { %p144_p3 = pnand %p440_p1, %p143_p2  ;;  %p27_p4 = scmp.ge.s32.totalorder %s701_s15, 2 }
   0x8   : > { %s441_s16 = sshll.u32 (!%p144_p3), %s511_s9, 3  ;;  %p176_p5 = scmp.lt.s32.totalorder (!%p144_p3), %s515_s10, 1 }
   0x9   : > { %s703_s15 = smov (%p27_p4, %s701_s15), 0  ;;  %147 = sbr.rel (%p144_p3) target bundleno = 114 (0x72), region = 24 }
   0xa   : > { %p178_p6 = scmp.lt.s32.totalorder (!%p144_p3), %s441_s16, 15  ;;  %s445_s25 = sshll.u32 (!%p144_p3), %s515_s10, 1 }
   0xb   : > { %s187_s26 = sadd.s32 (!%p144_p3), %s511_s9, %s445_s25 }
   0xc   : > { %p188_p7 = scmp.lt.s32.totalorder (!%p144_p3), %s187_s26, 3 }
   0xe   : > { %s177_s17 = scalar_select %p176_p5, %s515_s10, 1  ;;  %vm216_vm0 = vcmask 31744   ;;  %vm324_vm1 = vcmask 24576  }
   0xf   : > { %s705_s16 = smov (!%p178_p6, %s441_s16), 15  ;;  %s707_s26 = smov (!%p188_p7, %s187_s26), 3 }
  0x10   : > { %s443_s18 = sshll.u32 %s177_s17, 5  ;;  %s442_s19 = sshll.u32 %s705_s16, 1 }
  0x11   : > { %s182_s20 = sadd.s32 %s443_s18, %s442_s19  ;;  %s190_s29 = scalar_lea.vmem %s692_s1, %s707_s26 }
  0x12   : > { %s444_s21 = sshll.u32 %s182_s20, 3  ;;  %s197_s4 = scalar_lea.vmem %s693_s2, %s707_s26 }
  0x13   : > { %s584_s24 = scalar_lea.vmem %s691_s0, %s444_s21 }
  0x14   : > { %v200_v0 = vld [vmem:[%s584_s24] sm:$0xff]  ;;  %v201_v1 = vld [vmem:[%s584_s24 + $0x8] sm:$0xff]  ;;  %v202_v2 = vld [vmem:[%s584_s24 + $0x10] sm:$0xff] }
  0x15   : > { %v203_v3 = vld [vmem:[%s584_s24 + $0x18] sm:$0xff]  ;;  %v217_v4 = vsel %vm216_vm0, %v200_v0, 0.0  ;;  %v218_v5 = vsel %vm216_vm0, %v201_v1, 0.0  ;;  %v220_v6 = vsel %vm216_vm0, %v202_v2, 0.0  ;;  %v204_v7 = vld [vmem:[%s584_s24 + $0x20] sm:$0xff]  ;;  %v205_v10 = vld [vmem:[%s584_s24 + $0x28] sm:$0xff] }
  0x16   : > { %v219_v8 = vadd.f32 %v218_v5, %v217_v4  ;;  %v222_v9 = vsel %vm216_vm0, %v203_v3, 0.0  ;;  %v224_v12 = vsel %vm216_vm0, %v204_v7, 0.0  ;;  %v206_v13 = vld [vmem:[%s584_s24 + $0x30] sm:$0xff]  ;;  %v226_v15 = vsel %vm216_vm0, %v205_v10, 0.0  ;;  %v207_v16 = vld [vmem:[%s584_s24 + $0x38] sm:$0xff]  ;;  %v208_v19 = vld [vmem:[%s584_s24 + $0x40] sm:$0xff] }
  0x17   : > { %v228_v18 = vsel %vm216_vm0, %v206_v13, 0.0  ;;  %v230_v21 = vsel %vm216_vm0, %v207_v16, 0.0  ;;  %v604_v22 = vld [vmem:[%s584_s24 + $0x48] sm:$0xff]  ;;  %v232_v24 = vsel %vm216_vm0, %v208_v19, 0.0  ;;  %v608_v25 = vld [vmem:[%s584_s24 + $0x50] sm:$0xff]  ;;  %v613_v28 = vld [vmem:[%s584_s24 + $0x58] sm:$0xff] }
  0x18   : > { %v221_v11 = vadd.f32 %v220_v6, %v219_v8  ;;  %v234_v27 = vsel %vm216_vm0, %v604_v22, 0.0  ;;  %v236_v30 = vsel %vm216_vm0, %v608_v25, 0.0  ;;  %v618_v31 = vld [vmem:[%s584_s24 + $0x60] sm:$0xff]  ;;  %v238_v33 = vsel %vm216_vm0, %v613_v28, 0.0  ;;  %v623_v34 = vld [vmem:[%s584_s24 + $0x68] sm:$0xff]  ;;  %v628_v37 = vld [vmem:[%s584_s24 + $0x70] sm:$0xff] }
  0x19   : > { %v240_v36 = vsel %vm216_vm0, %v618_v31, 0.0  ;;  %v242_v39 = vsel %vm216_vm0, %v623_v34, 0.0  ;;  %v633_v40 = vld [vmem:[%s584_s24 + $0x78] sm:$0xff]  ;;  %v244_v42 = vsel %vm216_vm0, %v628_v37, 0.0 }
  0x1a   : > { %v223_v14 = vadd.f32 %v222_v9, %v221_v11  ;;  %v246_v44 = vsel %vm216_vm0, %v633_v40, 0.0 }
  0x1c   : > { %v225_v17 = vadd.f32 %v224_v12, %v223_v14 }
  0x1e   : > { %v227_v20 = vadd.f32 %v226_v15, %v225_v17 }
  0x20   : > { %v229_v23 = vadd.f32 %v228_v18, %v227_v20 }
  0x22   : > { %v231_v26 = vadd.f32 %v230_v21, %v229_v23 }
  0x24   : > { %v233_v29 = vadd.f32 %v232_v24, %v231_v26 }
  0x26   : > { %v235_v32 = vadd.f32 %v234_v27, %v233_v29 }
  0x28   : > { %v237_v35 = vadd.f32 %v236_v30, %v235_v32 }
  0x2a   : > { %v239_v38 = vadd.f32 %v238_v33, %v237_v35 }
  0x2c   : > { %v241_v41 = vadd.f32 %v240_v36, %v239_v38 }
  0x2e   : > { %v243_v43 = vadd.f32 %v242_v39, %v241_v41 }
  0x30   : > { %v245_v45 = vadd.f32 %v244_v42, %v243_v43 }
  0x32   : > { %v247_v46 = vadd.f32 %v246_v44, %v245_v45 }
  0x34   : > { %v248_v47 = vrot.slane %v247_v46, 4 }
  0x36   : > { %v249_v48 = vadd.f32 %v248_v47, %v247_v46 }
  0x38   : > { %v250_v49 = vrot.slane %v249_v48, 2 }
  0x3a   : > { %v251_v50 = vadd.f32 %v250_v49, %v249_v48 }
  0x3c   : > { %v252_v51 = vrot.slane %v251_v50, 1 }
  0x3e   : > { %v253_v52 = vadd.f32 %v252_v51, %v251_v50 }
  0x40   : > { %v254_v53 = vmul.f32 0.0078125, %v253_v52  ;;  %325 = vst.msk [vmem:[%s190_s29] sm:$0x1] %vm324_vm1, %v253_v52 }
  0x42   : > { %v255_v54 = vsub.f32 %v200_v0, %v254_v53  ;;  %v256_v55 = vsub.f32 %v201_v1, %v254_v53  ;;  %v257_v56 = vsub.f32 %v202_v2, %v254_v53  ;;  %v258_v57 = vsub.f32 %v203_v3, %v254_v53 }
  0x43   : > { %v259_v58 = vsub.f32 %v204_v7, %v254_v53  ;;  %v260_v62 = vsub.f32 %v205_v10, %v254_v53  ;;  %v261_v4 = vsub.f32 %v206_v13, %v254_v53  ;;  %v262_v12 = vsub.f32 %v207_v16, %v254_v53 }
  0x44   : > { %v271_v59 = vmul.f32 %v255_v54, %v255_v54  ;;  %v272_v60 = vmul.f32 %v256_v55, %v256_v55  ;;  %v273_v61 = vmul.f32 %v257_v56, %v257_v56  ;;  %v274_v63 = vmul.f32 %v258_v57, %v258_v57 }
  0x45   : > { %v275_v5 = vmul.f32 %v259_v58, %v259_v58  ;;  %v276_v0 = vmul.f32 %v260_v62, %v260_v62  ;;  %v263_v3 = vsub.f32 %v208_v19, %v254_v53  ;;  %v277_v7 = vmul.f32 %v261_v4, %v261_v4 }
  0x46   : > { %v287_v6 = vsel %vm216_vm0, %v271_v59, 0.0  ;;  %v288_v8 = vsel %vm216_vm0, %v272_v60, 0.0  ;;  %v290_v9 = vsel %vm216_vm0, %v273_v61, 0.0  ;;  %v292_v1 = vsel %vm216_vm0, %v274_v63, 0.0 }
  0x47   : > { %v289_v11 = vadd.f32 %v288_v8, %v287_v6  ;;  %v294_v14 = vsel %vm216_vm0, %v275_v5, 0.0  ;;  %v264_v13 = vsub.f32 %v604_v22, %v254_v53  ;;  %v278_v15 = vmul.f32 %v262_v12, %v262_v12 }
  0x48   : > { %v296_v17 = vsel %vm216_vm0, %v276_v0, 0.0  ;;  %v265_v20 = vsub.f32 %v608_v25, %v254_v53  ;;  %v279_v21 = vmul.f32 %v263_v3, %v263_v3  ;;  %v298_v16 = vsel %vm216_vm0, %v277_v7, 0.0 }
  0x49   : > { %v291_v2 = vadd.f32 %v290_v9, %v289_v11  ;;  %v266_v24 = vsub.f32 %v613_v28, %v254_v53  ;;  %v280_v26 = vmul.f32 %v264_v13, %v264_v13  ;;  %v300_v19 = vsel %vm216_vm0, %v278_v15, 0.0 }
  0x4a   : > { %v267_v29 = vsub.f32 %v618_v31, %v254_v53  ;;  %v281_v30 = vmul.f32 %v265_v20, %v265_v20  ;;  %v302_v22 = vsel %vm216_vm0, %v279_v21, 0.0  ;;  %v268_v33 = vsub.f32 %v623_v34, %v254_v53 }
  0x4b   : > { %v293_v10 = vadd.f32 %v292_v1, %v291_v2  ;;  %v282_v35 = vmul.f32 %v266_v24, %v266_v24  ;;  %v304_v25 = vsel %vm216_vm0, %v280_v26, 0.0  ;;  %v269_v38 = vsub.f32 %v628_v37, %v254_v53 }
  0x4c   : > { %v283_v39 = vmul.f32 %v267_v29, %v267_v29  ;;  %v306_v28 = vsel %vm216_vm0, %v281_v30, 0.0  ;;  %v270_v42 = vsub.f32 %v633_v40, %v254_v53  ;;  %v284_v43 = vmul.f32 %v268_v33, %v268_v33 }
  0x4d   : > { %v295_v18 = vadd.f32 %v294_v14, %v293_v10  ;;  %v308_v31 = vsel %vm216_vm0, %v282_v35, 0.0  ;;  %v285_v45 = vmul.f32 %v269_v38, %v269_v38 }
  0x4e   : > { %v310_v34 = vsel %vm216_vm0, %v283_v39, 0.0  ;;  %v286_v47 = vmul.f32 %v270_v42, %v270_v42  ;;  %v312_v48 = vsel %vm216_vm0, %v284_v43, 0.0 }
  0x4f   : > { %v297_v23 = vadd.f32 %v296_v17, %v295_v18  ;;  %v314_v37 = vsel %vm216_vm0, %v285_v45, 0.0 }
  0x50   : > { %v316_v51 = vsel %vm216_vm0, %v286_v47, 0.0 }
  0x51   : > { %v299_v27 = vadd.f32 %v298_v16, %v297_v23 }
  0x53   : > { %v301_v32 = vadd.f32 %v300_v19, %v299_v27 }
  0x55   : > { %v303_v36 = vadd.f32 %v302_v22, %v301_v32 }
  0x57   : > { %v305_v41 = vadd.f32 %v304_v25, %v303_v36 }
  0x59   : > { %v307_v44 = vadd.f32 %v306_v28, %v305_v41 }
  0x5b   : > { %v309_v46 = vadd.f32 %v308_v31, %v307_v44 }
  0x5d   : > { %v311_v49 = vadd.f32 %v310_v34, %v309_v46 }
  0x5f   : > { %v313_v50 = vadd.f32 %v312_v48, %v311_v49 }
  0x61   : > { %v315_v52 = vadd.f32 %v314_v37, %v313_v50 }
  0x63   : > { %v317_v40 = vadd.f32 %v316_v51, %v315_v52 }
  0x65   : > { %v318_v53 = vrot.slane %v317_v40, 4 }
  0x67   : > { %v319_v54 = vadd.f32 %v318_v53, %v317_v40 }
  0x69   : > { %v320_v55 = vrot.slane %v319_v54, 2 }
  0x6b   : > { %v321_v56 = vadd.f32 %v320_v55, %v319_v54 }
  0x6d   : > { %v322_v57 = vrot.slane %v321_v56, 1 }
  0x6f   : > { %v323_v58 = vadd.f32 %v322_v57, %v321_v56 }
  0x71   : > { %326 = vst.msk [vmem:[%s197_s4] sm:$0x1] %vm324_vm1, %v323_v58 }
  0x72 PF: > { %s13_s13 = sadd.s32 1, %s527_s13   ;;  %s694_s9 = smov %s519_s11 }
  0x73   : > { %p10_p8 = scmp.ge.s32.totalorder %s13_s13, 6   ;;  %s695_s10 = smov %s523_s12 }
  0x74   : > { %s696_s11 = smov %s699_s14  ;;  %s697_s12 = smov %s703_s15 }
  0x75   :  { %12 = sbr.rel (!%p10_p8) target bundleno = 3 (0x3), region = 66 }

// kernel: conv_block_forward.5
= control target key start
LH: loop header
LB: loop body
LE: loop exit
PB: predicated region body
PF: predicated region fallthrough
CT: control target
= control target key end

     0   :  { %15 = vsyncpa [#allocation3], 0  ;;  %s4119_s0 = inlined_call_operand.vmem [shape: bf16[2,16,16,8], index: 0, kind: input, shape index: {}]   ;;  %s4120_s1 = inlined_call_operand.vmem [shape: bf16[2,2,16,8], index: 1, kind: input, shape index: {}]   ;;  %s4121_s2 = inlined_call_operand.vmem [shape: bf16[2,2,16,8], index: 2, kind: input, shape index: {}]   ;;  %s4122_s3 = inlined_call_operand.vmem [shape: f32[1,8], index: 3, kind: input, shape index: {}]   ;;  %s4123_s4 = inlined_call_operand.vmem [shape: f32[1,8], index: 4, kind: input, shape index: {}]   ;;  %s4124_s5 = inlined_call_operand.vmem [shape: bf16[3,3,8,8], index: 5, kind: input, shape index: {}]   ;;  %s4125_s6 = inlined_call_operand.vmem [shape: f32[1,8], index: 6, kind: input, shape index: {}]   ;;  %s4126_s7 = inlined_call_operand.vmem [shape: f32[2,16,16,8], index: 7, kind: output, shape index: {0}]   ;;  %s4127_s8 = inlined_call_operand.hbm [shape: f32[4,1,8], index: 8, kind: output, shape index: {1}]   ;;  %s4128_s9 = inlined_call_operand.hbm [shape: f32[4,1,8], index: 9, kind: output, shape index: {2}]  }
   0x1   :  { %17 = vsyncpa [#allocation3 + $0x1], 0 }
   0x2   :  { %18 = vsyncpa [#allocation5], 0 }
   0x3   :  { %20 = vsyncpa [#allocation5 + $0x1], 0  ;;  %s3071_s30 = smov 0   ;;  %s3073_s10 = smov 0  }
   0x4   :  { %s3075_s11 = smov 0   ;;  %s3077_s12 = smov 0  }
   0x5   :  { %s3079_s13 = smov 0   ;;  %s3081_s14 = smov 0  }
   0x6   :  { %s3083_s15 = smov 0   ;;  %s3085_s16 = smov 0  }
   0x7 LB: > { %4134 = sst [smem:[#allocation8_spill]] %s3009_s14  ;;  %s2405_s17 = sadd.s32 4294967295, %s3017_s16   ;;  %s3017_s16 = sphi %s3085_s16, %s26_s16   ;;  %s3013_s15 = sphi %s3083_s15, %s4182_s15   ;;  %s3009_s14 = sphi %s3081_s14, %s4181_s14   ;;  %s3005_s13 = sphi %s3079_s13, %s4180_s13   ;;  %s3001_s12 = sphi %s3077_s12, %s4179_s12   ;;  %s2997_s11 = sphi %s3075_s11, %s4185_s11   ;;  %s2993_s10 = sphi %s3073_s10, %s4184_s10   ;;  %s2989_s30 = sphi %s3071_s30, %s4183_s30  }
   0x8   : > { %4135 = sst [smem:[#allocation9_spill]] %s3013_s15  ;;  %s35_s18 = sadd.s32 1, %s3009_s14 }
   0x9   : > { %s38_s19 = sadd.s32 1, %s3013_s15  ;;  %p36_p0 = scmp.ge.s32.totalorder %s35_s18, 2 }
   0xa   : > { %s2407_s20 = sshll.u32 %s3013_s15, 1  ;;  %s2406_s21 = sadd.s32 4294967294, %s3017_s16  }
   0xb   : > { %s239_s22 = sadd.s32 %s3009_s14, %s2407_s20  ;;  %s4187_s18 = smov (%p36_p0, %s35_s18), 0 }
   0xc   : > { %4136 = sst [smem:[#allocation10_spill]] %s4187_s18  ;;  %s4189_s19 = smov (!%p36_p0, %s38_s19), %s3013_s15 }
   0xd   : > { %p255_p1 = scmp.ne.s32.totalorder %s2997_s11, %s2993_s10  ;;  %p256_p2 = scmp.eq.s32.totalorder %s2405_s17, 3 }
   0xe   : > { %p40_p3 = scmp.ge.s32.totalorder %s4189_s19, 2  ;;  %p261_p4 = scmp.ne.s32.totalorder %s2993_s10, %s2989_s30 }
   0xf   : > { %p3124_p5 = por %p256_p2, %p255_p1  ;;  %p262_p6 = scmp.eq.s32.totalorder %s2406_s21, 3 }
  0x10   : > { %s4191_s19 = smov (%p40_p3, %s4189_s19), 0  ;;  %p2413_p8 = scmp.ge.s32.totalorder %s3017_s16, 1 }
  0x11   : > { %4138 = sst [smem:[#allocation11_spill]] %s4191_s19  ;;  %p3130_p7 = por %p262_p6, %p261_p4 }
  0x12   : > { %s2408_s25 = sshll.u32 %s4191_s19, 1  ;;  %p360_p9 = scmp.lt.s32.totalorder %s3017_s16, 5 }
  0x13   : > { %s241_s26 = sadd.s32 %s2408_s25, %s4187_s18  ;;  %s245_s27 = sadd.s32 1, %s2997_s11 }
  0x14   : > { %s242_s28 = ssub.s32 %s239_s22, %s241_s26  ;;  %p361_p10 = pnand %p2413_p8, %p360_p9 }
  0x15   : > { %p243_p11 = scmp.eq.s32.totalorder %s242_s28, 0 }
  0x16   : > { %364 = sbr.rel (%p361_p10) target bundleno = 505 (0x1f9), region = 48 }
  0x17   : > { %s3140_s29 = scalar_select %p243_p11, %s2997_s11, %s245_s27  }
  0x1b   : > { %v2430_v0 = vld [vmem:[%s4124_s5 + $0x4] sm:$0xf]  ;;  %vm821_vm0 = vcmask 1043456   ;;  %s2414_s21 = sshll.u32 %s3001_s12, 3  ;;  %p433_p12 = scmp.lt.s32.totalorder %s3005_s13, 1  ;;  %vm623_vm1 = vcmask 1040384  }
  0x1c   : > { %2810 = vmatprep.subr.msk.bf16.mxu1 %vm821_vm0, %v2430_v0  ;;  %v823_v1 = vsel %vm821_vm0, %v2430_v0, 0  ;;  %2809 = vmatprep.subr.msk.bf16.mxu0 %vm821_vm0, %v2430_v0  ;;  %p435_p13 = scmp.lt.s32.totalorder %s2414_s21, 15  ;;  %v712_v2 = vld [vmem:[%s4124_s5] sm:$0xf]  ;;  %v3160_v3 = vld [vmem:[%s4124_s5 + $0x8] sm:$0xf] }
  0x1d   : > { %2808 = vmatpush3.bf16.msra.mxu1 %v823_v1  ;;  %2646 = vmatpush3.bf16.msra.mxu0 %v823_v1  ;;  %s3151_s22 = scalar_select %p433_p12, %s3005_s13, 1  ;;  %v3178_v4 = vld [vmem:[%s4122_s3] ss:$0 sm:$0xff]  ;;  %vm729_vm2 = vcmask 1046528   ;;  %v3206_v21 = vsel %vm821_vm0, %v712_v2, 0  ;;  %vm796_vm3 = vcmask 64512  }
  0x1e   : > { %s4193_s21 = smov (!%p435_p13, %s2414_s21), 15  ;;  %2811 = vmatprep.subr.msk.bf16.mxu1 %vm821_vm0, %v712_v2  ;;  %2812 = vmatprep.subr.msk.bf16.mxu0 %vm821_vm0, %v3160_v3  ;;  %p445_p0 = scmp.lt.s32.totalorder %s3001_s12, 1  ;;  %v3195_v13 = vld [vmem:[%s4123_s4] ss:$0 sm:$0xff]  ;;  %vm1046_vm4 = vcmask 1045504   ;;  %vm2163_vm5 = vcmask 57344  }
  0x1f   : > { %s2416_s17 = sshll.u32 %s3151_s22, 5  ;;  %s2415_s20 = sshll.u32 %s4193_s21, 1 }
  0x20   : > { %s3166_s25 = sadd.s32 %s2416_s17, %s2415_s20  ;;  %p571_p1 = scmp.gt.s32.totalorder %s3001_s12, 0 }
  0x21   : > { %s2417_s26 = sshll.u32 %s3166_s25, 2  ;;  %s2419_s21 = sshll.u32 %s3151_s22, 2 }
  0x22   : > { %s3173_s15 = scalar_lea.vmem %s4119_s0, %s2417_s26 }
  0x23   : > { %v2559_v5 = vld [vmem:[%s3173_s15 + $0x18] sm:$0xff]   ;;  %s446_s28 = scalar_select %p445_p0, %s3001_s12, 1  ;;  %v2560_v6 = vld [vmem:[%s3173_s15 + $0x20] sm:$0xff]   ;;  %v3190_v12 = vld [vmem:[%s3173_s15 + $0x28] sm:$0xff]  }
  0x24   : > { %v2518_v7 = vld [vmem:[%s3173_s15] sm:$0xff]   ;;  %v2531_v8 = vunpack.c.l.bf16 %v2559_v5  ;;  %v2532_v9 = vunpack.c.h.bf16 %v2559_v5  ;;  %s3187_s18 = scalar_select %p571_p1, 1, 0  ;;  %v2535_v10 = vunpack.c.l.bf16 %v2560_v6  ;;  %v2536_v11 = vunpack.c.h.bf16 %v2560_v6 }
  0x25   : > { %s2418_s22 = sshll.u32 %s446_s28, 1  ;;  %v2519_v14 = vunpack.c.l.bf16 %v2518_v7  ;;  %v2520_v15 = vunpack.c.h.bf16 %v2518_v7  ;;  %v2539_v16 = vunpack.c.l.bf16 %v3190_v12  ;;  %v2540_v27 = vunpack.c.h.bf16 %v3190_v12 }
  0x26   : > { %v523_v17 = vmul.f32 %v2531_v8, %v3178_v4  ;;  %v524_v18 = vmul.f32 %v2532_v9, %v3178_v4  ;;  %s3200_s17 = sadd.s32 %s2419_s21, %s2418_s22  ;;  %v525_v19 = vmul.f32 %v2535_v10, %v3178_v4  ;;  %v526_v20 = vmul.f32 %v2536_v11, %v3178_v4  ;;  %s573_s28 = scvt.s32.f32 %s3187_s18 }
  0x27   : > { %s2420_s20 = sshll.u32 %s3200_s17, 2  ;;  %v517_v22 = vmul.f32 %v2519_v14, %v3178_v4  ;;  %v518_v23 = vmul.f32 %v2520_v15, %v3178_v4  ;;  %v527_v32 = vmul.f32 %v2539_v16, %v3178_v4 }
  0x28   : > { %v545_v24 = vadd.f32 %v3195_v13, %v523_v17  ;;  %v546_v25 = vadd.f32 %v3195_v13, %v524_v18  ;;  %s451_s21 = scalar_lea.vmem %s4120_s1, %s2420_s20  ;;  %v547_v26 = vadd.f32 %v3195_v13, %v525_v19  ;;  %v548_v29 = vadd.f32 %v3195_v13, %v526_v20 }
  0x29   : > { %v2550_v28 = vld [vmem:[%s451_s21] sm:$0xff]   ;;  %v539_v30 = vadd.f32 %v3195_v13, %v517_v22  ;;  %v540_v31 = vadd.f32 %v3195_v13, %v518_v23  ;;  %v587_v45 = vstv %s573_s28  ;;  %v528_v19 = vmul.f32 %v2540_v27, %v3178_v4  ;;  %v3288_v27 = vld [vmem:[%s4124_s5 + $0xc] sm:$0xf]  ;;  %s460_s21 = scalar_lea.vmem %s4121_s2, %s2420_s20  ;;  %s2511_s20 = sshll.u32 %s3005_s13, 1 }
  0x2a   : > { %v561_v33 = vmax.f32 %v545_v24, 0.0  ;;  %v562_v34 = vmax.f32 %v546_v25, 0.0  ;;  %v2551_v35 = vunpack.c.l.bf16 %v2550_v28  ;;  %v2552_v36 = vunpack.c.h.bf16 %v2550_v28  ;;  %s3444_s17 = scalar_select %p445_p0, 1, 0 }
  0x2b   : > { %v563_v37 = vmax.f32 %v547_v26, 0.0  ;;  %v564_v38 = vmax.f32 %v548_v29, 0.0  ;;  %v555_v39 = vmax.f32 %v539_v30, 0.0  ;;  %v556_v40 = vmax.f32 %v540_v31, 0.0  ;;  %v2557_v30 = vld [vmem:[%s3173_s15 + $0x8] sm:$0xff]   ;;  %s4010_s19 = sadd.s32 %s3001_s12, %s2511_s20 }
  0x2c   : > { %v636_v41 = vrot.slane %v561_v33, 7  ;;  %v637_v42 = vrot.slane %v562_v34, 7  ;;  %v581_v43 = vmul.f32 %v2551_v35, %v3178_v4  ;;  %v582_v44 = vmul.f32 %v2552_v36, %v3178_v4  ;;  %s576_s14 = scvt.s32.f32 %s3444_s17  ;;  %s4133_s22 = sshll.u32 %s4010_s19, 4 }
  0x2d   : > { %v639_v46 = vrot.slane %v563_v37, 7  ;;  %v640_v47 = vrot.slane %v564_v38, 7  ;;  %v627_v48 = vrot.slane %v555_v39, 7  ;;  %v628_v56 = vrot.slane %v556_v40, 7  ;;  %s4019_s28 = scalar_lea.hbm %s4127_s8, %s4133_s22 }
  0x2e   : > { %v3227_v49 = vsel %vm623_vm1, %v636_v41, %v637_v42  ;;  %v3230_v50 = vsel %vm623_vm1, 0.0, %v636_v41  ;;  %v3233_v51 = vsel %vm623_vm1, %v637_v42, 0.0  ;;  %v583_v52 = vadd.f32 %v3195_v13, %v581_v43  ;;  %v2558_v43 = vld [vmem:[%s3173_s15 + $0x10] sm:$0xff]  }
  0x2f   : > { %v750_v53 = vrot.slane %v3230_v50, 1  ;;  %v751_v54 = vrot.slane %v3227_v49, 1  ;;  %v753_v55 = vrot.slane %v3233_v51, 1  ;;  %v584_v57 = vadd.f32 %v3195_v13, %v582_v44 }
  0x30   : > { %v585_v58 = vmax.f32 %v583_v52, 0.0  ;;  %v3241_v59 = vsel %vm623_vm1, %v639_v46, %v640_v47  ;;  %v3244_v60 = vsel %vm623_vm1, 0.0, %v639_v46  ;;  %v3249_v63 = vsel %vm623_vm1, %v640_v47, 0.0 }
  0x31   : > { %v752_v61 = vsel %vm729_vm2, %v750_v53, %v751_v54  ;;  %v754_v62 = vsel %vm729_vm2, %v751_v54, %v753_v55  ;;  %v755_v0 = vrot.slane %v3244_v60, 1  ;;  %v586_v2 = vmax.f32 %v584_v57, 0.0 }
  0x32   : > { %v3252_v1 = vpack.c.bf16 %v754_v62, %v752_v61  ;;  %v588_v5 = vmul.f32 %v587_v45, %v585_v58  ;;  %v756_v6 = vrot.slane %v3241_v59, 1  ;;  %v758_v7 = vrot.slane %v3249_v63, 1 }
  0x33   : > { %v3257_v8 = vsel %vm623_vm1, %v627_v48, %v628_v56  ;;  %v3260_v9 = vsel %vm623_vm1, 0.0, %v627_v48  ;;  %v3263_v10 = vsel %vm623_vm1, %v628_v56, 0.0  ;;  %v589_v11 = vmul.f32 %v587_v45, %v586_v2  ;;  %v3325_v2 = vld [vmem:[%s4124_s5 + $0x10] sm:$0xf] }
  0x34   : > { %2655 = vmatprep.mubr.msk.bf16.mxu1 %vm796_vm3, %v3252_v1  ;;  %v624_v12 = vrot.slane %v588_v5, 7  ;;  %v757_v14 = vsel %vm729_vm2, %v755_v0, %v756_v6  ;;  %v735_v15 = vrot.slane %v3260_v9, 1  ;;  %v759_v16 = vsel %vm729_vm2, %v756_v6, %v758_v7 }
  0x35   : > { %v736_v17 = vrot.slane %v3257_v8, 1  ;;  %v738_v18 = vrot.slane %v3263_v10, 1  ;;  %v625_v20 = vrot.slane %v589_v11, 7  ;;  %v3276_v23 = vpack.c.bf16 %v759_v16, %v757_v14 }
  0x36   : > { %v3274_v22 = vsel %vm623_vm1, 0.0, %v624_v12  ;;  %v549_v24 = vadd.f32 %v3195_v13, %v527_v32  ;;  %v1138_v29 = vsel %vm821_vm0, %v3160_v3, 0  ;;  %v2562_v3 = vld [vmem:[%s3173_s15 + $0x30] sm:$0xff]   ;;  %v550_v39 = vadd.f32 %v3195_v13, %v528_v19 }
  0x37   : > { %v730_v25 = vrot.slane %v3274_v22, 1  ;;  %v737_v26 = vsel %vm729_vm2, %v735_v15, %v736_v17  ;;  %v739_v28 = vsel %vm729_vm2, %v736_v17, %v738_v18  ;;  %v3291_v31 = vsel %vm623_vm1, %v624_v12, %v625_v20  ;;  %2656 = vmatmul.mubr.msk.bf16.vlgmr.msra.gmra.mxu1 %vm796_vm3, %v3276_v23 }
  0x38   : > { %v3294_v32 = vsel %vm623_vm1, %v625_v20, 0.0  ;;  %v1047_v33 = vrot.slane %v3274_v22, 2  ;;  %v3299_v34 = vpack.c.bf16 %v739_v28, %v737_v26  ;;  %v731_v35 = vrot.slane %v3291_v31, 1  ;;  %2664 = vmatpush3.bf16.msra.mxu1 %v3206_v21 }
  0x39   : > { %v733_v36 = vrot.slane %v3294_v32, 1  ;;  %v1048_v37 = vrot.slane %v3291_v31, 2  ;;  %v1050_v38 = vrot.slane %v3294_v32, 2  ;;  %v565_v40 = vmax.f32 %v549_v24, 0.0  ;;  %2813 = vmatprep.subr.msk.bf16.mxu1 %vm821_vm0, %v3288_v27 }
  0x3a   : > { %v2523_v41 = vunpack.c.l.bf16 %v2557_v30  ;;  %v2524_v42 = vunpack.c.h.bf16 %v2557_v30  ;;  %v732_v44 = vsel %vm729_vm2, %v730_v25, %v731_v35  ;;  %v2543_v46 = vunpack.c.l.bf16 %v2562_v3 }
  0x3b   : > { %v734_v45 = vsel %vm729_vm2, %v731_v35, %v733_v36  ;;  %v2544_v47 = vunpack.c.h.bf16 %v2562_v3  ;;  %v566_v52 = vmax.f32 %v550_v39, 0.0  ;;  %v642_v53 = vrot.slane %v565_v40, 7 }
  0x3c   : > { %v786_v48 = vpack.c.bf16 %v734_v45, %v732_v44  ;;  %v519_v21 = vmul.f32 %v2523_v41, %v3178_v4  ;;  %v520_v54 = vmul.f32 %v2524_v42, %v3178_v4  ;;  %v529_v55 = vmul.f32 %v2543_v46, %v3178_v4 }
  0x3d   : > { %v530_v56 = vmul.f32 %v2544_v47, %v3178_v4  ;;  %v2527_v57 = vunpack.c.l.bf16 %v2558_v43  ;;  %v643_v58 = vrot.slane %v566_v52, 7  ;;  %v3319_v61 = vsel %vm623_vm1, 0.0, %v642_v53 }
  0x3e   : > { %2647 = vmatprep.mubr.msk.bf16.mxu0 %vm796_vm3, %v786_v48  ;;  %v541_v62 = vadd.f32 %v3195_v13, %v519_v21  ;;  %v2528_v0 = vunpack.c.h.bf16 %v2558_v43  ;;  %v760_v5 = vrot.slane %v3319_v61, 1  ;;  %v542_v6 = vadd.f32 %v3195_v13, %v520_v54 }
  0x3f   : > { %2648 = vmatmul.mubr.msk.bf16.vlgmr.msra.gmra.mxu0 %vm796_vm3, %v3299_v34  ;;  %v551_v7 = vadd.f32 %v3195_v13, %v529_v55  ;;  %v552_v11 = vadd.f32 %v3195_v13, %v530_v56  ;;  %v3334_v12 = vsel %vm623_vm1, %v642_v53, %v643_v58  ;;  %v3337_v14 = vsel %vm623_vm1, %v643_v58, 0.0 }
  0x40   : > { %2682 = vmatpush3.bf16.msra.mxu0 %v1138_v29  ;;  %v557_v15 = vmax.f32 %v541_v62, 0.0  ;;  %v521_v16 = vmul.f32 %v2527_v57, %v3178_v4  ;;  %v761_v17 = vrot.slane %v3334_v12, 1  ;;  %v763_v18 = vrot.slane %v3337_v14, 1 }
  0x41   : > { %v558_v19 = vmax.f32 %v542_v6, 0.0  ;;  %v567_v20 = vmax.f32 %v551_v7, 0.0  ;;  %2814 = vmatprep.subr.msk.bf16.mxu0 %vm821_vm0, %v3325_v2  ;;  %v568_v25 = vmax.f32 %v552_v11, 0.0  ;;  %v522_v26 = vmul.f32 %v2528_v0, %v3178_v4 }
  0x42   : > { %v630_v24 = vrot.slane %v557_v15, 7  ;;  %v543_v28 = vadd.f32 %v3195_v13, %v521_v16  ;;  %v762_v29 = vsel %vm729_vm2, %v760_v5, %v761_v17  ;;  %v764_v30 = vsel %vm729_vm2, %v761_v17, %v763_v18 }
  0x43   : > { %v631_v3 = vrot.slane %v558_v19, 7  ;;  %v645_v35 = vrot.slane %v567_v20, 7  ;;  %v3348_v36 = vpack.c.bf16 %v764_v30, %v762_v29  ;;  %v646_v40 = vrot.slane %v568_v25, 7 }
  0x44   : > { %v686_v39 = vsel %vm623_vm1, 0.0, %v630_v24  ;;  %v544_v41 = vadd.f32 %v3195_v13, %v522_v26  ;;  %v559_v55 = vmax.f32 %v543_v28, 0.0  ;;  %v704_v62 = vpack.c.bf16 %v3291_v31, %v3274_v22 }
  0x45   : > { %v632_v42 = vsel %vm623_vm1, %v630_v24, %v631_v3  ;;  %v696_v43 = vsel %vm623_vm1, %v631_v3, 0.0  ;;  %v740_v44 = vrot.slane %v686_v39, 1  ;;  %v3355_v45 = vsel %vm623_vm1, 0.0, %v645_v35  ;;  %2659 = vmatprep.mubr.msk.bf16.mxu1 %vm796_vm3, %v3348_v36 }
  0x46   : > { %v741_v46 = vrot.slane %v632_v42, 1  ;;  %v743_v47 = vrot.slane %v696_v43, 1  ;;  %v3360_v48 = vsel %vm623_vm1, %v645_v35, %v646_v40  ;;  %v3363_v52 = vsel %vm623_vm1, %v646_v40, 0.0 }
  0x47   : > { %v765_v53 = vrot.slane %v3355_v45, 1  ;;  %v766_v21 = vrot.slane %v3360_v48, 1  ;;  %v768_v54 = vrot.slane %v3363_v52, 1  ;;  %v560_v58 = vmax.f32 %v544_v41, 0.0 }
  0x48   : > { %v742_v56 = vsel %vm729_vm2, %v740_v44, %v741_v46  ;;  %v744_v57 = vsel %vm729_vm2, %v741_v46, %v743_v47  ;;  %v633_v7 = vrot.slane %v559_v55, 7  ;;  %v1052_v16 = vrot.slane %v3260_v9, 2 }
  0x49   : > { %v3372_v0 = vpack.c.bf16 %v744_v57, %v742_v56  ;;  %v767_v5 = vsel %vm729_vm2, %v765_v53, %v766_v21  ;;  %v769_v6 = vsel %vm729_vm2, %v766_v21, %v768_v54  ;;  %v634_v15 = vrot.slane %v560_v58, 7  ;;  %v2554_v56 = vld [vmem:[%s460_s21] sm:$0xff]   ;;  %s2427_s21 = sshll.u32 %s3166_s25, 3  ;;  %s3019_s25 = smov [#allocation2]  }
  0x4a   : > { %v3376_v11 = vpack.c.bf16 %v769_v6, %v767_v5  ;;  %v687_v17 = vsel %vm623_vm1, 0.0, %v633_v7  ;;  %v1049_v18 = vsel %vm1046_vm4, %v1047_v33, %v1048_v37  ;;  %v1051_v25 = vsel %vm1046_vm4, %v1048_v37, %v1050_v38  ;;  %s2899_s17 = sshll.u32 %s3019_s25, 4  ;;  %s2900_s17 = int_to_ptr.vmem [resolvable:$false] %s2899_s17 }
  0x4b   : > { %2651 = vmatprep.mubr.msk.bf16.mxu0 %vm796_vm3, %v3372_v0  ;;  %v635_v19 = vsel %vm623_vm1, %v633_v7, %v634_v15  ;;  %v697_v20 = vsel %vm623_vm1, %v634_v15, 0.0  ;;  %v745_v24 = vrot.slane %v687_v17, 1  ;;  %v1053_v26 = vrot.slane %v3257_v8, 2 }
  0x4c   : > { %2660 = vmatmul.mubr.msk.bf16.gmra.mxu1 %vm796_vm3, %v3376_v11  ;;  %v1055_v22 = vrot.slane %v3263_v10, 2  ;;  %v746_v28 = vrot.slane %v635_v19, 1  ;;  %v748_v33 = vrot.slane %v697_v20, 1  ;;  %v1057_v29 = vrot.slane %v686_v39, 2 }
  0x4d   : > { %2665 = vmatprep.mubr.msk.bf16.mxu1 %vm796_vm3, %v704_v62  ;;  %v1058_v30 = vrot.slane %v632_v42, 2  ;;  %v1060_v3 = vrot.slane %v696_v43, 2  ;;  %v1103_v40 = vpack.c.bf16 %v1051_v25, %v1049_v18  ;;  %v3405_v37 = vpack.c.bf16 %v3257_v8, %v3260_v9 }
  0x4e   : > { %v747_v35 = vsel %vm729_vm2, %v745_v24, %v746_v28  ;;  %v749_v32 = vsel %vm729_vm2, %v746_v28, %v748_v33  ;;  %v1260_v10 = vsel %vm821_vm0, %v3288_v27, 0  ;;  %v1054_v38 = vsel %vm1046_vm4, %v1052_v16, %v1053_v26  ;;  %v3426_v27 = vld [vmem:[%s4124_s5 + $0x14] sm:$0xf]  ;;  %v3468_v24 = vld [vmem:[%s4124_s5 + $0x18] sm:$0xf] }
  0x4f   : > { %v3401_v31 = vpack.c.bf16 %v749_v32, %v747_v35  ;;  %v1056_v41 = vsel %vm1046_vm4, %v1053_v26, %v1055_v22  ;;  %v3411_v43 = vpack.c.bf16 %v632_v42, %v686_v39  ;;  %v1062_v44 = vrot.slane %v687_v17, 2  ;;  %v2563_v42 = vld [vmem:[%s3173_s15 + $0x38] sm:$0xff]   ;;  %s3830_s15 = scalar_lea.vmem %s4126_s7, %s2427_s21 }
  0x50   : > { %v1059_v46 = vsel %vm1046_vm4, %v1057_v29, %v1058_v30  ;;  %v1061_v8 = vsel %vm1046_vm4, %v1058_v30, %v1060_v3  ;;  %v1063_v9 = vrot.slane %v635_v19, 2  ;;  %v1065_v47 = vrot.slane %v697_v20, 2 }
  0x51   : > { %2652 = vmatmul.mubr.msk.bf16.gmra.mxu0 %vm796_vm3, %v3401_v31  ;;  %v1391_v39 = vsel %vm821_vm0, %v3325_v2, 0  ;;  %v1070_v53 = vrot.slane %v3233_v51, 2  ;;  %v3434_v21 = vpack.c.bf16 %v1056_v41, %v1054_v38  ;;  %v3438_v54 = vpack.c.bf16 %v635_v19, %v687_v17 }
  0x52   : > { %2683 = vmatprep.mubr.msk.bf16.mxu0 %vm796_vm3, %v1103_v40  ;;  %v3440_v55 = vpack.c.bf16 %v1061_v8, %v1059_v46  ;;  %v1064_v57 = vsel %vm1046_vm4, %v1062_v44, %v1063_v9  ;;  %v1066_v2 = vsel %vm1046_vm4, %v1063_v9, %v1065_v47  ;;  %v1067_v51 = vrot.slane %v3230_v50, 2 }
  0x53   : > { %v1068_v58 = vrot.slane %v3227_v49, 2  ;;  %v1072_v62 = vrot.slane %v3244_v60, 2  ;;  %v1073_v5 = vrot.slane %v3241_v59, 2  ;;  %v2547_v6 = vunpack.c.l.bf16 %v2563_v42 }
  0x54   : > { %2666 = vmatmul.mubr.msk.bf16.vlgmr.msra.gmra.mxu1 %vm796_vm3, %v3405_v37  ;;  %v2548_v7 = vunpack.c.h.bf16 %v2563_v42  ;;  %v3456_v15 = vpack.c.bf16 %v3227_v49, %v3230_v50  ;;  %v1075_v16 = vrot.slane %v3249_v63, 2  ;;  %v2555_v17 = vunpack.c.l.bf16 %v2554_v56 }
  0x55   : > { %2700 = vmatpush3.bf16.msra.mxu1 %v1260_v10  ;;  %2669 = vmatprep.mubr.msk.bf16.mxu1 %vm796_vm3, %v3411_v43  ;;  %v2556_v18 = vunpack.c.h.bf16 %v2554_v56  ;;  %v3459_v19 = vpack.c.bf16 %v1066_v2, %v1064_v57  ;;  %v3463_v20 = vpack.c.bf16 %v3241_v59, %v3244_v60  ;;  %v531_v25 = vmul.f32 %v2547_v6, %v3178_v4 }
  0x56   : > { %2815 = vmatprep.subr.msk.bf16.mxu1 %vm821_vm0, %v3426_v27  ;;  %v532_v49 = vmul.f32 %v2548_v7, %v3178_v4  ;;  %v1069_v50 = vsel %vm1046_vm4, %v1067_v51, %v1068_v58  ;;  %v1071_v63 = vsel %vm1046_vm4, %v1068_v58, %v1070_v53  ;;  %v594_v59 = vmul.f32 %v2555_v17, %v3178_v4 }
  0x57   : > { %v595_v60 = vmul.f32 %v2556_v18, %v3178_v4  ;;  %v1074_v26 = vsel %vm1046_vm4, %v1072_v62, %v1073_v5  ;;  %v1077_v22 = vrot.slane %v3319_v61, 2  ;;  %v553_v28 = vadd.f32 %v3195_v13, %v531_v25 }
  0x58   : > { %v554_v33 = vadd.f32 %v3195_v13, %v532_v49  ;;  %v1076_v29 = vsel %vm1046_vm4, %v1073_v5, %v1075_v16  ;;  %v1078_v30 = vrot.slane %v3334_v12, 2  ;;  %v596_v4 = vadd.f32 %v3195_v13, %v594_v59 }
  0x59   : > { %2684 = vmatmul.mubr.msk.bf16.vlgmr.msra.gmra.mxu0 %vm796_vm3, %v3434_v21  ;;  %v597_v3 = vadd.f32 %v3195_v13, %v595_v60  ;;  %v1080_v35 = vrot.slane %v3337_v14, 2  ;;  %v569_v32 = vmax.f32 %v553_v28, 0.0  ;;  %v600_v10 = vstv %s576_s14  ;;  %s4007_s14 = sand.u32 1, %s2993_s10  }
  0x5a   : > { %2718 = vmatpush3.bf16.msra.mxu0 %v1391_v39  ;;  %2687 = vmatprep.mubr.msk.bf16.mxu0 %vm796_vm3, %v3440_v55  ;;  %v570_v40 = vmax.f32 %v554_v33, 0.0  ;;  %v3496_v38 = vpack.c.bf16 %v1071_v63, %v1069_v50  ;;  %v3500_v41 = vpack.c.bf16 %v3334_v12, %v3319_v61  ;;  %v598_v44 = vmax.f32 %v596_v4, 0.0  ;;  %s425_s26 = scalar_lea.vmem [#allocation2], %s4007_s14  ;;  %s2177_s12 = scalar_lea.sflag [#allocation3], %s4007_s14 }
  0x5b   : > { %2816 = vmatprep.subr.msk.bf16.mxu0 %vm821_vm0, %v3468_v24  ;;  %v599_v46 = vmax.f32 %v597_v3, 0.0  ;;  %v3502_v8 = vpack.c.bf16 %v1076_v29, %v1074_v26  ;;  %v1082_v13 = vrot.slane %v3355_v45, 2  ;;  %v648_v9 = vrot.slane %v569_v32, 7  ;;  %s2199_s27 = sshll.u32 %s425_s26, 4  ;;  %s2200_s27 = int_to_ptr.vmem [resolvable:$true] %s2199_s27 }
  0x5c   : > { %2670 = vmatmul.mubr.msk.bf16.gmra.mxu1 %vm796_vm3, %v3438_v54  ;;  %v649_v47 = vrot.slane %v570_v40, 7  ;;  %v1079_v39 = vsel %vm1046_vm4, %v1077_v22, %v1078_v30  ;;  %v1083_v14 = vrot.slane %v3360_v48, 2  ;;  %v601_v42 = vmul.f32 %v600_v10, %v598_v44  ;;  %s2895_s18 = scalar_lea.vmem %s2200_s27, 16  ;;  %p2902_p6 = scmp.lt.s32.totalorder %s2200_s27, %s2900_s17 }
  0x5d   : > { %2673 = vmatprep.mubr.msk.bf16.mxu1 %vm796_vm3, %v3456_v15  ;;  %v602_v53 = vmul.f32 %v600_v10, %v599_v46  ;;  %v1081_v56 = vsel %vm1046_vm4, %v1078_v30, %v1080_v35  ;;  %v692_v61 = vsel %vm623_vm1, 0.0, %v648_v9  ;;  %v1085_v18 = vrot.slane %v3363_v52, 2  ;;  %p2896_p2 = scmp.ne.s32.totalorder %s2200_s27, %s2895_s18 }
  0x5e   : > { %v650_v57 = vsel %vm623_vm1, %v648_v9, %v649_v47  ;;  %v702_v12 = vsel %vm623_vm1, %v649_v47, 0.0  ;;  %v1377_v51 = vrot.slane %v692_v61, 1  ;;  %v1506_v62 = vrot.slane %v692_v61, 2 }
  0x5f   : > { %v3513_v2 = vpack.c.bf16 %v650_v57, %v692_v61  ;;  %v1378_v58 = vrot.slane %v650_v57, 1  ;;  %v1507_v5 = vrot.slane %v650_v57, 2  ;;  %v1380_v6 = vrot.slane %v702_v12, 1  ;;  %p2897_p3 = pnand %p2896_p2, %p3124_p5 }
  0x60   : > { %v1509_v7 = vrot.slane %v702_v12, 2  ;;  %v651_v16 = vrot.slane %v601_v42, 7  ;;  %v3519_v17 = vpack.c.bf16 %v1081_v56, %v1079_v39  ;;  %v652_v49 = vrot.slane %v602_v53, 7  ;;  %v2492_v42 = vld [vmem:[%s4124_s5 + $0x1c] sm:$0xf] }
  0x61   : > { %2688 = vmatmul.mubr.msk.bf16.gmra.mxu0 %vm796_vm3, %v3459_v19  ;;  %v1379_v25 = vsel %vm729_vm2, %v1377_v51, %v1378_v58  ;;  %v1381_v50 = vsel %vm729_vm2, %v1378_v58, %v1380_v6  ;;  %v1508_v63 = vsel %vm1046_vm4, %v1506_v62, %v1507_v5  ;;  %v711_v3 = vpack.c.bf16 %v3360_v48, %v3355_v45  ;;  %p2898_p4 = pneg %p2897_p3 }
  0x62   : > { %2691 = vmatprep.mubr.msk.bf16.mxu0 %vm796_vm3, %v3496_v38  ;;  %v1510_v59 = vsel %vm1046_vm4, %v1507_v5, %v1509_v7  ;;  %v3529_v60 = vsel %vm623_vm1, 0.0, %v651_v16  ;;  %v3531_v26 = vpack.c.bf16 %v1381_v50, %v1379_v25  ;;  %v3536_v52 = vsel %vm623_vm1, %v651_v16, %v652_v49 }
  0x63   : > { %v3533_v22 = vpack.c.bf16 %v1510_v59, %v1508_v63  ;;  %v1759_v28 = vrot.slane %v3529_v60, 1  ;;  %v1635_v33 = vpack.c.bf16 %v3536_v52, %v3529_v60  ;;  %v1760_v29 = vrot.slane %v3536_v52, 1 }
  0x64   : > { %2674 = vmatmul.mubr.msk.bf16.gmra.mxu1 %vm796_vm3, %v3463_v20  ;;  %v1888_v30 = vrot.slane %v3529_v60, 2  ;;  %v1889_v4 = vrot.slane %v3536_v52, 2  ;;  %v703_v35 = vsel %vm623_vm1, %v652_v49, 0.0  ;;  %v1084_v46 = vsel %vm1046_vm4, %v1082_v13, %v1083_v14 }
  0x65   : > { %2677 = vmatprep.mubr.msk.bf16.mxu1 %vm796_vm3, %v3500_v41  ;;  %v3548_v32 = vsel %vm729_vm2, %v1759_v28, %v1760_v29  ;;  %v1762_v40 = vrot.slane %v703_v35, 1  ;;  %v1891_v44 = vrot.slane %v703_v35, 2  ;;  %v1086_v45 = vsel %vm1046_vm4, %v1083_v14, %v1085_v18 }
  0x66   : > { %v3551_v10 = vsel %vm1046_vm4, %v1888_v30, %v1889_v4  ;;  %v1110_v13 = vpack.c.bf16 %v1086_v45, %v1084_v46  ;;  %v1520_v14 = vsel %vm821_vm0, %v3426_v27, 0  ;;  %v1773_v27 = vsel %vm821_vm0, %v2492_v42, 0 }
  0x67   : > { %v3560_v48 = vsel %vm729_vm2, %v1760_v29, %v1762_v40  ;;  %v3563_v9 = vsel %vm1046_vm4, %v1889_v4, %v1891_v44 }
  0x68   : > { %v1766_v47 = vpack.c.bf16 %v3560_v48, %v3548_v32  ;;  %v1895_v39 = vpack.c.bf16 %v3563_v9, %v3551_v10 }
  0x69   : > { %2692 = vmatmul.mubr.msk.bf16.gmra.mxu0 %vm796_vm3, %v3502_v8 }
  0x6a   : > { %2695 = vmatprep.mubr.msk.bf16.mxu0 %vm796_vm3, %v3519_v17 }
  0x6c   : > { %2678 = vmatmul.mubr.msk.bf16.gmra.mxu1 %vm796_vm3, %v711_v3 }
  0x6d   : > { %2701 = vmatprep.mubr.msk.bf16.mxu1 %vm796_vm3, %v3405_v37  ;;  %v1642_v37 = vsel %vm821_vm0, %v3468_v24, 0 }
  0x71   : > { %2696 = vmatmul.mubr.msk.bf16.gmra.mxu0 %vm796_vm3, %v1110_v13 }
  0x72   : > { %2719 = vmatprep.mubr.msk.bf16.mxu0 %vm796_vm3, %v3299_v34  ;;  %v2501_v34 = vld [vmem:[%s4124_s5 + $0x20] sm:$0xf] }
  0x73   : > { %v1902_v24 = vsel %vm821_vm0, %v2501_v34, 0 }
  0x74   : > { %2702 = vmatmul.mubr.msk.bf16.vlgmr.msra.gmra.mxu1 %vm796_vm3, %v3411_v43 }
  0x75   : > { %2736 = vmatpush3.bf16.msra.mxu1 %v1520_v14  ;;  %2705 = vmatprep.mubr.msk.bf16.mxu1 %vm796_vm3, %v3438_v54 }
  0x76   : > { %2817 = vmatprep.subr.msk.bf16.mxu1 %vm821_vm0, %v2492_v42 }
  0x79   : > { %2720 = vmatmul.mubr.msk.bf16.vlgmr.msra.gmra.mxu0 %vm796_vm3, %v3372_v0 }
  0x7a   : > { %2754 = vmatpush3.bf16.msra.mxu0 %v1642_v37  ;;  %2723 = vmatprep.mubr.msk.bf16.mxu0 %vm796_vm3, %v3401_v31 }
  0x7b   : > { %2818 = vmatprep.subr.msk.bf16.mxu0 %vm821_vm0, %v2501_v34 }
  0x7c   : > { %2706 = vmatmul.mubr.msk.bf16.gmra.mxu1 %vm796_vm3, %v3456_v15 }
  0x7d   : > { %2709 = vmatprep.mubr.msk.bf16.mxu1 %vm796_vm3, %v3463_v20 }
  0x81   : > { %2724 = vmatmul.mubr.msk.bf16.gmra.mxu0 %vm796_vm3, %v3252_v1 }
  0x82   : > { %2727 = vmatprep.mubr.msk.bf16.mxu0 %vm796_vm3, %v3276_v23 }
  0x84   : > { %2710 = vmatmul.mubr.msk.bf16.gmra.mxu1 %vm796_vm3, %v3500_v41 }
  0x85   : > { %2713 = vmatprep.mubr.msk.bf16.mxu1 %vm796_vm3, %v711_v3 }
  0x89   : > { %2728 = vmatmul.mubr.msk.bf16.gmra.mxu0 %vm796_vm3, %v3348_v36 }
  0x8a   : > { %2731 = vmatprep.mubr.msk.bf16.mxu0 %vm796_vm3, %v3376_v11 }
  0x8c   : > { %2714 = vmatmul.mubr.msk.bf16.gmra.mxu1 %vm796_vm3, %v3513_v2 }
  0x8d   : > { %2737 = vmatprep.mubr.msk.bf16.mxu1 %vm796_vm3, %v3434_v21 }
  0x91   : > { %2732 = vmatmul.mubr.msk.bf16.gmra.mxu0 %vm796_vm3, %v3531_v26 }
  0x92   : > { %2755 = vmatprep.mubr.msk.bf16.mxu0 %vm796_vm3, %v3411_v43 }
  0x94   : > { %2738 = vmatmul.mubr.msk.bf16.vlgmr.msra.gmra.mxu1 %vm796_vm3, %v3440_v55 }
  0x95   : > { %2772 = vmatpush3.bf16.msra.mxu1 %v1773_v27  ;;  %2741 = vmatprep.mubr.msk.bf16.mxu1 %vm796_vm3, %v3459_v19 }
  0x99   : > { %2756 = vmatmul.mubr.msk.bf16.vlgmr.msra.gmra.mxu0 %vm796_vm3, %v3438_v54 }
  0x9a   : > { %2790 = vmatpush3.bf16.msra.mxu0 %v1902_v24  ;;  %2759 = vmatprep.mubr.msk.bf16.mxu0 %vm796_vm3, %v3456_v15 }
  0x9c   : > { %2742 = vmatmul.mubr.msk.bf16.gmra.mxu1 %vm796_vm3, %v3496_v38 }
  0x9d   : > { %2745 = vmatprep.mubr.msk.bf16.mxu1 %vm796_vm3, %v3502_v8 }
  0xa1   : > { %2760 = vmatmul.mubr.msk.bf16.gmra.mxu0 %vm796_vm3, %v3463_v20 }
  0xa2   : > { %2763 = vmatprep.mubr.msk.bf16.mxu0 %vm796_vm3, %v3500_v41 }
  0xa4   : > { %2746 = vmatmul.mubr.msk.bf16.gmra.mxu1 %vm796_vm3, %v3519_v17 }
  0xa5   : > { %2749 = vmatprep.mubr.msk.bf16.mxu1 %vm796_vm3, %v1110_v13 }
  0xa9   : > { %2764 = vmatmul.mubr.msk.bf16.gmra.mxu0 %vm796_vm3, %v711_v3 }
  0xaa   : > { %2767 = vmatprep.mubr.msk.bf16.mxu0 %vm796_vm3, %v3513_v2 }
  0xac   : > { %2750 = vmatmul.mubr.msk.bf16.gmra.mxu1 %vm796_vm3, %v3533_v22 }
  0xad   : > { %2773 = vmatprep.mubr.msk.bf16.mxu1 %vm796_vm3, %v3372_v0 }
  0xb1   : > { %2768 = vmatmul.mubr.msk.bf16.gmra.mxu0 %vm796_vm3, %v1635_v33 }
  0xb2   : > { %2791 = vmatprep.mubr.msk.bf16.mxu0 %vm796_vm3, %v3440_v55 }
  0xb4   : > { %2774 = vmatmul.mubr.msk.bf16.vlgmr.msra.gmra.mxu1 %vm796_vm3, %v3401_v31 }
  0xb5   : > { %2777 = vmatprep.mubr.msk.bf16.mxu1 %vm796_vm3, %v3252_v1 }
  0xb9   : > { %2792 = vmatmul.mubr.msk.bf16.vlgmr.msra.gmra.mxu0 %vm796_vm3, %v3459_v19 }
  0xba   : > { %2795 = vmatprep.mubr.msk.bf16.mxu0 %vm796_vm3, %v3496_v38 }
  0xbc   : > { %2778 = vmatmul.mubr.msk.bf16.gmra.mxu1 %vm796_vm3, %v3276_v23 }
  0xbd   : > { %2781 = vmatprep.mubr.msk.bf16.mxu1 %vm796_vm3, %v3348_v36 }
  0xc1   : > { %2796 = vmatmul.mubr.msk.bf16.gmra.mxu0 %vm796_vm3, %v3502_v8 }
  0xc2   : > { %2799 = vmatprep.mubr.msk.bf16.mxu0 %vm796_vm3, %v3519_v17 }
  0xc4   : > { %2782 = vmatmul.mubr.msk.bf16.gmra.mxu1 %vm796_vm3, %v3376_v11 }
  0xc5   : > { %2785 = vmatprep.mubr.msk.bf16.mxu1 %vm796_vm3, %v3531_v26 }
  0xc9   : > { %2800 = vmatmul.mubr.msk.bf16.gmra.mxu0 %vm796_vm3, %v1110_v13 }
  0xca   : > { %2803 = vmatprep.mubr.msk.bf16.mxu0 %vm796_vm3, %v3533_v22 }
  0xcc   : > { %2786 = vmatmul.mubr.msk.bf16.gmra.mxu1 %vm796_vm3, %v1766_v47 }
  0xd1   : > { %2804 = vmatmul.mubr.msk.bf16.gmra.mxu0 %vm796_vm3, %v1895_v39 }
  0xf7   : > { %v2657_v1 = vpop.f32.mrf.mxu1 }
  0xf9   : > { %v891_v23 = vpop.f32.mrf.mxu1 }
  0xfb   : > { %v2658_v0 = vpop.f32.mrf.mxu1 }
  0xfd   : > { %v894_v43 = vpop.f32.mrf.mxu1 }
  0xff   : > { %v2649_v36 = vpop.f32.mrf.mxu0 }
 0x101   : > { %v859_v31 = vpop.f32.mrf.mxu0 }
 0x103   : > { %v2650_v21 = vpop.f32.mrf.mxu0 }
 0x105   : > { %v862_v54 = vpop.f32.mrf.mxu0 }
 0x10c   : > { %v2661_v11 = vpop.f32.mrf.mxu1 }
 0x10e   : > { %v907_v55 = vpop.f32.mrf.mxu1 }
 0x110   : > { %v2662_v15 = vpop.f32.mrf.mxu1 }
 0x111   : > { %v2653_v19 = vpop.f32.mrf.mxu0 }
 0x112   : > { %v910_v20 = vpop.f32.mrf.mxu1 }
 0x113   : > { %v875_v38 = vpop.f32.mrf.mxu0 }
 0x114   : > { %v2667_v41 = vpop.f32.mrf.mxu1 }
 0x115   : > { %v992_v8 = vadd.f32 %v2667_v41, %v2649_v36  ;;  %v2654_v53 = vpop.f32.mrf.mxu0 }
 0x116   : > { %v983_v56 = vpop.f32.mrf.mxu1 }
 0x117   : > { %v984_v57 = vadd.f32 %v983_v56, %v859_v31  ;;  %v878_v61 = vpop.f32.mrf.mxu0 }
 0x118   : > { %v2668_v12 = vpop.f32.mrf.mxu1 }
 0x119   : > { %v995_v2 = vadd.f32 %v2668_v12, %v2650_v21  ;;  %v2685_v51 = vpop.f32.mrf.mxu0 }
 0x11a   : > { %v986_v58 = vpop.f32.mrf.mxu1  ;;  %v3677_v62 = vadd.f32 %v2685_v51, %v992_v8 }
 0x11b   : > { %v987_v5 = vadd.f32 %v986_v58, %v862_v54  ;;  %v1174_v6 = vpop.f32.mrf.mxu0 }
 0x11c   : > { %v2671_v7 = vpop.f32.mrf.mxu1  ;;  %v3679_v16 = vadd.f32 %v1174_v6, %v984_v57 }
 0x11d   : > { %v1008_v17 = vadd.f32 %v2671_v7, %v2653_v19  ;;  %v2686_v18 = vpop.f32.mrf.mxu0 }
 0x11e   : > { %v999_v25 = vpop.f32.mrf.mxu1  ;;  %v3681_v49 = vadd.f32 %v2686_v18, %v995_v2 }
 0x11f   : > { %v1000_v50 = vadd.f32 %v999_v25, %v875_v38  ;;  %v1177_v63 = vpop.f32.mrf.mxu0 }
 0x120   : > { %v2672_v59 = vpop.f32.mrf.mxu1  ;;  %v3683_v60 = vadd.f32 %v1177_v63, %v987_v5 }
 0x121   : > { %v1011_v26 = vadd.f32 %v2672_v59, %v2654_v53  ;;  %v2689_v22 = vpop.f32.mrf.mxu0 }
 0x122   : > { %v1002_v52 = vpop.f32.mrf.mxu1  ;;  %v3685_v28 = vadd.f32 %v2689_v22, %v1008_v17 }
 0x123   : > { %v1003_v33 = vadd.f32 %v1002_v52, %v878_v61  ;;  %v1190_v29 = vpop.f32.mrf.mxu0 }
 0x124   : > { %v2675_v30 = vpop.f32.mrf.mxu1  ;;  %v3687_v4 = vadd.f32 %v1190_v29, %v1000_v50 }
 0x125   : > { %v1024_v3 = vadd.f32 %v2675_v30, %v2657_v1  ;;  %v2690_v35 = vpop.f32.mrf.mxu0 }
 0x126   : > { %v1015_v32 = vpop.f32.mrf.mxu1  ;;  %v3689_v40 = vadd.f32 %v2690_v35, %v1011_v26 }
 0x127   : > { %v1016_v10 = vadd.f32 %v1015_v32, %v891_v23  ;;  %v1193_v44 = vpop.f32.mrf.mxu0 }
 0x128   : > { %v2676_v46 = vpop.f32.mrf.mxu1  ;;  %v3691_v45 = vadd.f32 %v1193_v44, %v1003_v33 }
 0x129   : > { %v1027_v48 = vadd.f32 %v2676_v46, %v2658_v0  ;;  %v2693_v9 = vpop.f32.mrf.mxu0 }
 0x12a   : > { %v1018_v47 = vpop.f32.mrf.mxu1  ;;  %v3693_v39 = vadd.f32 %v2693_v9, %v1024_v3 }
 0x12b   : > { %v1019_v13 = vadd.f32 %v1018_v47, %v894_v43  ;;  %v1206_v14 = vpop.f32.mrf.mxu0 }
 0x12c   : > { %v2679_v42 = vpop.f32.mrf.mxu1  ;;  %v3695_v37 = vadd.f32 %v1206_v14, %v1016_v10 }
 0x12d   : > { %v1040_v34 = vadd.f32 %v2679_v42, %v2661_v11  ;;  %v2694_v27 = vpop.f32.mrf.mxu0 }
 0x12e   : > { %v1031_v24 = vpop.f32.mrf.mxu1  ;;  %v3697_v1 = vadd.f32 %v2694_v27, %v1027_v48 }
 0x12f   : > { %v1032_v23 = vadd.f32 %v1031_v24, %v907_v55  ;;  %v1209_v36 = vpop.f32.mrf.mxu0 }
 0x130   : > { %v2680_v31 = vpop.f32.mrf.mxu1  ;;  %v3699_v21 = vadd.f32 %v1209_v36, %v1019_v13 }
 0x131   : > { %v1043_v0 = vadd.f32 %v2680_v31, %v2662_v15  ;;  %v2697_v54 = vpop.f32.mrf.mxu0 }
 0x132   : > { %v1034_v19 = vpop.f32.mrf.mxu1  ;;  %v3701_v38 = vadd.f32 %v2697_v54, %v1040_v34 }
 0x133   : > { %v1035_v43 = vadd.f32 %v1034_v19, %v910_v20  ;;  %v1222_v41 = vpop.f32.mrf.mxu0 }
 0x134   : > { %v2703_v8 = vpop.f32.mrf.mxu1  ;;  %v3703_v53 = vadd.f32 %v1222_v41, %v1032_v23 }
 0x135   : > { %v2698_v11 = vpop.f32.mrf.mxu0 }
 0x136   : > { %4140 = vst [vmem:[#allocation12_spill] sm:$0xff] %v3703_v53  ;;  %v1296_v56 = vpop.f32.mrf.mxu1  ;;  %v3705_v57 = vadd.f32 %v2698_v11, %v1043_v0 }
 0x137   : > { %v1225_v61 = vpop.f32.mrf.mxu0 }
 0x138   : > { %4141 = vst [vmem:[#allocation13_spill] sm:$0xff] %v3705_v57  ;;  %v2704_v55 = vpop.f32.mrf.mxu1  ;;  %v3707_v12 = vadd.f32 %v1225_v61, %v1035_v43 }
 0x139   : > { %v2721_v2 = vpop.f32.mrf.mxu0 }
 0x13a   : > { %4142 = vst [vmem:[#allocation14_spill] sm:$0xff] %v3707_v12  ;;  %v1299_v51 = vpop.f32.mrf.mxu1 }
 0x13b   : > { %v1427_v15 = vpop.f32.mrf.mxu0 }
 0x13c   : > { %v3709_v58 = vpop.f32.mrf.mxu1 }
 0x13d   : > { %v2722_v5 = vpop.f32.mrf.mxu0 }
 0x13e   : > { %v3711_v6 = vpop.f32.mrf.mxu1 }
 0x13f   : > { %v3713_v20 = vpop.f32.mrf.mxu0 }
 0x140   : > { %v3715_v7 = vpop.f32.mrf.mxu1 }
 0x141   : > { %v3717_v17 = vpop.f32.mrf.mxu0 }
 0x142   : > { %v3719_v18 = vpop.f32.mrf.mxu1 }
 0x143   : > { %v3721_v25 = vpop.f32.mrf.mxu0 }
 0x144   : > { %v3723_v50 = vpop.f32.mrf.mxu1 }
 0x145   : > { %v3725_v63 = vpop.f32.mrf.mxu0 }
 0x146   : > { %v3727_v59 = vpop.f32.mrf.mxu1 }
 0x147   : > { %v3729_v26 = vpop.f32.mrf.mxu0 }
 0x148   : > { %v3731_v22 = vpop.f32.mrf.mxu1 }
 0x149   : > { %v3733_v52 = vpop.f32.mrf.mxu0 }
 0x14a   : > { %v3735_v33 = vpop.f32.mrf.mxu1 }
 0x14b   : > { %v3737_v29 = vpop.f32.mrf.mxu0 }
 0x14c   : > { %v3739_v30 = vpop.f32.mrf.mxu1 }
 0x14d   : > { %v3741_v3 = vpop.f32.mrf.mxu0 }
 0x14e   : > { %v3743_v35 = vpop.f32.mrf.mxu1 }
 0x14f   : > { %4143 = vst [vmem:[#allocation15_spill] sm:$0xff] %v3743_v35  ;;  %v3745_v32 = vpop.f32.mrf.mxu0  ;;  %v1359_v35 = vadd.f32 %v1296_v56, %v3679_v16  ;;  %v1365_v56 = vadd.f32 %v3709_v58, %v3685_v28 }
 0x150   : > { %4144 = vst [vmem:[#allocation16_spill] sm:$0xff] %v3745_v32  ;;  %v3747_v10 = vpop.f32.mrf.mxu1 }
 0x151   : > { %4145 = vst [vmem:[#allocation17_spill] sm:$0xff] %v3747_v10  ;;  %v3749_v44 = vpop.f32.mrf.mxu0  ;;  %v1496_v28 = vadd.f32 %v3717_v17, %v1365_v56  ;;  %v1369_v17 = vadd.f32 %v3723_v50, %v3693_v39  ;;  %v1367_v39 = vadd.f32 %v3727_v59, %v3695_v37  ;;  %v1370_v50 = vadd.f32 %v3731_v22, %v3697_v1 }
 0x152   : > { %4146 = vst [vmem:[#allocation18_spill] sm:$0xff] %v3749_v44  ;;  %v3751_v46 = vpop.f32.mrf.mxu1  ;;  %v1361_v44 = vadd.f32 %v2703_v8, %v3677_v62  ;;  %v1360_v62 = vadd.f32 %v1299_v51, %v3683_v60 }
 0x153   : > { %4147 = vst [vmem:[#allocation19_spill] sm:$0xff] %v3751_v46  ;;  %v3753_v48 = vpop.f32.mrf.mxu0 }
 0x154   : > { %4148 = vst [vmem:[#allocation20_spill] sm:$0xff] %v3753_v48  ;;  %v2739_v9 = vpop.f32.mrf.mxu1 }
 0x155   : > { %v3755_v47 = vpop.f32.mrf.mxu0 }
 0x156   : > { %4149 = vst [vmem:[#allocation21_spill] sm:$0xff] %v3755_v47  ;;  %v1556_v13 = vpop.f32.mrf.mxu1 }
 0x157   : > { %v3757_v14 = vpop.f32.mrf.mxu0 }
 0x158   : > { %4150 = vst [vmem:[#allocation22_spill] sm:$0xff] %v3757_v14  ;;  %v2740_v42 = vpop.f32.mrf.mxu1 }
 0x159   : > { %v2757_v34 = vpop.f32.mrf.mxu0 }
 0x15a   : > { %v1559_v27 = vpop.f32.mrf.mxu1 }
 0x15b   : > { %v1678_v24 = vpop.f32.mrf.mxu0 }
 0x15c   : > { %v2743_v23 = vpop.f32.mrf.mxu1 }
 0x15d   : > { %v2758_v36 = vpop.f32.mrf.mxu0 }
 0x15e   : > { %v1572_v31 = vpop.f32.mrf.mxu1 }
 0x15f   : > { %v1681_v0 = vpop.f32.mrf.mxu0 }
 0x160   : > { %v3759_v54 = vpop.f32.mrf.mxu1 }
 0x161   : > { %v3761_v19 = vpop.f32.mrf.mxu0 }
 0x162   : > { %v3763_v43 = vpop.f32.mrf.mxu1 }
 0x163   : > { %v3765_v41 = vpop.f32.mrf.mxu0 }
 0x164   : > { %v3767_v11 = vpop.f32.mrf.mxu1 }
 0x165   : > { %v3769_v61 = vpop.f32.mrf.mxu0 }
 0x166   : > { %v3771_v14 = vpop.f32.mrf.mxu1 }
 0x167   : > { %4151 = vst [vmem:[#allocation23_spill] sm:$0xff] %v3771_v14  ;;  %v3773_v47 = vpop.f32.mrf.mxu0  ;;  %v1492_v14 = vadd.f32 %v2721_v2, %v1361_v44 }
 0x168   : > { %4152 = vst [vmem:[#allocation24_spill] sm:$0xff] %v3773_v47  ;;  %v3775_v48 = vpop.f32.mrf.mxu1  ;;  %v1362_v47 = vadd.f32 %v2704_v55, %v3681_v49  ;;  %v1491_v55 = vadd.f32 %v3713_v20, %v1360_v62 }
 0x169   : > { %4153 = vst [vmem:[#allocation25_spill] sm:$0xff] %v3775_v48  ;;  %v3777_v46 = vpop.f32.mrf.mxu0  ;;  %v1621_v8 = vadd.f32 %v2739_v9, %v1492_v14  ;;  %v1625_v14 = vadd.f32 %v2743_v23, %v1496_v28  ;;  %v4163_v28 = vld [vmem:[#allocation17_spill] sm:$0xff] }
 0x16a   : > { %4154 = vst [vmem:[#allocation26_spill] sm:$0xff] %v3777_v46  ;;  %v3779_v12 = vpop.f32.mrf.mxu1  ;;  %v1493_v16 = vadd.f32 %v2722_v5, %v1362_v47  ;;  %v1620_v58 = vadd.f32 %v1559_v27, %v1491_v55  ;;  %v1364_v47 = vadd.f32 %v3719_v18, %v3691_v45 }
 0x16b   : > { %4155 = vst [vmem:[#allocation27_spill] sm:$0xff] %v3779_v12  ;;  %v3782_v10 = vpop.f32.mrf.mxu0  ;;  %v1490_v12 = vadd.f32 %v1427_v15, %v1359_v35  ;;  %v1363_v15 = vadd.f32 %v3711_v6, %v3687_v4  ;;  %v1743_v60 = vadd.f32 %v2757_v34, %v1621_v8  ;;  %v1366_v35 = vadd.f32 %v3715_v7, %v3689_v40 }
 0x16c   : > { %4156 = vst [vmem:[#allocation28_spill] sm:$0xff] %v3782_v10  ;;  %v3784_v57 = vpop.f32.mrf.mxu1  ;;  %v1622_v51 = vadd.f32 %v2740_v42, %v1493_v16  ;;  %v3825_v42 = vld [vmem:[%s4125_s6] ss:$0 sm:$0xff]  ;;  %v1742_v18 = vadd.f32 %v1681_v0, %v1620_v58  ;;  %v1368_v16 = vadd.f32 %v3735_v33, %v3699_v21  ;;  %v1373_v21 = vadd.f32 %v3739_v30, %v3701_v38  ;;  %v4162_v30 = vld [vmem:[#allocation13_spill] sm:$0xff] }
 0x16d   : > { %4157 = vst [vmem:[#allocation29_spill] sm:$0xff] %v3784_v57  ;;  %v3787_v53 = vpop.f32.mrf.mxu0  ;;  %v1494_v4 = vadd.f32 %v3721_v25, %v1363_v15  ;;  %v1497_v7 = vadd.f32 %v3725_v63, %v1366_v35  ;;  %v1495_v25 = vadd.f32 %v3729_v26, %v1364_v47  ;;  %v1500_v26 = vadd.f32 %v3733_v52, %v1369_v17  ;;  %v4160_v35 = vld [vmem:[#allocation12_spill] sm:$0xff] }
 0x16e   : > { %v3789_v32 = vpop.f32.mrf.mxu1  ;;  %v1744_v6 = vadd.f32 %v2758_v36, %v1622_v51  ;;  %v1498_v52 = vadd.f32 %v3737_v29, %v1367_v39  ;;  %v4159_v51 = vld [vmem:[#allocation16_spill] sm:$0xff] }
 0x16f   : > { %4158 = vst [vmem:[#allocation30_spill] sm:$0xff] %v3789_v32  ;;  %v3792_v48 = vpop.f32.mrf.mxu0  ;;  %v1619_v32 = vadd.f32 %v1556_v13, %v1490_v12  ;;  %v1623_v34 = vadd.f32 %v1572_v31, %v1494_v4  ;;  %v1626_v63 = vadd.f32 %v3759_v54, %v1497_v7  ;;  %v1747_v31 = vadd.f32 %v3761_v19, %v1625_v14  ;;  %v4165_v47 = vld [vmem:[#allocation24_spill] sm:$0xff] }
 0x170   : > { %v3794_v46 = vpop.f32.mrf.mxu1  ;;  %v1624_v37 = vadd.f32 %v3763_v43, %v1495_v25  ;;  %v1629_v33 = vadd.f32 %v3767_v11, %v1500_v26  ;;  %v1374_v11 = vadd.f32 %v4163_v28, %v4162_v30 }
 0x171   : > { %v3797_v10 = vpop.f32.mrf.mxu0  ;;  %v1741_v12 = vadd.f32 %v1678_v24, %v1619_v32  ;;  %v1745_v22 = vadd.f32 %v3765_v41, %v1623_v34  ;;  %v1748_v55 = vadd.f32 %v3769_v61, %v1626_v63  ;;  %v4167_v17 = vld [vmem:[#allocation26_spill] sm:$0xff] }
 0x172   : > { %v3799_v57 = vpop.f32.mrf.mxu1  ;;  %v4172_v26 = vld [vmem:[#allocation27_spill] sm:$0xff] }
 0x173   : > { %v3803_v2 = vpop.f32.mrf.mxu0 }
 0x174   : > { %v2775_v49 = vpop.f32.mrf.mxu1 }
 0x175   : > { %v3810_v44 = vpop.f32.mrf.mxu0  ;;  %v1874_v9 = vadd.f32 %v2775_v49, %v1743_v60  ;;  %v1501_v49 = vadd.f32 %v3741_v3, %v1370_v50  ;;  %v1499_v3 = vadd.f32 %v4159_v51, %v1368_v16 }
 0x176   : > { %v1809_v5 = vpop.f32.mrf.mxu1  ;;  %v4176_v28 = vld [vmem:[#allocation30_spill] sm:$0xff] }
 0x177   : > { %v3815_v20 = vpop.f32.mrf.mxu0  ;;  %v1872_v40 = vadd.f32 %v1809_v5, %v1741_v12  ;;  %v4161_v5 = vld [vmem:[#allocation15_spill] sm:$0xff]  ;;  %v1628_v16 = vadd.f32 %v4172_v26, %v1499_v3 }
 0x178   : > { %v2776_v13 = vpop.f32.mrf.mxu1  ;;  %v1371_v38 = vadd.f32 %v4161_v5, %v4160_v35  ;;  %v4164_v12 = vld [vmem:[#allocation23_spill] sm:$0xff] }
 0x179   : > { %v2793_v32 = vpop.f32.mrf.mxu0  ;;  %v1875_v24 = vadd.f32 %v2776_v13, %v1744_v6  ;;  %v1627_v58 = vadd.f32 %v4164_v12, %v1498_v52  ;;  %v1746_v13 = vadd.f32 %v4165_v47, %v1624_v37 }
 0x17a   : > { %v1812_v45 = vpop.f32.mrf.mxu1  ;;  %v2003_v27 = vadd.f32 %v2793_v32, %v1874_v9  ;;  %v1751_v32 = vadd.f32 %v4167_v17, %v1629_v33 }
 0x17b   : > { %v1938_v23 = vpop.f32.mrf.mxu0  ;;  %v1873_v8 = vadd.f32 %v1812_v45, %v1742_v18  ;;  %v4168_v45 = vld [vmem:[#allocation25_spill] sm:$0xff] }
 0x17c   : > { %v2779_v36 = vpop.f32.mrf.mxu1  ;;  %v3840_v0 = vadd.f32 %v3825_v42, %v2003_v27  ;;  %v2001_v62 = vadd.f32 %v1938_v23, %v1872_v40  ;;  %v4166_v40 = vld [vmem:[#allocation18_spill] sm:$0xff]  ;;  %v1630_v18 = vadd.f32 %v4168_v45, %v1501_v49  ;;  %v4173_v49 = vld [vmem:[#allocation20_spill] sm:$0xff] }
 0x17d   : > { %v2794_v1 = vpop.f32.mrf.mxu0  ;;  %v1878_v56 = vadd.f32 %v2779_v36, %v1747_v31  ;;  %v1504_v7 = vadd.f32 %v4166_v40, %v1373_v21  ;;  %v4169_v23 = vld [vmem:[#allocation14_spill] sm:$0xff]  ;;  %v4170_v36 = vld [vmem:[#allocation19_spill] sm:$0xff]  ;;  %v1502_v21 = vadd.f32 %v4173_v49, %v1371_v38  ;;  %v4175_v38 = vld [vmem:[#allocation21_spill] sm:$0xff] }
 0x17e   : > { %v1825_v59 = vpop.f32.mrf.mxu1  ;;  %2042 = vst.msk [vmem:[%s3830_s15 + $0x10] sm:$0xff] %vm796_vm3, %v3840_v0  ;;  %v3851_v54 = vadd.f32 %v3825_v42, %v2001_v62  ;;  %v2004_v19 = vadd.f32 %v2794_v1, %v1875_v24  ;;  %v1372_v31 = vadd.f32 %v4170_v36, %v4169_v23  ;;  %v4171_v62 = vld [vmem:[#allocation28_spill] sm:$0xff]  ;;  %v1752_v33 = vadd.f32 %v3787_v53, %v1630_v18 }
 0x17f   : > { %v1941_v43 = vpop.f32.mrf.mxu0  ;;  %v1876_v29 = vadd.f32 %v1825_v59, %v1745_v22  ;;  %v2059_v22 = vsel %vm796_vm3, %v3840_v0, 0.0  ;;  %v1505_v30 = vadd.f32 %v4175_v38, %v1374_v11  ;;  %v1750_v53 = vadd.f32 %v3792_v48, %v1628_v16  ;;  %v4177_v11 = vld [vmem:[#allocation22_spill] sm:$0xff] }
 0x180   : > { %v2780_v41 = vpop.f32.mrf.mxu1  ;;  %2040 = vst.msk [vmem:[%s3830_s15] sm:$0xff] %vm796_vm3, %v3851_v54  ;;  %v3863_v15 = vadd.f32 %v3825_v42, %v2004_v19  ;;  %v2002_v60 = vadd.f32 %v1941_v43, %v1873_v8  ;;  %v2056_v34 = vsel %vm796_vm3, %v3851_v54, 0.0  ;;  %v1749_v8 = vadd.f32 %v4171_v62, %v1627_v58  ;;  %v4174_v43 = vld [vmem:[#allocation29_spill] sm:$0xff] }
 0x181   : > { %v2797_v61 = vpop.f32.mrf.mxu0  ;;  %v1879_v14 = vadd.f32 %v2780_v41, %v1748_v55  ;;  %v1633_v41 = vadd.f32 %v4174_v43, %v1504_v7  ;;  %v1631_v12 = vadd.f32 %v4176_v28, %v1502_v21  ;;  %v1503_v40 = vadd.f32 %v4177_v11, %v1372_v31 }
 0x182   : > { %v1828_v9 = vpop.f32.mrf.mxu1  ;;  %2043 = vst.msk [vmem:[%s3830_s15 + $0x18] sm:$0xff] %vm796_vm3, %v3863_v15  ;;  %v3876_v4 = vadd.f32 %v3825_v42, %v2002_v60  ;;  %v2007_v6 = vadd.f32 %v2797_v61, %v1878_v56  ;;  %v2061_v51 = vsel %vm796_vm3, %v3863_v15, 0.0  ;;  %v1634_v7 = vadd.f32 %v3794_v46, %v1505_v30 }
 0x183   : > { %v1954_v27 = vpop.f32.mrf.mxu0  ;;  %v1877_v63 = vadd.f32 %v1828_v9, %v1746_v13  ;;  %v1755_v48 = vadd.f32 %v3797_v10, %v1633_v41  ;;  %v1753_v10 = vadd.f32 %v3803_v2, %v1631_v12 }
 0x184   : > { %v2783_v24 = vpop.f32.mrf.mxu1  ;;  %2041 = vst.msk [vmem:[%s3830_s15 + $0x8] sm:$0xff] %vm796_vm3, %v3876_v4  ;;  %v2057_v25 = vsel %vm796_vm3, %v3876_v4, 0.0  ;;  %v3889_v39 = vadd.f32 %v3825_v42, %v2007_v6  ;;  %v2005_v50 = vadd.f32 %v1954_v27, %v1876_v29 }
 0x185   : > { %v2058_v37 = vadd.f32 %v2057_v25, %v2056_v34  ;;  %v2798_v1 = vpop.f32.mrf.mxu0  ;;  %v1882_v52 = vadd.f32 %v2783_v24, %v1751_v32  ;;  %v1632_v25 = vadd.f32 %v3799_v57, %v1503_v40 }
 0x186   : > { %v1841_v59 = vpop.f32.mrf.mxu1  ;;  %2046 = vst.msk [vmem:[%s3830_s15 + $0x30] sm:$0xff] %vm796_vm3, %v3889_v39  ;;  %v3901_v19 = vadd.f32 %v3825_v42, %v2005_v50  ;;  %v2008_v56 = vadd.f32 %v2798_v1, %v1879_v14  ;;  %v2067_v23 = vsel %vm796_vm3, %v3889_v39, 0.0 }
 0x187   : > { %v2060_v55 = vadd.f32 %v2059_v22, %v2058_v37  ;;  %v1957_v60 = vpop.f32.mrf.mxu0  ;;  %v1880_v5 = vadd.f32 %v1841_v59, %v1749_v8  ;;  %v1756_v8 = vadd.f32 %v3810_v44, %v1634_v7  ;;  %v1754_v22 = vadd.f32 %v3815_v20, %v1632_v25 }
 0x188   : > { %v2784_v29 = vpop.f32.mrf.mxu1  ;;  %2044 = vst.msk [vmem:[%s3830_s15 + $0x20] sm:$0xff] %vm796_vm3, %v3901_v19  ;;  %v3912_v3 = vadd.f32 %v3825_v42, %v2008_v56  ;;  %v2006_v35 = vadd.f32 %v1957_v60, %v1877_v63  ;;  %v2063_v47 = vsel %vm796_vm3, %v3901_v19, 0.0 }
 0x189   : > { %v2062_v58 = vadd.f32 %v2061_v51, %v2060_v55  ;;  %v2801_v61 = vpop.f32.mrf.mxu0  ;;  %v1883_v14 = vadd.f32 %v2784_v29, %v1752_v33 }
 0x18a   : > { %v1844_v9 = vpop.f32.mrf.mxu1  ;;  %2047 = vst.msk [vmem:[%s3830_s15 + $0x38] sm:$0xff] %vm796_vm3, %v3912_v3  ;;  %v3923_v13 = vadd.f32 %v3825_v42, %v2006_v35  ;;  %v2011_v6 = vadd.f32 %v2801_v61, %v1882_v52  ;;  %v2069_v16 = vsel %vm796_vm3, %v3912_v3, 0.0 }
 0x18b   : > { %v2064_v17 = vadd.f32 %v2063_v47, %v2062_v58  ;;  %v1970_v32 = vpop.f32.mrf.mxu0  ;;  %v1881_v24 = vadd.f32 %v1844_v9, %v1750_v53 }
 0x18c   : > { %v2787_v45 = vpop.f32.mrf.mxu1  ;;  %2045 = vst.msk [vmem:[%s3830_s15 + $0x28] sm:$0xff] %vm796_vm3, %v3923_v13  ;;  %v2065_v18 = vsel %vm796_vm3, %v3923_v13, 0.0  ;;  %v3934_v34 = vadd.f32 %v3825_v42, %v2011_v6  ;;  %v2009_v27 = vadd.f32 %v1970_v32, %v1880_v5 }
 0x18d   : > { %v2066_v46 = vadd.f32 %v2065_v18, %v2064_v17  ;;  %v2802_v50 = vpop.f32.mrf.mxu0  ;;  %v1886_v62 = vadd.f32 %v2787_v45, %v1755_v48 }
 0x18e   : > { %v1857_v63 = vpop.f32.mrf.mxu1  ;;  %2050 = vst.msk [vmem:[%s3830_s15 + $0x50] sm:$0xff] %vm796_vm3, %v3934_v34  ;;  %v3944_v36 = vadd.f32 %v3825_v42, %v2009_v27  ;;  %v2012_v31 = vadd.f32 %v2802_v50, %v1883_v14  ;;  %v2075_v38 = vsel %vm796_vm3, %v3934_v34, 0.0 }
 0x18f   : > { %v2068_v2 = vadd.f32 %v2067_v23, %v2066_v46  ;;  %v1973_v26 = vpop.f32.mrf.mxu0  ;;  %v1884_v59 = vadd.f32 %v1857_v63, %v1753_v10 }
 0x190   : > { %v2788_v57 = vpop.f32.mrf.mxu1  ;;  %2048 = vst.msk [vmem:[%s3830_s15 + $0x40] sm:$0xff] %vm796_vm3, %v3944_v36  ;;  %v3953_v37 = vadd.f32 %v3825_v42, %v2012_v31  ;;  %v2010_v1 = vadd.f32 %v1973_v26, %v1881_v24  ;;  %v2071_v49 = vsel %vm796_vm3, %v3944_v36, 0.0 }
 0x191   : > { %v2070_v56 = vadd.f32 %v2069_v16, %v2068_v2  ;;  %v2805_v52 = vpop.f32.mrf.mxu0  ;;  %v1887_v43 = vadd.f32 %v2788_v57, %v1756_v8 }
 0x192   : > { %v1860_v44 = vpop.f32.mrf.mxu1  ;;  %2051 = vst.msk [vmem:[%s3830_s15 + $0x58] sm:$0xff] %vm796_vm3, %v3953_v37  ;;  %v3962_v21 = vadd.f32 %v3825_v42, %v2010_v1  ;;  %v2015_v33 = vadd.f32 %v2805_v52, %v1886_v62  ;;  %v2077_v58 = vsel %vm796_vm3, %v3953_v37, 0.0 }
 0x193   : > { %v2072_v41 = vadd.f32 %v2071_v49, %v2070_v56  ;;  %v1986_v55 = vpop.f32.mrf.mxu0  ;;  %v1885_v51 = vadd.f32 %v1860_v44, %v1754_v22 }
 0x194   : > { %2049 = vst.msk [vmem:[%s3830_s15 + $0x48] sm:$0xff] %vm796_vm3, %v3962_v21  ;;  %v2073_v20 = vsel %vm796_vm3, %v3962_v21, 0.0  ;;  %v3970_v60 = vadd.f32 %v3825_v42, %v2015_v33  ;;  %v2013_v29 = vadd.f32 %v1986_v55, %v1884_v59 }
 0x195   : > { %v2074_v35 = vadd.f32 %v2073_v20, %v2072_v41  ;;  %v2806_v5 = vpop.f32.mrf.mxu0 }
 0x196   : > { %2054 = vst.msk [vmem:[%s3830_s15 + $0x70] sm:$0xff] %vm796_vm3, %v3970_v60  ;;  %v3978_v30 = vadd.f32 %v3825_v42, %v2013_v29  ;;  %v2016_v53 = vadd.f32 %v2806_v5, %v1887_v43  ;;  %v2083_v7 = vsel %vm796_vm3, %v3970_v60, 0.0 }
 0x197   : > { %v2076_v28 = vadd.f32 %v2075_v38, %v2074_v35  ;;  %v1989_v12 = vpop.f32.mrf.mxu0 }
 0x198   : > { %2052 = vst.msk [vmem:[%s3830_s15 + $0x60] sm:$0xff] %vm796_vm3, %v3978_v30  ;;  %v3986_v61 = vadd.f32 %v3825_v42, %v2016_v53  ;;  %v2014_v9 = vadd.f32 %v1989_v12, %v1885_v51  ;;  %v2079_v6 = vsel %vm796_vm3, %v3978_v30, 0.0 }
 0x199   : > { %v2078_v47 = vadd.f32 %v2077_v58, %v2076_v28 }
 0x19a   : > { %2055 = vst.msk [vmem:[%s3830_s15 + $0x78] sm:$0xff] %vm796_vm3, %v3986_v61  ;;  %v3994_v14 = vadd.f32 %v3825_v42, %v2014_v9  ;;  %v2085_v32 = vsel %vm796_vm3, %v3986_v61, 0.0 }
 0x19b   : > { %v2080_v11 = vadd.f32 %v2079_v6, %v2078_v47 }
 0x19c   : > { %2053 = vst.msk [vmem:[%s3830_s15 + $0x68] sm:$0xff] %vm796_vm3, %v3994_v14  ;;  %v2081_v40 = vsel %vm796_vm3, %v3994_v14, 0.0  ;;  %s2901_s15 = scalar_lea.vmem %s2900_s17, 32 }
 0x19d   : > { %v2082_v48 = vadd.f32 %v2081_v40, %v2080_v11  ;;  %p2903_p8 = scmp.lt.s32.totalorder %s2901_s15, %s2895_s18 }
 0x19f   : > { %v2084_v17 = vadd.f32 %v2083_v7, %v2082_v48  ;;  %p2904_p9 = por %p2903_p8, %p2902_p6 }
 0x1a1   : > { %v2086_v45 = vadd.f32 %v2085_v32, %v2084_v17  ;;  %p2905_p10 = pnand %p2904_p9, %p2898_p4 }
 0x1a3   : > { %v2087_v18 = vrot.slane %v2086_v45, 4 }
 0x1a5   : > { %v2088_v42 = vadd.f32 %v2087_v18, %v2086_v45 }
 0x1a7   : > { %v2089_v27 = vrot.slane %v2088_v42, 2 }
 0x1a9   : > { %v2090_v24 = vadd.f32 %v2089_v27, %v2088_v42 }
 0x1ab   : > { %v2091_v10 = vrot.slane %v2090_v24, 1 }
 0x1ad   : > { %v2092_v25 = vadd.f32 %v2091_v10, %v2090_v24 }
 0x1af   : > { %v2093_v46 = vmul.f32 0.0078125, %v2092_v25  ;;  %2164 = vst.msk [vmem:[%s425_s26] sm:$0x1] %vm2163_vm5, %v2092_v25 }
 0x1b0   : > { %2908 = shalt.err (!%p2905_p10)
}
 0x1b1   : > { %s2909_s20 = scalar_lea.hbm %s4019_s28, 16  ;;  %s2913_s21 = scalar_lea.hbm %s4127_s8, 64 }
 0x1b2   : > { %p2910_p11 = scmp.ne.s32.totalorder %s4019_s28, %s2909_s20  ;;  %p2914_p0 = scmp.lt.s32.totalorder %s4019_s28, %s4127_s8 }
 0x1b3   : > { %p2915_p1 = scmp.lt.s32.totalorder %s2913_s21, %s2909_s20 }
 0x1b4   : > { %p2911_p12 = pnand %p2910_p11, %p3124_p5 }
 0x1b5   : > { %p2916_p2 = por %p2915_p1, %p2914_p0 }
 0x1b6   : > { %p2912_p13 = pneg %p2911_p12 }
 0x1b8   : > { %p2917_p3 = pnand %p2916_p2, %p2912_p13 }
 0x1ba   : > { %2920 = shalt.err (!%p2917_p3)
}
 0x1bb   : > { %2819 = dma.vmem_to_hbm [thread:$0]  (%p3124_p5), %s2200_s27, 16, %s4019_s28, %s2177_s12   ;;  %v2094_v50 = vsub.f32 %v3851_v54, %v2093_v46  ;;  %v2095_v63 = vsub.f32 %v3876_v4, %v2093_v46  ;;  %v2096_v23 = vsub.f32 %v3840_v0, %v2093_v46  ;;  %v2097_v31 = vsub.f32 %v3863_v15, %v2093_v46 }
 0x1bc   : > { %v2098_v62 = vsub.f32 %v3901_v19, %v2093_v46  ;;  %v2099_v8 = vsub.f32 %v3923_v13, %v2093_v46  ;;  %v2100_v2 = vsub.f32 %v3889_v39, %v2093_v46  ;;  %v2101_v26 = vsub.f32 %v3912_v3, %v2093_v46  ;;  %s431_s22 = scalar_lea.vmem [#allocation4], %s4007_s14  ;;  %s4178_s28 = sshll.u32 %s4010_s19, 4 }
 0x1bd   : > { %v2102_v57 = vsub.f32 %v3944_v36, %v2093_v46  ;;  %v2103_v16 = vsub.f32 %v3962_v21, %v2093_v46  ;;  %v2104_v54 = vsub.f32 %v3934_v34, %v2093_v46  ;;  %v2105_v4 = vsub.f32 %v3953_v37, %v2093_v46  ;;  %s2214_s27 = sshll.u32 %s431_s22, 4  ;;  %s2212_s17 = scalar_lea.hbm %s4128_s9, %s4178_s28  ;;  %s2215_s27 = int_to_ptr.vmem [resolvable:$true] %s2214_s27 }
 0x1be   : > { %v2106_v0 = vsub.f32 %v3978_v30, %v2093_v46  ;;  %v2107_v15 = vsub.f32 %v3994_v14, %v2093_v46  ;;  %v2108_v19 = vsub.f32 %v3970_v60, %v2093_v46  ;;  %v2110_v1 = vmul.f32 %v2094_v50, %v2094_v50  ;;  %s2181_s15 = scalar_lea.sflag [#allocation5], %s4007_s14  ;;  %s2921_s20 = scalar_lea.vmem %s2215_s27, 16 }
 0x1bf   : > { %v2111_v13 = vmul.f32 %v2095_v63, %v2095_v63  ;;  %v2112_v59 = vmul.f32 %v2096_v23, %v2096_v23  ;;  %v2113_v39 = vmul.f32 %v2097_v31, %v2097_v31  ;;  %v2114_v56 = vmul.f32 %v2098_v62, %v2098_v62  ;;  %p2922_p4 = scmp.ne.s32.totalorder %s2215_s27, %s2921_s20  ;;  %s3020_s26 = smov [#allocation4]  }
 0x1c0   : > { %v2126_v3 = vsel %vm796_vm3, %v2110_v1, 0.0  ;;  %v2115_v37 = vmul.f32 %v2099_v8, %v2099_v8  ;;  %v2109_v49 = vsub.f32 %v3986_v61, %v2093_v46  ;;  %v2116_v33 = vmul.f32 %v2100_v2, %v2100_v2  ;;  %s2925_s13 = sshll.u32 %s3020_s26, 4  ;;  %s2926_s13 = int_to_ptr.vmem [resolvable:$false] %s2925_s13 }
 0x1c1   : > { %v2127_v36 = vsel %vm796_vm3, %v2111_v13, 0.0  ;;  %v2129_v34 = vsel %vm796_vm3, %v2112_v59, 0.0  ;;  %v2131_v44 = vsel %vm796_vm3, %v2113_v39, 0.0  ;;  %v2133_v43 = vsel %vm796_vm3, %v2114_v56, 0.0  ;;  %p2923_p6 = pnand %p2922_p4, %p3124_p5  ;;  %s2927_s21 = scalar_lea.vmem %s2926_s13, 32 }
 0x1c2   : > { %v2128_v22 = vadd.f32 %v2127_v36, %v2126_v3  ;;  %v2117_v55 = vmul.f32 %v2101_v26, %v2101_v26  ;;  %v2135_v20 = vsel %vm796_vm3, %v2115_v37, 0.0  ;;  %v2118_v29 = vmul.f32 %v2102_v57, %v2102_v57  ;;  %p2928_p9 = scmp.lt.s32.totalorder %s2215_s27, %s2926_s13  ;;  %p2929_p10 = scmp.lt.s32.totalorder %s2927_s21, %s2921_s20 }
 0x1c3   : > { %v2137_v51 = vsel %vm796_vm3, %v2116_v33, 0.0  ;;  %v2119_v5 = vmul.f32 %v2103_v16, %v2103_v16  ;;  %v2120_v53 = vmul.f32 %v2104_v54, %v2104_v54  ;;  %v2121_v58 = vmul.f32 %v2105_v4, %v2105_v4  ;;  %p2924_p8 = pneg %p2923_p6 }
 0x1c4   : > { %v2130_v52 = vadd.f32 %v2129_v34, %v2128_v22  ;;  %v2139_v38 = vsel %vm796_vm3, %v2117_v55, 0.0  ;;  %v2141_v28 = vsel %vm796_vm3, %v2118_v29, 0.0  ;;  %v2122_v47 = vmul.f32 %v2106_v0, %v2106_v0  ;;  %p2930_p11 = por %p2929_p10, %p2928_p9 }
 0x1c5   : > { %v2143_v61 = vsel %vm796_vm3, %v2119_v5, 0.0  ;;  %v2145_v6 = vsel %vm796_vm3, %v2120_v53, 0.0  ;;  %v2123_v11 = vmul.f32 %v2107_v15, %v2107_v15  ;;  %v2147_v40 = vsel %vm796_vm3, %v2121_v58, 0.0 }
 0x1c6   : > { %v2132_v21 = vadd.f32 %v2131_v44, %v2130_v52  ;;  %v2124_v7 = vmul.f32 %v2108_v19, %v2108_v19  ;;  %v2149_v17 = vsel %vm796_vm3, %v2122_v47, 0.0  ;;  %v2125_v18 = vmul.f32 %v2109_v49, %v2109_v49  ;;  %p2931_p12 = pnand %p2930_p11, %p2924_p8 }
 0x1c7   : > { %v2151_v45 = vsel %vm796_vm3, %v2123_v11, 0.0 }
 0x1c8   : > { %v2134_v41 = vadd.f32 %v2133_v43, %v2132_v21  ;;  %v2153_v27 = vsel %vm796_vm3, %v2124_v7, 0.0  ;;  %v2155_v10 = vsel %vm796_vm3, %v2125_v18, 0.0 }
 0x1ca   : > { %v2136_v60 = vadd.f32 %v2135_v20, %v2134_v41 }
 0x1cc   : > { %v2138_v35 = vadd.f32 %v2137_v51, %v2136_v60 }
 0x1ce   : > { %v2140_v30 = vadd.f32 %v2139_v38, %v2138_v35 }
 0x1d0   : > { %v2142_v12 = vadd.f32 %v2141_v28, %v2140_v30 }
 0x1d2   : > { %v2144_v9 = vadd.f32 %v2143_v61, %v2142_v12 }
 0x1d4   : > { %v2146_v14 = vadd.f32 %v2145_v6, %v2144_v9 }
 0x1d6   : > { %v2148_v48 = vadd.f32 %v2147_v40, %v2146_v14 }
 0x1d8   : > { %v2150_v32 = vadd.f32 %v2149_v17, %v2148_v48 }
 0x1da   : > { %v2152_v42 = vadd.f32 %v2151_v45, %v2150_v32 }
 0x1dc   : > { %v2154_v24 = vadd.f32 %v2153_v27, %v2152_v42 }
 0x1de   : > { %v2156_v25 = vadd.f32 %v2155_v10, %v2154_v24 }
 0x1e0   : > { %v2157_v46 = vrot.slane %v2156_v25, 4 }
 0x1e2   : > { %v2158_v50 = vadd.f32 %v2157_v46, %v2156_v25 }
 0x1e4   : > { %v2159_v63 = vrot.slane %v2158_v50, 2 }
 0x1e6   : > { %v2160_v23 = vadd.f32 %v2159_v63, %v2158_v50 }
 0x1e8   : > { %v2161_v31 = vrot.slane %v2160_v23, 1 }
 0x1ea   : > { %v2162_v62 = vadd.f32 %v2161_v31, %v2160_v23 }
 0x1ec   : > { %2165 = vst.msk [vmem:[%s431_s22] sm:$0x1] %vm2163_vm5, %v2162_v62 }
 0x1ed   : > { %2934 = shalt.err (!%p2931_p12)
}
 0x1ee   : > { %s2935_s19 = scalar_lea.hbm %s2212_s17, 16  ;;  %s2939_s22 = scalar_lea.hbm %s4128_s9, 64 }
 0x1ef   : > { %p2936_p13 = scmp.ne.s32.totalorder %s2212_s17, %s2935_s19  ;;  %p2940_p2 = scmp.lt.s32.totalorder %s2212_s17, %s4128_s9 }
 0x1f0   : > { %p2941_p3 = scmp.lt.s32.totalorder %s2939_s22, %s2935_s19 }
 0x1f1   : > { %p2937_p0 = pnand %p2936_p13, %p3124_p5 }
 0x1f2   : > { %p2942_p4 = por %p2941_p3, %p2940_p2 }
 0x1f3   : > { %p2938_p1 = pneg %p2937_p0 }
 0x1f5   : > { %p2943_p6 = pnand %p2942_p4, %p2938_p1 }
 0x1f7   : > { %2946 = shalt.err (!%p2943_p6)
}
 0x1f8   : > { %2820 = dma.vmem_to_hbm [thread:$0]  (%p3124_p5), %s2215_s27, 16, %s2212_s17, %s2181_s15  }
 0x1f9 PF: > { %p2830_p8 = scmp.ge.s32.totalorder %s3017_s16, 2  ;;  %s2239_s18 = sand.u32 1, %s2989_s30  }
 0x1fa   : > { %s2240_s20 = scalar_lea.sflag [#allocation3], %s2239_s18 }
 0x1fb   : > { %p2824_p9 = pnand %p2830_p8, %p3130_p7 }
 0x1fd   : > { %p2825_p10 = pneg %p2824_p9 }
 0x1ff   : > { %2980 = dma.done.wait (%p2825_p10), %s2240_s20, 16  }
 0x200   : > { %2982 = vsyncadd (%p2825_p10), %s2240_s20, 4294967280  ;;  %s2248_s26 = scalar_lea.sflag [#allocation5], %s2239_s18 }
 0x201   : > { %2984 = dma.done.wait (%p2825_p10), %s2248_s26, 16  }
 0x202   : > { %2986 = vsyncadd (%p2825_p10), %s2248_s26, 4294967280  ;;  %s26_s16 = sadd.s32 1, %s3017_s16   ;;  %s4179_s12 = sld [smem:[#allocation8_spill]] }
 0x203   : > { %p23_p11 = scmp.ge.s32.totalorder %s26_s16, 6   ;;  %s4180_s13 = sld [smem:[#allocation9_spill]] }
 0x204   : > { %s4181_s14 = sld [smem:[#allocation10_spill]]  ;;  %s4183_s30 = smov %s2993_s10 }
 0x205   : > { %s4182_s15 = sld [smem:[#allocation11_spill]]  ;;  %s4184_s10 = smov %s2997_s11 }
 0x206   : > { %s4185_s11 = smov %s3140_s29  ;;  %25 = sbr.rel (!%p23_p11) target bundleno = 7 (0x7), region = 126 }
 0x20b   :  { %2252 = vsyncpa [#allocation3], 1 }
 0x20c   :  { %2254 = vsyncpa [#allocation3 + $0x1], 1 }
 0x20d   :  { %2255 = vsyncpa [#allocation5], 1 }
 0x20e   :  { %2257 = vsyncpa [#allocation5 + $0x1], 1 }

// kernel: conv_block_forward.4
= control target key start
LH: loop header
LB: loop body
LE: loop exit
PB: predicated region body
PF: predicated region fallthrough
CT: control target
= control target key end

     0   :  { %s2948_s30 = smov 0   ;;  %s2950_s10 = smov 0   ;;  %s3908_s0 = inlined_call_operand.vmem [shape: f32[2,16,16,4], index: 0, kind: input, shape index: {}]   ;;  %s3909_s1 = inlined_call_operand.vmem [shape: f32[2,2,16,4], index: 1, kind: input, shape index: {}]   ;;  %s3910_s2 = inlined_call_operand.vmem [shape: f32[2,2,16,4], index: 2, kind: input, shape index: {}]   ;;  %s3911_s3 = inlined_call_operand.vmem [shape: f32[1,4], index: 3, kind: input, shape index: {}]   ;;  %s3912_s4 = inlined_call_operand.vmem [shape: f32[1,4], index: 4, kind: input, shape index: {}]   ;;  %s3913_s5 = inlined_call_operand.vmem [shape: bf16[3,3,4,8], index: 5, kind: input, shape index: {}]   ;;  %s3914_s6 = inlined_call_operand.vmem [shape: f32[1,8], index: 6, kind: input, shape index: {}]   ;;  %s3915_s7 = inlined_call_operand.vmem [shape: bf16[2,16,16,8], index: 7, kind: output, shape index: {0}]   ;;  %s3916_s8 = inlined_call_operand.vmem [shape: f32[4,1,8], index: 8, kind: output, shape index: {1}]   ;;  %s3917_s9 = inlined_call_operand.vmem [shape: f32[4,1,8], index: 9, kind: output, shape index: {2}]  }
   0x1   :  { %s2952_s11 = smov 0   ;;  %s2954_s12 = smov 0  }
   0x2   :  { %s2956_s13 = smov 0  }
   0x3 LB: > { %s29_s14 = sadd.s32 1, %s2888_s11  ;;  %s32_s15 = sadd.s32 1, %s2892_s12  ;;  %s2896_s13 = sphi %s2956_s13, %s20_s13   ;;  %s2892_s12 = sphi %s2954_s12, %s3959_s12   ;;  %s2888_s11 = sphi %s2952_s11, %s3958_s11   ;;  %s2884_s10 = sphi %s2950_s10, %s3957_s10   ;;  %s2880_s30 = sphi %s2948_s30, %s3956_s30  }
   0x4   : > { %p30_p0 = scmp.ge.s32.totalorder %s29_s14, 2  ;;  %p2429_p1 = scmp.ge.s32.totalorder %s2896_s13, 1 }
   0x5   : > { %p354_p2 = scmp.lt.s32.totalorder %s2896_s13, 5 }
   0x6   : > { %s3961_s14 = smov (%p30_p0, %s29_s14), 0  ;;  %s3963_s15 = smov (!%p30_p0, %s32_s15), %s2892_s12 }
   0x7   : > { %p355_p3 = pnand %p2429_p1, %p354_p2  ;;  %p34_p4 = scmp.ge.s32.totalorder %s3963_s15, 2 }
   0x9   : > { %s3965_s15 = smov (%p34_p4, %s3963_s15), 0  ;;  %358 = sbr.rel (%p355_p3) target bundleno = 467 (0x1d3), region = 48 }
   0xe   : > { %v2448_v0 = vld [vmem:[%s3913_s5 + $0x2] sm:$0x3]  ;;  %vm807_vm0 = vcmask 1041408   ;;  %s2430_s18 = sshll.u32 %s2880_s30, 3  ;;  %p429_p5 = scmp.lt.s32.totalorder %s2884_s10, 1  ;;  %vm609_vm1 = vcmask 1040384  }
   0xf   : > { %2809 = vmatprep.subr.msk.bf16.mxu1 %vm807_vm0, %v2448_v0  ;;  %v809_v1 = vsel %vm807_vm0, %v2448_v0, 0  ;;  %2808 = vmatprep.subr.msk.bf16.mxu0 %vm807_vm0, %v2448_v0  ;;  %p431_p6 = scmp.lt.s32.totalorder %s2430_s18, 15  ;;  %v698_v2 = vld [vmem:[%s3913_s5] sm:$0x3]  ;;  %v3000_v3 = vld [vmem:[%s3913_s5 + $0x4] sm:$0x3] }
  0x10   : > { %2807 = vmatpush3.bf16.msra.mxu1 %v809_v1  ;;  %2645 = vmatpush3.bf16.msra.mxu0 %v809_v1  ;;  %s2991_s19 = scalar_select %p429_p5, %s2884_s10, 1  ;;  %v3013_v4 = vld [vmem:[%s3911_s3] ss:$0 sm:$0xff]  ;;  %vm715_vm2 = vcmask 1046528   ;;  %vm782_vm3 = vcmask 31744   ;;  %v3060_v28 = vsel %vm807_vm0, %v698_v2, 0 }
  0x11   : > { %s3967_s18 = smov (!%p431_p6, %s2430_s18), 15  ;;  %2810 = vmatprep.subr.msk.bf16.mxu1 %vm807_vm0, %v698_v2  ;;  %2811 = vmatprep.subr.msk.bf16.mxu0 %vm807_vm0, %v3000_v3  ;;  %p441_p7 = scmp.lt.s32.totalorder %s2880_s30, 1  ;;  %v3023_v5 = vld [vmem:[%s3912_s4] ss:$0 sm:$0xff]  ;;  %vm1032_vm4 = vcmask 1045504   ;;  %vm2090_vm5 = vcmask 60416  }
  0x12   : > { %s2432_s24 = sshll.u32 %s2991_s19, 5  ;;  %s2431_s25 = sshll.u32 %s3967_s18, 1  ;;  %vm2107_vm6 = vcmask 64512   ;;  %vm2215_vm7 = vcmask 57344  }
  0x13   : > { %s3006_s26 = sadd.s32 %s2432_s24, %s2431_s25  ;;  %p561_p8 = scmp.gt.s32.totalorder %s2880_s30, 0 }
  0x14   : > { %s2433_s27 = sshll.u32 %s3006_s26, 3  ;;  %s2435_s18 = sshll.u32 %s2991_s19, 2 }
  0x15   : > { %s3018_s20 = scalar_lea.vmem %s3908_s0, %s2433_s27 }
  0x16   : > { %v491_v6 = vld [vmem:[%s3018_s20 + $0x30] sm:$0xff]  ;;  %v492_v7 = vld [vmem:[%s3018_s20 + $0x38] sm:$0xff]  ;;  %s442_s23 = scalar_select %p441_p7, %s2880_s30, 1  ;;  %v493_v8 = vld [vmem:[%s3018_s20 + $0x40] sm:$0xff] }
  0x17   : > { %v513_v9 = vmul.f32 %v3013_v4, %v491_v6  ;;  %v514_v10 = vmul.f32 %v3013_v4, %v492_v7  ;;  %s3034_s24 = scalar_select %p561_p8, 1, 0  ;;  %v494_v11 = vld [vmem:[%s3018_s20 + $0x48] sm:$0xff]  ;;  %v515_v12 = vmul.f32 %v3013_v4, %v493_v8  ;;  %v485_v13 = vld [vmem:[%s3018_s20] sm:$0xff]  ;;  %v495_v21 = vld [vmem:[%s3018_s20 + $0x50] sm:$0xff] }
  0x18   : > { %v486_v14 = vld [vmem:[%s3018_s20 + $0x8] sm:$0xff]  ;;  %s2434_s19 = sshll.u32 %s442_s23, 1  ;;  %v516_v15 = vmul.f32 %v3013_v4, %v494_v11  ;;  %v507_v16 = vmul.f32 %v3013_v4, %v485_v13  ;;  %v517_v34 = vmul.f32 %v3013_v4, %v495_v21  ;;  %v496_v63 = vld [vmem:[%s3018_s20 + $0x58] sm:$0xff] }
  0x19   : > { %v508_v17 = vmul.f32 %v3013_v4, %v486_v14  ;;  %v535_v18 = vadd.f32 %v3023_v5, %v513_v9  ;;  %v536_v19 = vadd.f32 %v3023_v5, %v514_v10  ;;  %s3045_s25 = sadd.s32 %s2435_s18, %s2434_s19  ;;  %v537_v20 = vadd.f32 %v3023_v5, %v515_v12  ;;  %s563_s28 = scvt.s32.f32 %s3034_s24 }
  0x1a   : > { %s2436_s27 = sshll.u32 %s3045_s25, 3  ;;  %v538_v22 = vadd.f32 %v3023_v5, %v516_v15  ;;  %v529_v23 = vadd.f32 %v3023_v5, %v507_v16  ;;  %v518_v14 = vmul.f32 %v3013_v4, %v496_v63 }
  0x1b   : > { %v530_v24 = vadd.f32 %v3023_v5, %v508_v17  ;;  %v551_v25 = vmax.f32 %v535_v18, 0.0  ;;  %v552_v26 = vmax.f32 %v536_v19, 0.0  ;;  %s447_s17 = scalar_lea.vmem %s3909_s1, %s2436_s27  ;;  %v553_v27 = vmax.f32 %v537_v20, 0.0 }
  0x1c   : > { %v567_v29 = vld [vmem:[%s447_s17] sm:$0xff]  ;;  %v568_v30 = vld [vmem:[%s447_s17 + $0x8] sm:$0xff]  ;;  %v554_v31 = vmax.f32 %v538_v22, 0.0  ;;  %v545_v32 = vmax.f32 %v529_v23, 0.0  ;;  %v575_v39 = vstv %s563_s28  ;;  %v539_v18 = vadd.f32 %v3023_v5, %v517_v34  ;;  %v487_v23 = vld [vmem:[%s3018_s20 + $0x10] sm:$0xff]  ;;  %s456_s28 = scalar_lea.vmem %s3910_s2, %s2436_s27  ;;  %s2444_s27 = sshll.u32 %s2884_s10, 1 }
  0x1d   : > { %v546_v33 = vmax.f32 %v530_v24, 0.0  ;;  %v622_v35 = vrot.slane %v551_v25, 7  ;;  %v623_v36 = vrot.slane %v552_v26, 7  ;;  %v569_v37 = vmul.f32 %v3013_v4, %v567_v29  ;;  %v488_v24 = vld [vmem:[%s3018_s20 + $0x18] sm:$0xff]  ;;  %v3129_v25 = vld [vmem:[%s3913_s5 + $0x6] sm:$0x3] }
  0x1e   : > { %v570_v38 = vmul.f32 %v3013_v4, %v568_v30  ;;  %v625_v40 = vrot.slane %v553_v27, 7  ;;  %v626_v41 = vrot.slane %v554_v31, 7  ;;  %v613_v42 = vrot.slane %v545_v32, 7  ;;  %v497_v30 = vld [vmem:[%s3018_s20 + $0x60] sm:$0xff]  ;;  %v498_v31 = vld [vmem:[%s3018_s20 + $0x68] sm:$0xff] }
  0x1f   : > { %v3066_v43 = vsel %vm609_vm1, %v622_v35, %v623_v36  ;;  %v3069_v44 = vsel %vm609_vm1, 0.0, %v622_v35  ;;  %v3072_v45 = vsel %vm609_vm1, %v623_v36, 0.0  ;;  %v571_v46 = vadd.f32 %v3023_v5, %v569_v37  ;;  %s3271_s29 = scalar_select %p441_p7, 1, 0 }
  0x20   : > { %v736_v47 = vrot.slane %v3069_v44, 1  ;;  %v737_v48 = vrot.slane %v3066_v43, 1  ;;  %v739_v49 = vrot.slane %v3072_v45, 1  ;;  %v614_v50 = vrot.slane %v546_v33, 7 }
  0x21   : > { %v572_v51 = vadd.f32 %v3023_v5, %v570_v38  ;;  %v573_v52 = vmax.f32 %v571_v46, 0.0  ;;  %v3080_v53 = vsel %vm609_vm1, %v625_v40, %v626_v41  ;;  %v3083_v54 = vsel %vm609_vm1, 0.0, %v625_v40  ;;  %v489_v40 = vld [vmem:[%s3018_s20 + $0x20] sm:$0xff]  ;;  %s566_s17 = scvt.s32.f32 %s3271_s29 }
  0x22   : > { %v738_v55 = vsel %vm715_vm2, %v736_v47, %v737_v48  ;;  %v740_v56 = vsel %vm715_vm2, %v737_v48, %v739_v49  ;;  %v3088_v57 = vsel %vm609_vm1, %v626_v41, 0.0  ;;  %v741_v58 = vrot.slane %v3083_v54, 1 }
  0x23   : > { %v3091_v59 = vpack.c.bf16 %v740_v56, %v738_v55  ;;  %v574_v60 = vmax.f32 %v572_v51, 0.0  ;;  %v576_v61 = vmul.f32 %v575_v39, %v573_v52  ;;  %v742_v62 = vrot.slane %v3080_v53, 1 }
  0x24   : > { %v744_v0 = vrot.slane %v3088_v57, 1  ;;  %v3097_v1 = vsel %vm609_vm1, %v613_v42, %v614_v50  ;;  %v3100_v2 = vsel %vm609_vm1, 0.0, %v613_v42  ;;  %v3103_v6 = vsel %vm609_vm1, %v614_v50, 0.0 }
  0x25   : > { %2654 = vmatprep.mubr.msk.bf16.mxu1 %vm782_vm3, %v3091_v59  ;;  %v577_v7 = vmul.f32 %v575_v39, %v574_v60  ;;  %v610_v8 = vrot.slane %v576_v61, 7  ;;  %v743_v9 = vsel %vm715_vm2, %v741_v58, %v742_v62  ;;  %v721_v10 = vrot.slane %v3100_v2, 1 }
  0x26   : > { %v745_v11 = vsel %vm715_vm2, %v742_v62, %v744_v0  ;;  %v722_v12 = vrot.slane %v3097_v1, 1  ;;  %v724_v13 = vrot.slane %v3103_v6, 1  ;;  %v1124_v22 = vsel %vm807_vm0, %v3000_v3, 0  ;;  %v3173_v0 = vld [vmem:[%s3913_s5 + $0x8] sm:$0x3] }
  0x27   : > { %v611_v15 = vrot.slane %v577_v7, 7  ;;  %v3114_v16 = vsel %vm609_vm1, 0.0, %v610_v8  ;;  %v3116_v17 = vpack.c.bf16 %v745_v11, %v743_v9  ;;  %v540_v36 = vadd.f32 %v3023_v5, %v518_v14 }
  0x28   : > { %v716_v19 = vrot.slane %v3114_v16, 1  ;;  %v723_v20 = vsel %vm715_vm2, %v721_v10, %v722_v12  ;;  %v725_v21 = vsel %vm715_vm2, %v722_v12, %v724_v13  ;;  %v1033_v29 = vrot.slane %v3114_v16, 2 }
  0x29   : > { %v3132_v26 = vsel %vm609_vm1, %v610_v8, %v611_v15  ;;  %v3135_v27 = vsel %vm609_vm1, %v611_v15, 0.0  ;;  %2655 = vmatmul.mubr.msk.bf16.vlgmr.msra.gmra.mxu1 %vm782_vm3, %v3116_v17  ;;  %v3140_v3 = vpack.c.bf16 %v725_v21, %v723_v20  ;;  %v555_v37 = vmax.f32 %v539_v18, 0.0 }
  0x2a   : > { %v717_v32 = vrot.slane %v3132_v26, 1  ;;  %v719_v33 = vrot.slane %v3135_v27, 1  ;;  %v1034_v34 = vrot.slane %v3132_v26, 2  ;;  %v1036_v35 = vrot.slane %v3135_v27, 2  ;;  %2663 = vmatpush3.bf16.msra.mxu1 %v3060_v28  ;;  %v490_v28 = vld [vmem:[%s3018_s20 + $0x28] sm:$0xff] }
  0x2b   : > { %v509_v38 = vmul.f32 %v3013_v4, %v487_v23  ;;  %v510_v39 = vmul.f32 %v3013_v4, %v488_v24  ;;  %2812 = vmatprep.subr.msk.bf16.mxu1 %vm807_vm0, %v3129_v25  ;;  %v519_v46 = vmul.f32 %v3013_v4, %v497_v30  ;;  %v520_v47 = vmul.f32 %v3013_v4, %v498_v31 }
  0x2c   : > { %v718_v41 = vsel %vm715_vm2, %v716_v19, %v717_v32  ;;  %v720_v42 = vsel %vm715_vm2, %v717_v32, %v719_v33  ;;  %v556_v49 = vmax.f32 %v540_v36, 0.0  ;;  %v628_v50 = vrot.slane %v555_v37, 7 }
  0x2d   : > { %v772_v48 = vpack.c.bf16 %v720_v42, %v718_v41  ;;  %v531_v51 = vadd.f32 %v3023_v5, %v509_v38  ;;  %v532_v52 = vadd.f32 %v3023_v5, %v510_v39  ;;  %v541_v55 = vadd.f32 %v3023_v5, %v519_v46 }
  0x2e   : > { %v542_v56 = vadd.f32 %v3023_v5, %v520_v47  ;;  %v511_v58 = vmul.f32 %v3013_v4, %v489_v40  ;;  %v629_v60 = vrot.slane %v556_v49, 7  ;;  %v3167_v61 = vsel %vm609_vm1, 0.0, %v628_v50 }
  0x2f   : > { %2646 = vmatprep.mubr.msk.bf16.mxu0 %vm782_vm3, %v772_v48  ;;  %v547_v62 = vmax.f32 %v531_v51, 0.0  ;;  %v512_v63 = vmul.f32 %v3013_v4, %v490_v28  ;;  %v746_v7 = vrot.slane %v3167_v61, 1  ;;  %v548_v8 = vmax.f32 %v532_v52, 0.0 }
  0x30   : > { %2647 = vmatmul.mubr.msk.bf16.vlgmr.msra.gmra.mxu0 %vm782_vm3, %v3140_v3  ;;  %v557_v9 = vmax.f32 %v541_v55, 0.0  ;;  %v558_v10 = vmax.f32 %v542_v56, 0.0  ;;  %v3179_v11 = vsel %vm609_vm1, %v628_v50, %v629_v60  ;;  %v3182_v12 = vsel %vm609_vm1, %v629_v60, 0.0 }
  0x31   : > { %2681 = vmatpush3.bf16.msra.mxu0 %v1124_v22  ;;  %v616_v13 = vrot.slane %v547_v62, 7  ;;  %v533_v14 = vadd.f32 %v3023_v5, %v511_v58  ;;  %v747_v15 = vrot.slane %v3179_v11, 1  ;;  %v749_v18 = vrot.slane %v3182_v12, 1 }
  0x32   : > { %v617_v19 = vrot.slane %v548_v8, 7  ;;  %v631_v20 = vrot.slane %v557_v9, 7  ;;  %2813 = vmatprep.subr.msk.bf16.mxu0 %vm807_vm0, %v3173_v0  ;;  %v632_v22 = vrot.slane %v558_v10, 7  ;;  %v534_v23 = vadd.f32 %v3023_v5, %v512_v63 }
  0x33   : > { %v672_v21 = vsel %vm609_vm1, 0.0, %v616_v13  ;;  %v549_v24 = vmax.f32 %v533_v14, 0.0  ;;  %v748_v30 = vsel %vm715_vm2, %v746_v7, %v747_v15  ;;  %v750_v31 = vsel %vm715_vm2, %v747_v15, %v749_v18 }
  0x34   : > { %v618_v32 = vsel %vm609_vm1, %v616_v13, %v617_v19  ;;  %v682_v33 = vsel %vm609_vm1, %v617_v19, 0.0  ;;  %v3195_v36 = vpack.c.bf16 %v750_v31, %v748_v30  ;;  %v726_v37 = vrot.slane %v672_v21, 1 }
  0x35   : > { %v727_v38 = vrot.slane %v618_v32, 1  ;;  %v729_v39 = vrot.slane %v682_v33, 1  ;;  %v3198_v40 = vsel %vm609_vm1, %v631_v20, %v632_v22  ;;  %v3201_v41 = vsel %vm609_vm1, 0.0, %v631_v20 }
  0x36   : > { %v3204_v42 = vsel %vm609_vm1, %v632_v22, 0.0  ;;  %v550_v46 = vmax.f32 %v534_v23, 0.0  ;;  %2658 = vmatprep.mubr.msk.bf16.mxu1 %vm782_vm3, %v3195_v36  ;;  %v751_v48 = vrot.slane %v3201_v41, 1  ;;  %v752_v49 = vrot.slane %v3198_v40, 1 }
  0x37   : > { %v728_v47 = vsel %vm715_vm2, %v726_v37, %v727_v38  ;;  %v730_v28 = vsel %vm715_vm2, %v727_v38, %v729_v39  ;;  %v754_v51 = vrot.slane %v3204_v42, 1  ;;  %v619_v52 = vrot.slane %v549_v24, 7 }
  0x38   : > { %v3212_v50 = vpack.c.bf16 %v730_v28, %v728_v47  ;;  %v620_v55 = vrot.slane %v550_v46, 7  ;;  %v753_v56 = vsel %vm715_vm2, %v751_v48, %v752_v49  ;;  %v690_v58 = vpack.c.bf16 %v3132_v26, %v3114_v16  ;;  %v499_v46 = vld [vmem:[%s3018_s20 + $0x70] sm:$0xff]  ;;  %v500_v48 = vld [vmem:[%s3018_s20 + $0x78] sm:$0xff]  ;;  %s469_s20 = sadd.s32 %s2880_s30, %s2444_s27 }
  0x39   : > { %v1035_v60 = vsel %vm1032_vm4, %v1033_v29, %v1034_v34  ;;  %v755_v62 = vsel %vm715_vm2, %v752_v49, %v754_v51  ;;  %v673_v7 = vsel %vm609_vm1, 0.0, %v619_v52  ;;  %v1038_v16 = vrot.slane %v3100_v2, 2  ;;  %p470_p9 = scmp.lt.s32.totalorder %s469_s20, 3 }
  0x3a   : > { %2650 = vmatprep.mubr.msk.bf16.mxu0 %vm782_vm3, %v3212_v50  ;;  %v621_v63 = vsel %vm609_vm1, %v619_v52, %v620_v55  ;;  %v683_v8 = vsel %vm609_vm1, %v620_v55, 0.0  ;;  %v3229_v9 = vpack.c.bf16 %v755_v62, %v753_v56  ;;  %v731_v10 = vrot.slane %v673_v7, 1 }
  0x3b   : > { %v732_v13 = vrot.slane %v621_v63, 1  ;;  %v734_v14 = vrot.slane %v683_v8, 1  ;;  %v1039_v29 = vrot.slane %v3097_v1, 2  ;;  %v1037_v15 = vsel %vm1032_vm4, %v1034_v34, %v1036_v35  ;;  %s3969_s20 = smov (!%p470_p9, %s469_s20), 3 }
  0x3c   : > { %v1041_v18 = vrot.slane %v3103_v6, 2  ;;  %2659 = vmatmul.mubr.msk.bf16.gmra.mxu1 %vm782_vm3, %v3229_v9  ;;  %v1089_v22 = vpack.c.bf16 %v1037_v15, %v1035_v60  ;;  %v1043_v27 = vrot.slane %v672_v21, 2  ;;  %v1044_v24 = vrot.slane %v618_v32, 2  ;;  %v579_v60 = vld [vmem:[%s456_s28 + $0x8] sm:$0xff]  ;;  %s472_s10 = scalar_lea.vmem %s3916_s8, %s3969_s20  ;;  %s479_s22 = scalar_lea.vmem %s3917_s9, %s3969_s20 }
  0x3d   : > { %v733_v19 = vsel %vm715_vm2, %v731_v10, %v732_v13  ;;  %v735_v20 = vsel %vm715_vm2, %v732_v13, %v734_v14  ;;  %2664 = vmatprep.mubr.msk.bf16.mxu1 %vm782_vm3, %v690_v58  ;;  %v1046_v26 = vrot.slane %v682_v33, 2  ;;  %v3250_v6 = vpack.c.bf16 %v3097_v1, %v3100_v2 }
  0x3e   : > { %v3243_v23 = vpack.c.bf16 %v735_v20, %v733_v19  ;;  %v1040_v34 = vsel %vm1032_vm4, %v1038_v16, %v1039_v29  ;;  %v1042_v35 = vsel %vm1032_vm4, %v1039_v29, %v1041_v18  ;;  %v1048_v30 = vrot.slane %v673_v7, 2 }
  0x3f   : > { %v1049_v31 = vrot.slane %v621_v63, 2  ;;  %v1051_v37 = vrot.slane %v683_v8, 2  ;;  %v3260_v33 = vpack.c.bf16 %v618_v32, %v672_v21  ;;  %v1045_v1 = vsel %vm1032_vm4, %v1043_v27, %v1044_v24  ;;  %v3280_v32 = vld [vmem:[%s3913_s5 + $0xa] sm:$0x3] }
  0x40   : > { %2651 = vmatmul.mubr.msk.bf16.gmra.mxu0 %vm782_vm3, %v3243_v23  ;;  %v1047_v2 = vsel %vm1032_vm4, %v1044_v24, %v1046_v26  ;;  %v1246_v38 = vsel %vm807_vm0, %v3129_v25, 0  ;;  %v1377_v39 = vsel %vm807_vm0, %v3173_v0, 0  ;;  %v3273_v47 = vpack.c.bf16 %v1042_v35, %v1040_v34  ;;  %v578_v25 = vld [vmem:[%s456_s28] sm:$0xff]  ;;  %s2443_s28 = sshll.u32 %s3006_s26, 2 }
  0x41   : > { %2682 = vmatprep.mubr.msk.bf16.mxu0 %vm782_vm3, %v1089_v22  ;;  %v1053_v28 = vrot.slane %v3069_v44, 2  ;;  %v1054_v21 = vrot.slane %v3066_v43, 2  ;;  %v1056_v49 = vrot.slane %v3072_v45, 2  ;;  %v3286_v0 = vpack.c.bf16 %v1047_v2, %v1045_v1  ;;  %s3696_s25 = scalar_lea.vmem %s3915_s7, %s2443_s28 }
  0x42   : > { %v1050_v51 = vsel %vm1032_vm4, %v1048_v30, %v1049_v31  ;;  %v1052_v52 = vsel %vm1032_vm4, %v1049_v31, %v1051_v37  ;;  %v3292_v55 = vpack.c.bf16 %v621_v63, %v673_v7  ;;  %v1058_v56 = vrot.slane %v3083_v54, 2  ;;  %v3307_v63 = vld [vmem:[%s3913_s5 + $0xc] sm:$0x3] }
  0x43   : > { %v1059_v45 = vrot.slane %v3080_v53, 2  ;;  %v521_v58 = vmul.f32 %v3013_v4, %v499_v46  ;;  %v3299_v62 = vpack.c.bf16 %v3066_v43, %v3069_v44  ;;  %v1061_v8 = vrot.slane %v3088_v57, 2 }
  0x44   : > { %2665 = vmatmul.mubr.msk.bf16.vlgmr.msra.gmra.mxu1 %vm782_vm3, %v3250_v6  ;;  %v522_v7 = vmul.f32 %v3013_v4, %v500_v48  ;;  %v580_v10 = vmul.f32 %v3013_v4, %v578_v25  ;;  %v3314_v43 = vpack.c.bf16 %v1052_v52, %v1050_v51  ;;  %v3318_v44 = vpack.c.bf16 %v3080_v53, %v3083_v54 }
  0x45   : > { %2699 = vmatpush3.bf16.msra.mxu1 %v1246_v38  ;;  %2668 = vmatprep.mubr.msk.bf16.mxu1 %vm782_vm3, %v3260_v33  ;;  %v1055_v57 = vsel %vm1032_vm4, %v1053_v28, %v1054_v21  ;;  %v543_v13 = vadd.f32 %v3023_v5, %v521_v58  ;;  %v1057_v14 = vsel %vm1032_vm4, %v1054_v21, %v1056_v49  ;;  %v586_v27 = vstv %s566_s17 }
  0x46   : > { %2814 = vmatprep.subr.msk.bf16.mxu1 %vm807_vm0, %v3280_v32  ;;  %v544_v16 = vadd.f32 %v3023_v5, %v522_v7  ;;  %v581_v29 = vmul.f32 %v3013_v4, %v579_v60  ;;  %v1060_v15 = vsel %vm1032_vm4, %v1058_v56, %v1059_v45  ;;  %v3330_v53 = vpack.c.bf16 %v3179_v11, %v3167_v61 }
  0x47   : > { %v559_v54 = vmax.f32 %v543_v13, 0.0  ;;  %v582_v18 = vadd.f32 %v3023_v5, %v580_v10  ;;  %v1062_v19 = vsel %vm1032_vm4, %v1059_v45, %v1061_v8  ;;  %v3337_v24 = vpack.c.bf16 %v1057_v14, %v1055_v57 }
  0x48   : > { %2683 = vmatmul.mubr.msk.bf16.vlgmr.msra.gmra.mxu0 %vm782_vm3, %v3273_v47  ;;  %v560_v20 = vmax.f32 %v544_v16, 0.0  ;;  %v583_v22 = vadd.f32 %v3023_v5, %v581_v29  ;;  %v1063_v4 = vrot.slane %v3167_v61, 2  ;;  %v1064_v35 = vrot.slane %v3179_v11, 2 }
  0x49   : > { %2717 = vmatpush3.bf16.msra.mxu0 %v1377_v39  ;;  %2686 = vmatprep.mubr.msk.bf16.mxu0 %vm782_vm3, %v3286_v0  ;;  %v634_v26 = vrot.slane %v559_v54, 7  ;;  %v584_v34 = vmax.f32 %v582_v18, 0.0  ;;  %v1066_v30 = vrot.slane %v3182_v12, 2  ;;  %v3346_v5 = vpack.c.bf16 %v1062_v19, %v1060_v15 }
  0x4a   : > { %2815 = vmatprep.subr.msk.bf16.mxu0 %vm807_vm0, %v3307_v63  ;;  %v635_v31 = vrot.slane %v560_v20, 7  ;;  %v585_v37 = vmax.f32 %v583_v22, 0.0  ;;  %v1068_v1 = vrot.slane %v3201_v41, 2  ;;  %v1065_v25 = vsel %vm1032_vm4, %v1063_v4, %v1064_v35 }
  0x4b   : > { %v678_v61 = vsel %vm609_vm1, 0.0, %v634_v26  ;;  %v587_v2 = vmul.f32 %v586_v27, %v584_v34  ;;  %v1067_v56 = vsel %vm1032_vm4, %v1064_v35, %v1066_v30  ;;  %v1069_v13 = vrot.slane %v3198_v40, 2 }
  0x4c   : > { %2669 = vmatmul.mubr.msk.bf16.gmra.mxu1 %vm782_vm3, %v3292_v55  ;;  %v636_v38 = vsel %vm609_vm1, %v634_v26, %v635_v31  ;;  %v1363_v39 = vrot.slane %v678_v61, 1  ;;  %v1492_v46 = vrot.slane %v678_v61, 2  ;;  %v688_v11 = vsel %vm609_vm1, %v635_v31, 0.0 }
  0x4d   : > { %2672 = vmatprep.mubr.msk.bf16.mxu1 %vm782_vm3, %v3299_v62  ;;  %v3354_v12 = vpack.c.bf16 %v636_v38, %v678_v61  ;;  %v1364_v28 = vrot.slane %v636_v38, 1  ;;  %v1493_v21 = vrot.slane %v636_v38, 2  ;;  %v1366_v48 = vrot.slane %v688_v11, 1  ;;  %v2510_v38 = vld [vmem:[%s3913_s5 + $0xe] sm:$0x3] }
  0x4e   : > { %v1495_v49 = vrot.slane %v688_v11, 2  ;;  %v588_v51 = vmul.f32 %v586_v27, %v585_v37  ;;  %v637_v52 = vrot.slane %v587_v2, 7  ;;  %v3376_v15 = vpack.c.bf16 %v1067_v56, %v1065_v25 }
  0x4f   : > { %v1365_v45 = vsel %vm715_vm2, %v1363_v39, %v1364_v28  ;;  %v1367_v58 = vsel %vm715_vm2, %v1364_v28, %v1366_v48  ;;  %v1494_v60 = vsel %vm1032_vm4, %v1492_v46, %v1493_v21  ;;  %v1071_v54 = vrot.slane %v3204_v42, 2 }
  0x50   : > { %2687 = vmatmul.mubr.msk.bf16.gmra.mxu0 %vm782_vm3, %v3314_v43  ;;  %v3363_v8 = vpack.c.bf16 %v1367_v58, %v1365_v45  ;;  %v1496_v7 = vsel %vm1032_vm4, %v1493_v21, %v1495_v49  ;;  %v638_v10 = vrot.slane %v588_v51, 7  ;;  %v3367_v57 = vsel %vm609_vm1, 0.0, %v637_v52 }
  0x51   : > { %2690 = vmatprep.mubr.msk.bf16.mxu0 %vm782_vm3, %v3337_v24  ;;  %v3370_v14 = vpack.c.bf16 %v1496_v7, %v1494_v60  ;;  %v1745_v16 = vrot.slane %v3367_v57, 1  ;;  %v1874_v29 = vrot.slane %v3367_v57, 2  ;;  %v697_v42 = vpack.c.bf16 %v3198_v40, %v3201_v41 }
  0x52   : > { %v3380_v18 = vsel %vm609_vm1, %v637_v52, %v638_v10  ;;  %v689_v19 = vsel %vm609_vm1, %v638_v10, 0.0  ;;  %v1070_v31 = vsel %vm1032_vm4, %v1068_v1, %v1069_v13  ;;  %v1072_v37 = vsel %vm1032_vm4, %v1069_v13, %v1071_v54 }
  0x53   : > { %v1621_v20 = vpack.c.bf16 %v3380_v18, %v3367_v57  ;;  %v1746_v22 = vrot.slane %v3380_v18, 1  ;;  %v1875_v27 = vrot.slane %v3380_v18, 2  ;;  %v1748_v4 = vrot.slane %v689_v19, 1 }
  0x54   : > { %2673 = vmatmul.mubr.msk.bf16.gmra.mxu1 %vm782_vm3, %v3318_v44  ;;  %v1877_v26 = vrot.slane %v689_v19, 2  ;;  %v1096_v2 = vpack.c.bf16 %v1072_v37, %v1070_v31  ;;  %v1506_v1 = vsel %vm807_vm0, %v3280_v32, 0  ;;  %v1628_v39 = vsel %vm807_vm0, %v3307_v63, 0 }
  0x55   : > { %2676 = vmatprep.mubr.msk.bf16.mxu1 %vm782_vm3, %v3330_v53  ;;  %v3394_v34 = vsel %vm715_vm2, %v1745_v16, %v1746_v22  ;;  %v3397_v35 = vsel %vm715_vm2, %v1746_v22, %v1748_v4  ;;  %v3400_v30 = vsel %vm1032_vm4, %v1874_v29, %v1875_v27 }
  0x56   : > { %v1752_v61 = vpack.c.bf16 %v3397_v35, %v3394_v34  ;;  %v3409_v40 = vsel %vm1032_vm4, %v1875_v27, %v1877_v26 }
  0x57   : > { %v1881_v41 = vpack.c.bf16 %v3409_v40, %v3400_v30 }
  0x58   : > { %2691 = vmatmul.mubr.msk.bf16.gmra.mxu0 %vm782_vm3, %v3346_v5 }
  0x59   : > { %2694 = vmatprep.mubr.msk.bf16.mxu0 %vm782_vm3, %v3376_v15 }
  0x5c   : > { %2677 = vmatmul.mubr.msk.bf16.gmra.mxu1 %vm782_vm3, %v697_v42 }
  0x5d   : > { %2700 = vmatprep.mubr.msk.bf16.mxu1 %vm782_vm3, %v3250_v6  ;;  %v1759_v6 = vsel %vm807_vm0, %v2510_v38, 0 }
  0x60   : > { %2695 = vmatmul.mubr.msk.bf16.gmra.mxu0 %vm782_vm3, %v1096_v2 }
  0x61   : > { %2718 = vmatprep.mubr.msk.bf16.mxu0 %vm782_vm3, %v3140_v3  ;;  %v2519_v3 = vld [vmem:[%s3913_s5 + $0x10] sm:$0x3] }
  0x62   : > { %v1888_v32 = vsel %vm807_vm0, %v2519_v3, 0 }
  0x64   : > { %2701 = vmatmul.mubr.msk.bf16.vlgmr.msra.gmra.mxu1 %vm782_vm3, %v3260_v33 }
  0x65   : > { %2735 = vmatpush3.bf16.msra.mxu1 %v1506_v1  ;;  %2704 = vmatprep.mubr.msk.bf16.mxu1 %vm782_vm3, %v3292_v55 }
  0x66   : > { %2816 = vmatprep.subr.msk.bf16.mxu1 %vm807_vm0, %v2510_v38 }
  0x68   : > { %2719 = vmatmul.mubr.msk.bf16.vlgmr.msra.gmra.mxu0 %vm782_vm3, %v3212_v50 }
  0x69   : > { %2753 = vmatpush3.bf16.msra.mxu0 %v1628_v39  ;;  %2722 = vmatprep.mubr.msk.bf16.mxu0 %vm782_vm3, %v3243_v23 }
  0x6a   : > { %2817 = vmatprep.subr.msk.bf16.mxu0 %vm807_vm0, %v2519_v3 }
  0x6c   : > { %2705 = vmatmul.mubr.msk.bf16.gmra.mxu1 %vm782_vm3, %v3299_v62 }
  0x6d   : > { %2708 = vmatprep.mubr.msk.bf16.mxu1 %vm782_vm3, %v3318_v44 }
  0x70   : > { %2723 = vmatmul.mubr.msk.bf16.gmra.mxu0 %vm782_vm3, %v3091_v59 }
  0x71   : > { %2726 = vmatprep.mubr.msk.bf16.mxu0 %vm782_vm3, %v3116_v17 }
  0x74   : > { %2709 = vmatmul.mubr.msk.bf16.gmra.mxu1 %vm782_vm3, %v3330_v53 }
  0x75   : > { %2712 = vmatprep.mubr.msk.bf16.mxu1 %vm782_vm3, %v697_v42 }
  0x78   : > { %2727 = vmatmul.mubr.msk.bf16.gmra.mxu0 %vm782_vm3, %v3195_v36 }
  0x79   : > { %2730 = vmatprep.mubr.msk.bf16.mxu0 %vm782_vm3, %v3229_v9 }
  0x7c   : > { %2713 = vmatmul.mubr.msk.bf16.gmra.mxu1 %vm782_vm3, %v3354_v12 }
  0x7d   : > { %2736 = vmatprep.mubr.msk.bf16.mxu1 %vm782_vm3, %v3273_v47 }
  0x80   : > { %2731 = vmatmul.mubr.msk.bf16.gmra.mxu0 %vm782_vm3, %v3363_v8 }
  0x81   : > { %2754 = vmatprep.mubr.msk.bf16.mxu0 %vm782_vm3, %v3260_v33 }
  0x84   : > { %2737 = vmatmul.mubr.msk.bf16.vlgmr.msra.gmra.mxu1 %vm782_vm3, %v3286_v0 }
  0x85   : > { %2771 = vmatpush3.bf16.msra.mxu1 %v1759_v6  ;;  %2740 = vmatprep.mubr.msk.bf16.mxu1 %vm782_vm3, %v3314_v43 }
  0x88   : > { %2755 = vmatmul.mubr.msk.bf16.vlgmr.msra.gmra.mxu0 %vm782_vm3, %v3292_v55 }
  0x89   : > { %2789 = vmatpush3.bf16.msra.mxu0 %v1888_v32  ;;  %2758 = vmatprep.mubr.msk.bf16.mxu0 %vm782_vm3, %v3299_v62 }
  0x8c   : > { %2741 = vmatmul.mubr.msk.bf16.gmra.mxu1 %vm782_vm3, %v3337_v24 }
  0x8d   : > { %2744 = vmatprep.mubr.msk.bf16.mxu1 %vm782_vm3, %v3346_v5 }
  0x90   : > { %2759 = vmatmul.mubr.msk.bf16.gmra.mxu0 %vm782_vm3, %v3318_v44 }
  0x91   : > { %2762 = vmatprep.mubr.msk.bf16.mxu0 %vm782_vm3, %v3330_v53 }
  0x94   : > { %2745 = vmatmul.mubr.msk.bf16.gmra.mxu1 %vm782_vm3, %v3376_v15 }
  0x95   : > { %2748 = vmatprep.mubr.msk.bf16.mxu1 %vm782_vm3, %v1096_v2 }
  0x98   : > { %2763 = vmatmul.mubr.msk.bf16.gmra.mxu0 %vm782_vm3, %v697_v42 }
  0x99   : > { %2766 = vmatprep.mubr.msk.bf16.mxu0 %vm782_vm3, %v3354_v12 }
  0x9c   : > { %2749 = vmatmul.mubr.msk.bf16.gmra.mxu1 %vm782_vm3, %v3370_v14 }
  0x9d   : > { %2772 = vmatprep.mubr.msk.bf16.mxu1 %vm782_vm3, %v3212_v50 }
  0xa0   : > { %2767 = vmatmul.mubr.msk.bf16.gmra.mxu0 %vm782_vm3, %v1621_v20 }
  0xa1   : > { %2790 = vmatprep.mubr.msk.bf16.mxu0 %vm782_vm3, %v3286_v0 }
  0xa4   : > { %2773 = vmatmul.mubr.msk.bf16.vlgmr.msra.gmra.mxu1 %vm782_vm3, %v3243_v23 }
  0xa5   : > { %2776 = vmatprep.mubr.msk.bf16.mxu1 %vm782_vm3, %v3091_v59 }
  0xa8   : > { %2791 = vmatmul.mubr.msk.bf16.vlgmr.msra.gmra.mxu0 %vm782_vm3, %v3314_v43 }
  0xa9   : > { %2794 = vmatprep.mubr.msk.bf16.mxu0 %vm782_vm3, %v3337_v24 }
  0xac   : > { %2777 = vmatmul.mubr.msk.bf16.gmra.mxu1 %vm782_vm3, %v3116_v17 }
  0xad   : > { %2780 = vmatprep.mubr.msk.bf16.mxu1 %vm782_vm3, %v3195_v36 }
  0xb0   : > { %2795 = vmatmul.mubr.msk.bf16.gmra.mxu0 %vm782_vm3, %v3346_v5 }
  0xb1   : > { %2798 = vmatprep.mubr.msk.bf16.mxu0 %vm782_vm3, %v3376_v15 }
  0xb4   : > { %2781 = vmatmul.mubr.msk.bf16.gmra.mxu1 %vm782_vm3, %v3229_v9 }
  0xb5   : > { %2784 = vmatprep.mubr.msk.bf16.mxu1 %vm782_vm3, %v3363_v8 }
  0xb8   : > { %2799 = vmatmul.mubr.msk.bf16.gmra.mxu0 %vm782_vm3, %v1096_v2 }
  0xb9   : > { %2802 = vmatprep.mubr.msk.bf16.mxu0 %vm782_vm3, %v3370_v14 }
  0xbc   : > { %2785 = vmatmul.mubr.msk.bf16.gmra.mxu1 %vm782_vm3, %v1752_v61 }
  0xc0   : > { %2803 = vmatmul.mubr.msk.bf16.gmra.mxu0 %vm782_vm3, %v1881_v41 }
  0xe9   : > { %v2656_v59 = vpop.f32.mrf.mxu1 }
  0xeb   : > { %v877_v36 = vpop.f32.mrf.mxu1 }
  0xed   : > { %v2657_v9 = vpop.f32.mrf.mxu1 }
  0xef   : > { %v880_v33 = vpop.f32.mrf.mxu1 }
  0xf0   : > { %v2648_v17 = vpop.f32.mrf.mxu0 }
  0xf2   : > { %v845_v50 = vpop.f32.mrf.mxu0 }
  0xf4   : > { %v2649_v23 = vpop.f32.mrf.mxu0 }
  0xf6   : > { %v848_v47 = vpop.f32.mrf.mxu0 }
  0xfc   : > { %v2660_v0 = vpop.f32.mrf.mxu1 }
  0xfe   : > { %v893_v55 = vpop.f32.mrf.mxu1 }
 0x100   : > { %v2652_v62 = vpop.f32.mrf.mxu0  ;;  %v2661_v63 = vpop.f32.mrf.mxu1 }
 0x102   : > { %v861_v43 = vpop.f32.mrf.mxu0  ;;  %v3527_v44 = vpop.f32.mrf.mxu1 }
 0x104   : > { %v2653_v53 = vpop.f32.mrf.mxu0  ;;  %v2666_v24 = vpop.f32.mrf.mxu1 }
 0x105   : > { %v978_v46 = vadd.f32 %v2666_v24, %v2648_v17 }
 0x106   : > { %v864_v5 = vpop.f32.mrf.mxu0  ;;  %v969_v11 = vpop.f32.mrf.mxu1 }
 0x107   : > { %v970_v28 = vadd.f32 %v969_v11, %v845_v50 }
 0x108   : > { %v2684_v12 = vpop.f32.mrf.mxu0  ;;  %v2667_v48 = vpop.f32.mrf.mxu1 }
 0x109   : > { %v3529_v21 = vadd.f32 %v2684_v12, %v978_v46  ;;  %v981_v49 = vadd.f32 %v2667_v48, %v2649_v23 }
 0x10a   : > { %v1160_v25 = vpop.f32.mrf.mxu0  ;;  %v972_v52 = vpop.f32.mrf.mxu1 }
 0x10b   : > { %v3531_v51 = vadd.f32 %v1160_v25, %v970_v28  ;;  %v973_v45 = vadd.f32 %v972_v52, %v848_v47 }
 0x10c   : > { %v2685_v56 = vpop.f32.mrf.mxu0  ;;  %v2670_v60 = vpop.f32.mrf.mxu1 }
 0x10d   : > { %v3533_v58 = vadd.f32 %v2685_v56, %v981_v49  ;;  %v994_v7 = vadd.f32 %v2670_v60, %v2652_v62 }
 0x10e   : > { %v1163_v8 = vpop.f32.mrf.mxu0  ;;  %v985_v57 = vpop.f32.mrf.mxu1 }
 0x10f   : > { %v3535_v10 = vadd.f32 %v1163_v8, %v973_v45  ;;  %v986_v14 = vadd.f32 %v985_v57, %v861_v43 }
 0x110   : > { %v2688_v13 = vpop.f32.mrf.mxu0  ;;  %v2671_v29 = vpop.f32.mrf.mxu1 }
 0x111   : > { %v3537_v16 = vadd.f32 %v2688_v13, %v994_v7  ;;  %v997_v54 = vadd.f32 %v2671_v29, %v2653_v53 }
 0x112   : > { %v1176_v15 = vpop.f32.mrf.mxu0  ;;  %v988_v19 = vpop.f32.mrf.mxu1 }
 0x113   : > { %v3539_v18 = vadd.f32 %v1176_v15, %v986_v14  ;;  %v989_v22 = vadd.f32 %v988_v19, %v864_v5 }
 0x114   : > { %v2689_v20 = vpop.f32.mrf.mxu0  ;;  %v2674_v4 = vpop.f32.mrf.mxu1 }
 0x115   : > { %v3541_v27 = vadd.f32 %v2689_v20, %v997_v54  ;;  %v1010_v42 = vadd.f32 %v2674_v4, %v2656_v59 }
 0x116   : > { %v1179_v26 = vpop.f32.mrf.mxu0  ;;  %v1001_v35 = vpop.f32.mrf.mxu1 }
 0x117   : > { %v3543_v34 = vadd.f32 %v1179_v26, %v989_v22  ;;  %v1002_v31 = vadd.f32 %v1001_v35, %v877_v36 }
 0x118   : > { %v2692_v30 = vpop.f32.mrf.mxu0  ;;  %v2675_v61 = vpop.f32.mrf.mxu1 }
 0x119   : > { %v3545_v37 = vadd.f32 %v2692_v30, %v1010_v42  ;;  %v1013_v41 = vadd.f32 %v2675_v61, %v2657_v9 }
 0x11a   : > { %v1192_v40 = vpop.f32.mrf.mxu0  ;;  %v1004_v1 = vpop.f32.mrf.mxu1 }
 0x11b   : > { %v3547_v2 = vadd.f32 %v1192_v40, %v1002_v31  ;;  %v1005_v39 = vadd.f32 %v1004_v1, %v880_v33 }
 0x11c   : > { %v2693_v38 = vpop.f32.mrf.mxu0  ;;  %v2678_v6 = vpop.f32.mrf.mxu1 }
 0x11d   : > { %v3549_v3 = vadd.f32 %v2693_v38, %v1013_v41  ;;  %v1026_v59 = vadd.f32 %v2678_v6, %v2660_v0 }
 0x11e   : > { %v1195_v32 = vpop.f32.mrf.mxu0  ;;  %v1017_v50 = vpop.f32.mrf.mxu1 }
 0x11f   : > { %v3551_v17 = vadd.f32 %v1195_v32, %v1005_v39  ;;  %v1018_v36 = vadd.f32 %v1017_v50, %v893_v55 }
 0x120   : > { %v2696_v23 = vpop.f32.mrf.mxu0  ;;  %v2679_v62 = vpop.f32.mrf.mxu1 }
 0x121   : > { %v3553_v47 = vadd.f32 %v2696_v23, %v1026_v59  ;;  %v1029_v9 = vadd.f32 %v2679_v62, %v2661_v63 }
 0x122   : > { %v1208_v43 = vpop.f32.mrf.mxu0  ;;  %v1020_v24 = vpop.f32.mrf.mxu1 }
 0x123   : > { %v3555_v53 = vadd.f32 %v1208_v43, %v1018_v36  ;;  %v1021_v33 = vadd.f32 %v1020_v24, %v3527_v44 }
 0x124   : > { %v2697_v5 = vpop.f32.mrf.mxu0  ;;  %v2702_v11 = vpop.f32.mrf.mxu1 }
 0x125   : > { %v3558_v46 = vadd.f32 %v2697_v5, %v1029_v9 }
 0x126   : > { %v1211_v0 = vpop.f32.mrf.mxu0  ;;  %v1282_v28 = vpop.f32.mrf.mxu1 }
 0x127   : > { %v3560_v12 = vadd.f32 %v1211_v0, %v1021_v33 }
 0x128   : > { %v2720_v48 = vpop.f32.mrf.mxu0  ;;  %v2703_v55 = vpop.f32.mrf.mxu1 }
 0x129   : > { %3918 = vst [vmem:[#allocation2_spill] sm:$0xff] %v3560_v12 }
 0x12a   : > { %v1413_v25 = vpop.f32.mrf.mxu0  ;;  %v1285_v49 = vpop.f32.mrf.mxu1 }
 0x12c   : > { %v2721_v52 = vpop.f32.mrf.mxu0  ;;  %v2706_v56 = vpop.f32.mrf.mxu1 }
 0x12e   : > { %v3562_v63 = vpop.f32.mrf.mxu0  ;;  %v1298_v45 = vpop.f32.mrf.mxu1 }
 0x130   : > { %v3564_v60 = vpop.f32.mrf.mxu0  ;;  %v2707_v8 = vpop.f32.mrf.mxu1 }
 0x132   : > { %v3566_v44 = vpop.f32.mrf.mxu0  ;;  %v1301_v7 = vpop.f32.mrf.mxu1 }
 0x134   : > { %v3568_v57 = vpop.f32.mrf.mxu0  ;;  %v3570_v13 = vpop.f32.mrf.mxu1 }
 0x136   : > { %v3572_v14 = vpop.f32.mrf.mxu0  ;;  %v3574_v29 = vpop.f32.mrf.mxu1 }
 0x138   : > { %v3576_v15 = vpop.f32.mrf.mxu0  ;;  %v2711_v54 = vpop.f32.mrf.mxu1 }
 0x13a   : > { %v3578_v19 = vpop.f32.mrf.mxu0  ;;  %v3580_v20 = vpop.f32.mrf.mxu1 }
 0x13c   : > { %v3582_v22 = vpop.f32.mrf.mxu0  ;;  %v3584_v4 = vpop.f32.mrf.mxu1 }
 0x13e   : > { %v3586_v26 = vpop.f32.mrf.mxu0  ;;  %v3588_v42 = vpop.f32.mrf.mxu1 }
 0x140   : > { %v3590_v35 = vpop.f32.mrf.mxu0  ;;  %v3592_v30 = vpop.f32.mrf.mxu1 }
 0x141   : > { %3919 = vst [vmem:[#allocation3_spill] sm:$0xff] %v3590_v35 }
 0x142   : > { %v3594_v31 = vpop.f32.mrf.mxu0  ;;  %v3596_v61 = vpop.f32.mrf.mxu1 }
 0x143   : > { %3920 = vst [vmem:[#allocation4_spill] sm:$0xff] %v3594_v31  ;;  %3921 = vst [vmem:[#allocation5_spill] sm:$0xff] %v3596_v61  ;;  %v1347_v61 = vadd.f32 %v2702_v11, %v3529_v21  ;;  %v1346_v21 = vadd.f32 %v1285_v49, %v3535_v10  ;;  %v1350_v10 = vadd.f32 %v1301_v7, %v3543_v34 }
 0x144   : > { %v3598_v40 = vpop.f32.mrf.mxu0  ;;  %v2738_v41 = vpop.f32.mrf.mxu1 }
 0x145   : > { %3922 = vst [vmem:[#allocation6_spill] sm:$0xff] %v3598_v40 }
 0x146   : > { %v3600_v1 = vpop.f32.mrf.mxu0  ;;  %v1542_v38 = vpop.f32.mrf.mxu1 }
 0x147   : > { %3923 = vst [vmem:[#allocation7_spill] sm:$0xff] %v3600_v1 }
 0x148   : > { %v2756_v39 = vpop.f32.mrf.mxu0  ;;  %v2739_v6 = vpop.f32.mrf.mxu1 }
 0x14a   : > { %v1664_v32 = vpop.f32.mrf.mxu0  ;;  %v1545_v59 = vpop.f32.mrf.mxu1 }
 0x14c   : > { %v2757_v50 = vpop.f32.mrf.mxu0  ;;  %v2742_v23 = vpop.f32.mrf.mxu1 }
 0x14e   : > { %v3602_v36 = vpop.f32.mrf.mxu0  ;;  %v3604_v62 = vpop.f32.mrf.mxu1 }
 0x150   : > { %v3606_v43 = vpop.f32.mrf.mxu0  ;;  %v3608_v9 = vpop.f32.mrf.mxu1 }
 0x151   : > { %3924 = vst [vmem:[#allocation8_spill] sm:$0xff] %v3608_v9 }
 0x152   : > { %v3610_v24 = vpop.f32.mrf.mxu0  ;;  %v3612_v5 = vpop.f32.mrf.mxu1 }
 0x153   : > { %3925 = vst [vmem:[#allocation9_spill] sm:$0xff] %v3610_v24  ;;  %3926 = vst [vmem:[#allocation10_spill] sm:$0xff] %v3612_v5  ;;  %v1345_v5 = vadd.f32 %v1282_v28, %v3531_v51  ;;  %v1351_v28 = vadd.f32 %v2706_v56, %v3537_v16  ;;  %v1355_v16 = vadd.f32 %v3570_v13, %v3545_v37 }
 0x154   : > { %v3614_v33 = vpop.f32.mrf.mxu0  ;;  %v3616_v0 = vpop.f32.mrf.mxu1  ;;  %v1354_v37 = vadd.f32 %v3580_v20, %v3551_v17 }
 0x155   : > { %3927 = vst [vmem:[#allocation11_spill] sm:$0xff] %v3614_v33  ;;  %3928 = vst [vmem:[#allocation12_spill] sm:$0xff] %v3616_v0  ;;  %v1478_v0 = vadd.f32 %v2720_v48, %v1347_v61  ;;  %v1352_v48 = vadd.f32 %v2707_v8, %v3541_v27  ;;  %v1482_v27 = vadd.f32 %v3564_v60, %v1351_v28 }
 0x156   : > { %v3618_v1 = vpop.f32.mrf.mxu0  ;;  %v3620_v40 = vpop.f32.mrf.mxu1 }
 0x157   : > { %3929 = vst [vmem:[#allocation13_spill] sm:$0xff] %v3618_v1  ;;  %3930 = vst [vmem:[#allocation14_spill] sm:$0xff] %v3620_v40  ;;  %v1348_v1 = vadd.f32 %v2703_v55, %v3533_v58  ;;  %v1607_v11 = vadd.f32 %v2738_v41, %v1478_v0  ;;  %v1349_v58 = vadd.f32 %v1298_v45, %v3539_v18 }
 0x158   : > { %v3622_v31 = vpop.f32.mrf.mxu0  ;;  %v3624_v35 = vpop.f32.mrf.mxu1  ;;  %v1356_v18 = vadd.f32 %v2711_v54, %v3549_v3  ;;  %v1481_v3 = vadd.f32 %v3572_v14, %v1350_v10  ;;  %v3673_v54 = vld [vmem:[%s3914_s6] ss:$0 sm:$0xff]  ;;  %v1359_v14 = vadd.f32 %v3584_v4, %v3553_v47  ;;  %v3937_v4 = vld [vmem:[#allocation8_spill] sm:$0xff] }
 0x159   : > { %3931 = vst [vmem:[#allocation15_spill] sm:$0xff] %v3622_v31  ;;  %3932 = vst [vmem:[#allocation16_spill] sm:$0xff] %v3624_v35  ;;  %v1476_v35 = vadd.f32 %v1413_v25, %v1345_v5  ;;  %v1479_v51 = vadd.f32 %v2721_v52, %v1348_v1  ;;  %v1477_v25 = vadd.f32 %v3562_v63, %v1346_v21  ;;  %v3940_v21 = vld [vmem:[#allocation3_spill] sm:$0xff] }
 0x15a   : > { %v3627_v12 = vpop.f32.mrf.mxu0  ;;  %v3629_v9 = vpop.f32.mrf.mxu1  ;;  %v1729_v49 = vadd.f32 %v2756_v39, %v1607_v11  ;;  %v1353_v52 = vadd.f32 %v3574_v29, %v3547_v2  ;;  %v1480_v7 = vadd.f32 %v3566_v44, %v1349_v58  ;;  %v1611_v29 = vadd.f32 %v2742_v23, %v1482_v27  ;;  %v3942_v58 = vld [vmem:[#allocation10_spill] sm:$0xff] }
 0x15b   : > { %3933 = vst [vmem:[#allocation17_spill] sm:$0xff] %v3627_v12  ;;  %3934 = vst [vmem:[#allocation18_spill] sm:$0xff] %v3629_v9  ;;  %v1608_v61 = vadd.f32 %v2739_v6, %v1479_v51  ;;  %v1606_v8 = vadd.f32 %v1545_v59, %v1477_v25  ;;  %v1486_v44 = vadd.f32 %v3576_v15, %v1355_v16  ;;  %v3941_v51 = vld [vmem:[#allocation9_spill] sm:$0xff]  ;;  %v3944_v27 = vld [vmem:[#allocation6_spill] sm:$0xff] }
 0x15c   : > { %v3632_v24 = vpop.f32.mrf.mxu0  ;;  %v3634_v33 = vpop.f32.mrf.mxu1  ;;  %v1609_v6 = vadd.f32 %v3604_v62, %v1480_v7  ;;  %v1357_v15 = vadd.f32 %v3588_v42, %v3555_v53  ;;  %v1733_v47 = vadd.f32 %v3606_v43, %v1611_v29  ;;  %v3938_v42 = vld [vmem:[#allocation2_spill] sm:$0xff]  ;;  %v3939_v62 = vld [vmem:[#allocation5_spill] sm:$0xff]  ;;  %v1490_v11 = vadd.f32 %v3940_v21, %v1359_v14  ;;  %v3946_v7 = vld [vmem:[#allocation12_spill] sm:$0xff] }
 0x15d   : > { %3935 = vst [vmem:[#allocation19_spill] sm:$0xff] %v3632_v24  ;;  %3936 = vst [vmem:[#allocation20_spill] sm:$0xff] %v3634_v33  ;;  %v1605_v24 = vadd.f32 %v1542_v38, %v1476_v35  ;;  %v1483_v35 = vadd.f32 %v3568_v57, %v1352_v48  ;;  %v1730_v13 = vadd.f32 %v2757_v50, %v1608_v61 }
 0x15e   : > { %v3637_v40 = vpop.f32.mrf.mxu0  ;;  %v3639_v31 = vpop.f32.mrf.mxu1  ;;  %v1484_v57 = vadd.f32 %v3578_v19, %v1353_v52  ;;  %v1487_v38 = vadd.f32 %v3582_v22, %v1356_v18  ;;  %v1728_v39 = vadd.f32 %v3602_v36, %v1606_v8  ;;  %v1485_v50 = vadd.f32 %v3586_v26, %v1354_v37  ;;  %v3945_v8 = vld [vmem:[#allocation11_spill] sm:$0xff] }
 0x15f   : > { %v1727_v45 = vadd.f32 %v1664_v32, %v1605_v24  ;;  %v1360_v24 = vadd.f32 %v3592_v30, %v3558_v46  ;;  %v1612_v36 = vadd.f32 %v3937_v4, %v1483_v35  ;;  %v1358_v5 = vadd.f32 %v3939_v62, %v3938_v42 }
 0x160   : > { %v3642_v12 = vpop.f32.mrf.mxu0  ;;  %v3644_v9 = vpop.f32.mrf.mxu1  ;;  %v1731_v28 = vadd.f32 %v3941_v51, %v1609_v6  ;;  %v1610_v48 = vadd.f32 %v3942_v58, %v1481_v3  ;;  %v1615_v35 = vadd.f32 %v3946_v7, %v1486_v44  ;;  %v3947_v3 = vld [vmem:[#allocation7_spill] sm:$0xff] }
 0x162   : > { %v3647_v33 = vpop.f32.mrf.mxu0  ;;  %v3651_v55 = vpop.f32.mrf.mxu1  ;;  %v3952_v51 = vld [vmem:[#allocation17_spill] sm:$0xff] }
 0x164   : > { %v3655_v41 = vpop.f32.mrf.mxu0  ;;  %v2774_v56 = vpop.f32.mrf.mxu1  ;;  %v3955_v7 = vld [vmem:[#allocation20_spill] sm:$0xff] }
 0x165   : > { %v1860_v34 = vadd.f32 %v2774_v56, %v1729_v49  ;;  %v3943_v49 = vld [vmem:[#allocation4_spill] sm:$0xff] }
 0x166   : > { %v3663_v63 = vpop.f32.mrf.mxu0  ;;  %v1795_v2 = vpop.f32.mrf.mxu1  ;;  %v1488_v61 = vadd.f32 %v3943_v49, %v1357_v15 }
 0x167   : > { %v1858_v1 = vadd.f32 %v1795_v2, %v1727_v45  ;;  %v3717_v45 = vadd.f32 %v3944_v27, %v1360_v24 }
 0x168   : > { %v2792_v60 = vpop.f32.mrf.mxu0  ;;  %v2775_v20 = vpop.f32.mrf.mxu1 }
 0x169   : > { %v1989_v17 = vadd.f32 %v2792_v60, %v1860_v34  ;;  %v1861_v59 = vadd.f32 %v2775_v20, %v1730_v13  ;;  %v1734_v34 = vadd.f32 %v3945_v8, %v1612_v36  ;;  %v3722_v13 = vadd.f32 %v3947_v3, %v1358_v5  ;;  %v3948_v20 = vld [vmem:[#allocation13_spill] sm:$0xff]  ;;  %v3951_v36 = vld [vmem:[#allocation16_spill] sm:$0xff]  ;;  %v3954_v8 = vld [vmem:[#allocation19_spill] sm:$0xff] }
 0x16a   : > { %v1924_v32 = vpop.f32.mrf.mxu0  ;;  %v1798_v23 = vpop.f32.mrf.mxu1  ;;  %v1732_v14 = vadd.f32 %v3948_v20, %v1610_v48 }
 0x16b   : > { %v3687_v19 = vadd.f32 %v3673_v54, %v1989_v17  ;;  %v1987_v22 = vadd.f32 %v1924_v32, %v1858_v1  ;;  %v1859_v53 = vadd.f32 %v1798_v23, %v1728_v39  ;;  %v3949_v39 = vld [vmem:[#allocation14_spill] sm:$0xff] }
 0x16c   : > { %v2793_v26 = vpop.f32.mrf.mxu0  ;;  %v2778_v43 = vpop.f32.mrf.mxu1  ;;  %v1613_v6 = vadd.f32 %v3949_v39, %v1484_v57  ;;  %v3950_v57 = vld [vmem:[#allocation15_spill] sm:$0xff] }
 0x16d   : > { %v2549_v0 = vpack.c.bf16 %v3687_v19, %v3687_v19  ;;  %v3703_v46 = vadd.f32 %v3673_v54, %v1987_v22  ;;  %v1990_v30 = vadd.f32 %v2793_v26, %v1861_v59  ;;  %v1864_v10 = vadd.f32 %v2778_v43, %v1733_v47 }
 0x16e   : > { %v1927_v25 = vpop.f32.mrf.mxu0  ;;  %v1811_v56 = vpop.f32.mrf.mxu1  ;;  %v1737_v4 = vadd.f32 %v3950_v57, %v1615_v35  ;;  %v1616_v26 = vadd.f32 %v3951_v36, %v1487_v38  ;;  %v2111_v5 = vsel %vm2107_vm6, %v3687_v19, 0.0  ;;  %v3953_v38 = vld [vmem:[#allocation18_spill] sm:$0xff] }
 0x16f   : > { %2093 = vst.msk [vmem:[%s3696_s25 + $0x8] sm:$0xf] %vm2090_vm5, %v2549_v0  ;;  %v2547_v16 = vpack.c.bf16 %v3703_v46, %v3703_v46  ;;  %v3714_v52 = vadd.f32 %v3673_v54, %v1990_v30  ;;  %v1988_v18 = vadd.f32 %v1927_v25, %v1859_v53  ;;  %v1862_v2 = vadd.f32 %v1811_v56, %v1731_v28 }
 0x170   : > { %v2796_v37 = vpop.f32.mrf.mxu0  ;;  %v2779_v17 = vpop.f32.mrf.mxu1  ;;  %v2108_v44 = vsel %vm2107_vm6, %v3703_v46, 0.0  ;;  %v1735_v28 = vadd.f32 %v3952_v51, %v1613_v6  ;;  %v1614_v58 = vadd.f32 %v3953_v38, %v1485_v50  ;;  %v1619_v50 = vadd.f32 %v3955_v7, %v1490_v11 }
 0x171   : > { %2091 = vst.msk [vmem:[%s3696_s25] sm:$0xf] %vm2090_vm5, %v2547_v16  ;;  %v2550_v29 = vpack.c.bf16 %v3714_v52, %v3714_v52  ;;  %v3729_v60 = vadd.f32 %v3673_v54, %v1988_v18  ;;  %v1993_v1 = vadd.f32 %v2796_v37, %v1864_v10  ;;  %v1865_v59 = vadd.f32 %v2779_v17, %v1734_v34 }
 0x172   : > { %v1940_v32 = vpop.f32.mrf.mxu0  ;;  %v1814_v47 = vpop.f32.mrf.mxu1  ;;  %v2113_v49 = vsel %vm2107_vm6, %v3714_v52, 0.0  ;;  %v1738_v34 = vadd.f32 %v3954_v8, %v1616_v26  ;;  %v1617_v11 = vadd.f32 %v3639_v31, %v1488_v61  ;;  %v1620_v31 = vadd.f32 %v3644_v9, %v3717_v45 }
 0x173   : > { %2094 = vst.msk [vmem:[%s3696_s25 + $0xc] sm:$0xf] %vm2090_vm5, %v2550_v29  ;;  %v2548_v15 = vpack.c.bf16 %v3729_v60, %v3729_v60  ;;  %v2109_v22 = vsel %vm2107_vm6, %v3729_v60, 0.0  ;;  %v3742_v23 = vadd.f32 %v3673_v54, %v1993_v1  ;;  %v1991_v24 = vadd.f32 %v1940_v32, %v1862_v2 }
 0x174   : > { %v2110_v53 = vadd.f32 %v2109_v22, %v2108_v44  ;;  %v2797_v42 = vpop.f32.mrf.mxu0  ;;  %v1863_v62 = vadd.f32 %v1814_v47, %v1732_v14  ;;  %v2782_v21 = vpop.f32.mrf.mxu1  ;;  %v1736_v14 = vadd.f32 %v3637_v40, %v1614_v58  ;;  %v1741_v40 = vadd.f32 %v3642_v12, %v1619_v50 }
 0x175   : > { %2092 = vst.msk [vmem:[%s3696_s25 + $0x4] sm:$0xf] %vm2090_vm5, %v2548_v15  ;;  %v2553_v0 = vpack.c.bf16 %v3742_v23, %v3742_v23  ;;  %v3753_v30 = vadd.f32 %v3673_v54, %v1991_v24  ;;  %v1994_v43 = vadd.f32 %v2797_v42, %v1865_v59  ;;  %v1868_v10 = vadd.f32 %v2782_v21, %v1737_v4 }
 0x176   : > { %v2112_v48 = vadd.f32 %v2111_v5, %v2110_v53  ;;  %v1943_v25 = vpop.f32.mrf.mxu0  ;;  %v1827_v27 = vpop.f32.mrf.mxu1  ;;  %v2119_v4 = vsel %vm2107_vm6, %v3742_v23, 0.0  ;;  %v1739_v9 = vadd.f32 %v3647_v33, %v1617_v11  ;;  %v1618_v45 = vadd.f32 %v3651_v55, %v3722_v13 }
 0x177   : > { %2097 = vst.msk [vmem:[%s3696_s25 + $0x18] sm:$0xf] %vm2090_vm5, %v2553_v0  ;;  %v2551_v16 = vpack.c.bf16 %v3753_v30, %v3753_v30  ;;  %v3764_v18 = vadd.f32 %v3673_v54, %v1994_v43  ;;  %v1992_v56 = vadd.f32 %v1943_v25, %v1863_v62  ;;  %v1866_v2 = vadd.f32 %v1827_v27, %v1735_v28 }
 0x178   : > { %v2114_v35 = vadd.f32 %v2113_v49, %v2112_v48  ;;  %v2800_v37 = vpop.f32.mrf.mxu0  ;;  %v2115_v3 = vsel %vm2107_vm6, %v3753_v30, 0.0  ;;  %v2783_v20 = vpop.f32.mrf.mxu1  ;;  %v1742_v28 = vadd.f32 %v3655_v41, %v1620_v31 }
 0x179   : > { %2095 = vst.msk [vmem:[%s3696_s25 + $0x10] sm:$0xf] %vm2090_vm5, %v2551_v16  ;;  %v2554_v29 = vpack.c.bf16 %v3764_v18, %v3764_v18  ;;  %v3775_v1 = vadd.f32 %v3673_v54, %v1992_v56  ;;  %v1997_v17 = vadd.f32 %v2800_v37, %v1868_v10  ;;  %v1869_v44 = vadd.f32 %v2783_v20, %v1738_v34 }
 0x17a   : > { %v2116_v39 = vadd.f32 %v2115_v3, %v2114_v35  ;;  %v1956_v6 = vpop.f32.mrf.mxu0  ;;  %v1830_v24 = vpop.f32.mrf.mxu1  ;;  %v2121_v0 = vsel %vm2107_vm6, %v3764_v18, 0.0  ;;  %v1740_v16 = vadd.f32 %v3663_v63, %v1618_v45 }
 0x17b   : > { %2098 = vst.msk [vmem:[%s3696_s25 + $0x1c] sm:$0xf] %vm2090_vm5, %v2554_v29  ;;  %v2552_v32 = vpack.c.bf16 %v3775_v1, %v3775_v1  ;;  %v2117_v59 = vsel %vm2107_vm6, %v3775_v1, 0.0  ;;  %v3786_v15 = vadd.f32 %v3673_v54, %v1997_v17  ;;  %v1995_v22 = vadd.f32 %v1956_v6, %v1866_v2 }
 0x17c   : > { %v2118_v61 = vadd.f32 %v2117_v59, %v2116_v39  ;;  %v2801_v47 = vpop.f32.mrf.mxu0  ;;  %v1867_v57 = vadd.f32 %v1830_v24, %v1736_v14  ;;  %v2786_v12 = vpop.f32.mrf.mxu1 }
 0x17d   : > { %2096 = vst.msk [vmem:[%s3696_s25 + $0x14] sm:$0xf] %vm2090_vm5, %v2552_v32  ;;  %v2557_v36 = vpack.c.bf16 %v3786_v15, %v3786_v15  ;;  %v3798_v26 = vadd.f32 %v3673_v54, %v1995_v22  ;;  %v1998_v53 = vadd.f32 %v2801_v47, %v1869_v44  ;;  %v1872_v5 = vadd.f32 %v2786_v12, %v1741_v40 }
 0x17e   : > { %v2120_v42 = vadd.f32 %v2119_v4, %v2118_v61  ;;  %v1959_v62 = vpop.f32.mrf.mxu0  ;;  %v1843_v33 = vpop.f32.mrf.mxu1  ;;  %v2127_v3 = vsel %vm2107_vm6, %v3786_v15, 0.0 }
 0x17f   : > { %2101 = vst.msk [vmem:[%s3696_s25 + $0x28] sm:$0xf] %vm2090_vm5, %v2557_v36  ;;  %v2555_v43 = vpack.c.bf16 %v3798_v26, %v3798_v26  ;;  %v3810_v21 = vadd.f32 %v3673_v54, %v1998_v53  ;;  %v1996_v51 = vadd.f32 %v1959_v62, %v1867_v57  ;;  %v1870_v38 = vadd.f32 %v1843_v33, %v1739_v9 }
 0x180   : > { %v2122_v55 = vadd.f32 %v2121_v0, %v2120_v42  ;;  %v2804_v13 = vpop.f32.mrf.mxu0  ;;  %v2123_v58 = vsel %vm2107_vm6, %v3798_v26, 0.0  ;;  %v2787_v49 = vpop.f32.mrf.mxu1 }
 0x181   : > { %2099 = vst.msk [vmem:[%s3696_s25 + $0x20] sm:$0xf] %vm2090_vm5, %v2555_v43  ;;  %v2558_v48 = vpack.c.bf16 %v3810_v21, %v3810_v21  ;;  %v3820_v25 = vadd.f32 %v3673_v54, %v1996_v51  ;;  %v2001_v10 = vadd.f32 %v2804_v13, %v1872_v5  ;;  %v1873_v27 = vadd.f32 %v2787_v49, %v1742_v28 }
 0x182   : > { %v2124_v41 = vadd.f32 %v2123_v58, %v2122_v55  ;;  %v1972_v56 = vpop.f32.mrf.mxu0  ;;  %v1846_v35 = vpop.f32.mrf.mxu1  ;;  %v2129_v39 = vsel %vm2107_vm6, %v3810_v21, 0.0 }
 0x183   : > { %2102 = vst.msk [vmem:[%s3696_s25 + $0x2c] sm:$0xf] %vm2090_vm5, %v2558_v48  ;;  %v2556_v8 = vpack.c.bf16 %v3820_v25, %v3820_v25  ;;  %v2125_v34 = vsel %vm2107_vm6, %v3820_v25, 0.0  ;;  %v2024_v7 = vadd.f32 %v3673_v54, %v2001_v10  ;;  %v1999_v50 = vadd.f32 %v1972_v56, %v1870_v38 }
 0x184   : > { %v2126_v37 = vadd.f32 %v2125_v34, %v2124_v41  ;;  %v2805_v2 = vpop.f32.mrf.mxu0  ;;  %v1871_v63 = vadd.f32 %v1846_v35, %v1740_v16 }
 0x185   : > { %2100 = vst.msk [vmem:[%s3696_s25 + $0x24] sm:$0xf] %vm2090_vm5, %v2556_v8  ;;  %v2561_v29 = vpack.c.bf16 %v2024_v7, %v2024_v7  ;;  %v2022_v17 = vadd.f32 %v3673_v54, %v1999_v50  ;;  %v2002_v20 = vadd.f32 %v2805_v2, %v1873_v27  ;;  %v2135_v4 = vsel %vm2107_vm6, %v2024_v7, 0.0 }
 0x186   : > { %v2128_v14 = vadd.f32 %v2127_v3, %v2126_v37  ;;  %v1975_v11 = vpop.f32.mrf.mxu0 }
 0x187   : > { %2105 = vst.msk [vmem:[%s3696_s25 + $0x38] sm:$0xf] %vm2090_vm5, %v2561_v29  ;;  %v2559_v6 = vpack.c.bf16 %v2022_v17, %v2022_v17  ;;  %v2025_v44 = vadd.f32 %v3673_v54, %v2002_v20  ;;  %v2000_v32 = vadd.f32 %v1975_v11, %v1871_v63  ;;  %v2131_v22 = vsel %vm2107_vm6, %v2022_v17, 0.0 }
 0x188   : > { %v2130_v59 = vadd.f32 %v2129_v39, %v2128_v14 }
 0x189   : > { %2103 = vst.msk [vmem:[%s3696_s25 + $0x30] sm:$0xf] %vm2090_vm5, %v2559_v6  ;;  %v2562_v24 = vpack.c.bf16 %v2025_v44, %v2025_v44  ;;  %v2023_v40 = vadd.f32 %v3673_v54, %v2000_v32  ;;  %v2137_v53 = vsel %vm2107_vm6, %v2025_v44, 0.0 }
 0x18a   : > { %v2132_v31 = vadd.f32 %v2131_v22, %v2130_v59 }
 0x18b   : > { %2106 = vst.msk [vmem:[%s3696_s25 + $0x3c] sm:$0xf] %vm2090_vm5, %v2562_v24  ;;  %v2560_v61 = vpack.c.bf16 %v2023_v40, %v2023_v40  ;;  %v2133_v47 = vsel %vm2107_vm6, %v2023_v40, 0.0 }
 0x18c   : > { %v2134_v57 = vadd.f32 %v2133_v47, %v2132_v31 }
 0x18d   : > { %2104 = vst.msk [vmem:[%s3696_s25 + $0x34] sm:$0xf] %vm2090_vm5, %v2560_v61 }
 0x18e   : > { %v2136_v36 = vadd.f32 %v2135_v4, %v2134_v57 }
 0x190   : > { %v2138_v12 = vadd.f32 %v2137_v53, %v2136_v36 }
 0x192   : > { %v2139_v9 = vrot.slane %v2138_v12, 4 }
 0x194   : > { %v2140_v54 = vadd.f32 %v2139_v9, %v2138_v12 }
 0x196   : > { %v2141_v45 = vrot.slane %v2140_v54, 2 }
 0x198   : > { %v2142_v42 = vadd.f32 %v2141_v45, %v2140_v54 }
 0x19a   : > { %v2143_v62 = vrot.slane %v2142_v42, 1 }
 0x19c   : > { %v2144_v5 = vadd.f32 %v2143_v62, %v2142_v42 }
 0x19e   : > { %v2145_v0 = vmul.f32 0.0078125, %v2144_v5  ;;  %2216 = vst.msk [vmem:[%s472_s10] sm:$0x1] %vm2215_vm7, %v2144_v5 }
 0x1a0   : > { %v2146_v43 = vsub.f32 %v3703_v46, %v2145_v0  ;;  %v2147_v51 = vsub.f32 %v3729_v60, %v2145_v0  ;;  %v2148_v33 = vsub.f32 %v3687_v19, %v2145_v0  ;;  %v2149_v28 = vsub.f32 %v3714_v52, %v2145_v0 }
 0x1a1   : > { %v2150_v55 = vsub.f32 %v3753_v30, %v2145_v0  ;;  %v2151_v13 = vsub.f32 %v3775_v1, %v2145_v0  ;;  %v2152_v38 = vsub.f32 %v3742_v23, %v2145_v0  ;;  %v2153_v58 = vsub.f32 %v3764_v18, %v2145_v0 }
 0x1a2   : > { %v2154_v48 = vsub.f32 %v3798_v26, %v2145_v0  ;;  %v2155_v10 = vsub.f32 %v3820_v25, %v2145_v0  ;;  %v2156_v46 = vsub.f32 %v3786_v15, %v2145_v0  ;;  %v2157_v60 = vsub.f32 %v3810_v21, %v2145_v0 }
 0x1a3   : > { %v2158_v49 = vsub.f32 %v2022_v17, %v2145_v0  ;;  %v2159_v19 = vsub.f32 %v2023_v40, %v2145_v0  ;;  %v2160_v16 = vsub.f32 %v2024_v7, %v2145_v0  ;;  %v2161_v52 = vsub.f32 %v2025_v44, %v2145_v0 }
 0x1a4   : > { %v2162_v41 = vmul.f32 %v2146_v43, %v2146_v43  ;;  %v2163_v30 = vmul.f32 %v2147_v51, %v2147_v51  ;;  %v2164_v56 = vmul.f32 %v2148_v33, %v2148_v33  ;;  %v2169_v1 = vmul.f32 %v2153_v58, %v2153_v58 }
 0x1a5   : > { %v2170_v27 = vmul.f32 %v2154_v48, %v2154_v48  ;;  %v2171_v23 = vmul.f32 %v2155_v10, %v2155_v10  ;;  %v2172_v8 = vmul.f32 %v2156_v46, %v2156_v46  ;;  %v2165_v18 = vmul.f32 %v2149_v28, %v2149_v28 }
 0x1a6   : > { %v2173_v34 = vmul.f32 %v2157_v60, %v2157_v60  ;;  %v2174_v26 = vmul.f32 %v2158_v49, %v2158_v49  ;;  %v2175_v50 = vmul.f32 %v2159_v19, %v2159_v19  ;;  %v2176_v25 = vmul.f32 %v2160_v16, %v2160_v16 }
 0x1a7   : > { %v2177_v35 = vmul.f32 %v2161_v52, %v2161_v52  ;;  %v2178_v15 = vsel %vm2107_vm6, %v2162_v41, 0.0  ;;  %v2179_v21 = vsel %vm2107_vm6, %v2163_v30, 0.0  ;;  %v2166_v37 = vmul.f32 %v2150_v55, %v2150_v55 }
 0x1a8   : > { %v2180_v7 = vadd.f32 %v2179_v21, %v2178_v15  ;;  %v2181_v2 = vsel %vm2107_vm6, %v2164_v56, 0.0  ;;  %v2191_v63 = vsel %vm2107_vm6, %v2169_v1, 0.0  ;;  %v2193_v3 = vsel %vm2107_vm6, %v2170_v27, 0.0 }
 0x1a9   : > { %v2195_v29 = vsel %vm2107_vm6, %v2171_v23, 0.0  ;;  %v2197_v17 = vsel %vm2107_vm6, %v2172_v8, 0.0  ;;  %v2199_v14 = vsel %vm2107_vm6, %v2173_v34, 0.0  ;;  %v2201_v11 = vsel %vm2107_vm6, %v2174_v26, 0.0 }
 0x1aa   : > { %v2182_v20 = vadd.f32 %v2181_v2, %v2180_v7  ;;  %v2203_v39 = vsel %vm2107_vm6, %v2175_v50, 0.0  ;;  %v2167_v6 = vmul.f32 %v2151_v13, %v2151_v13  ;;  %v2183_v44 = vsel %vm2107_vm6, %v2165_v18, 0.0 }
 0x1ab   : > { %v2205_v32 = vsel %vm2107_vm6, %v2176_v25, 0.0  ;;  %v2207_v59 = vsel %vm2107_vm6, %v2177_v35, 0.0  ;;  %v2168_v24 = vmul.f32 %v2152_v38, %v2152_v38  ;;  %v2185_v40 = vsel %vm2107_vm6, %v2166_v37, 0.0 }
 0x1ac   : > { %v2184_v22 = vadd.f32 %v2183_v44, %v2182_v20  ;;  %v2187_v61 = vsel %vm2107_vm6, %v2167_v6, 0.0 }
 0x1ad   : > { %v2189_v57 = vsel %vm2107_vm6, %v2168_v24, 0.0 }
 0x1ae   : > { %v2186_v31 = vadd.f32 %v2185_v40, %v2184_v22 }
 0x1b0   : > { %v2188_v47 = vadd.f32 %v2187_v61, %v2186_v31 }
 0x1b2   : > { %v2190_v4 = vadd.f32 %v2189_v57, %v2188_v47 }
 0x1b4   : > { %v2192_v36 = vadd.f32 %v2191_v63, %v2190_v4 }
 0x1b6   : > { %v2194_v53 = vadd.f32 %v2193_v3, %v2192_v36 }
 0x1b8   : > { %v2196_v12 = vadd.f32 %v2195_v29, %v2194_v53 }
 0x1ba   : > { %v2198_v9 = vadd.f32 %v2197_v17, %v2196_v12 }
 0x1bc   : > { %v2200_v54 = vadd.f32 %v2199_v14, %v2198_v9 }
 0x1be   : > { %v2202_v45 = vadd.f32 %v2201_v11, %v2200_v54 }
 0x1c0   : > { %v2204_v42 = vadd.f32 %v2203_v39, %v2202_v45 }
 0x1c2   : > { %v2206_v62 = vadd.f32 %v2205_v32, %v2204_v42 }
 0x1c4   : > { %v2208_v5 = vadd.f32 %v2207_v59, %v2206_v62 }
 0x1c6   : > { %v2209_v0 = vrot.slane %v2208_v5, 4 }
 0x1c8   : > { %v2210_v43 = vadd.f32 %v2209_v0, %v2208_v5 }
 0x1ca   : > { %v2211_v51 = vrot.slane %v2210_v43, 2 }
 0x1cc   : > { %v2212_v33 = vadd.f32 %v2211_v51, %v2210_v43 }
 0x1ce   : > { %v2213_v28 = vrot.slane %v2212_v33, 1 }
 0x1d0   : > { %v2214_v55 = vadd.f32 %v2213_v28, %v2212_v33 }
 0x1d2   : > { %2217 = vst.msk [vmem:[%s479_s22] sm:$0x1] %vm2215_vm7, %v2214_v55 }
 0x1d3 PF: > { %s20_s13 = sadd.s32 1, %s2896_s13   ;;  %s3956_s30 = smov %s2888_s11 }
 0x1d4   : > { %p17_p10 = scmp.ge.s32.totalorder %s20_s13, 6   ;;  %s3957_s10 = smov %s2892_s12 }
 0x1d5   : > { %s3958_s11 = smov %s3961_s14  ;;  %s3959_s12 = smov %s3965_s15 }
 0x1d6   :  { %19 = sbr.rel (!%p17_p10) target bundleno = 3 (0x3), region = 116 }

</bundles_post_ra>
